<compile_context>
chip_gen: v5e
topology: v5e:2x2
jax: 0.10.0
libtpu: 0.0.40
codegen_flags: <defaults>
</compile_context>

<pallas_src>
import jax
import jax.numpy as jnp
from jax import lax
from jax.experimental import pallas as pl
from jax.experimental.pallas import tpu as pltpu


# ------------------------- in-kernel building blocks -------------------------

def _conv_pool(in_ref, out_ref, w_ref, b_ref, rb_ref):
    """valid KHxKW conv (+bias), then fused 2x2 max-pool + ReLU (channels-last).

    in_ref : (H, W, Cin)            VMEM
    out_ref: (OH//2, OW//2, Cout)   VMEM (pooled output)
    w_ref  : (KH, KW, Cin, Cout)
    b_ref  : (1, Cout)
    rb_ref : (OW, Cout) scratch row buffer for the stride-2 width pooling
    """
    KH, KW, Cin, Cout = w_ref.shape
    H, W, _ = in_ref.shape
    OW = W - KW + 1
    PH, PW = out_ref.shape[0], out_ref.shape[1]
    bias = b_ref[...]                                   # (1, Cout)

    def body(r, carry):
        h0 = 2 * r
        # One shifted view per kernel column; rows h0..h0+KH cover both conv
        # output rows 2r and 2r+1.  Ref slices are just address math.
        blocks = [in_ref[pl.ds(h0, KH + 1), pl.ds(j, OW), :] for j in range(KW)]

        def conv_row(s):
            acc = jnp.zeros((OW, Cout), jnp.float32)
            for i in range(KH):
                for j in range(KW):
                    piece = blocks[j][s + i]            # (OW, Cin)
                    w_ij = w_ref[i, j]                  # (Cin, Cout)
                    if Cin == 1:                        # rank-1 tap: cheaper on VPU
                        acc = acc + piece * w_ij
                    else:
                        acc = acc + jnp.dot(piece, w_ij,
                                            preferred_element_type=jnp.float32)
            return acc

        # h-pooling of the row pair (bias commutes with max since it is shared).
        hp = jnp.maximum(conv_row(0), conv_row(1)) + bias          # (OW, Cout)
        # w-pooling via stride-2 reads of a tiny row buffer, then ReLU.
        rb_ref[...] = hp
        pooled = jnp.maximum(rb_ref[pl.ds(0, PW, 2), :],
                             rb_ref[pl.ds(1, PW, 2), :])
        out_ref[r, :, :] = jnp.maximum(pooled, 0.0)
        return carry

    lax.fori_loop(0, PH, body, 0)


def _conv3_fc(p2_ref, w3_ref, b3_ref, f1w_ref, f1b_ref, f2w_ref, f2b_ref, out_ref):
    """conv3 (5x5 -> 1x1 spatial) + fc1 + fc2 as one VMEM-resident matmul chain."""
    KH, KW, Cin, Cout = w3_ref.shape                    # (5, 5, 16, 120)
    acc = jnp.zeros((1, Cout), jnp.float32)
    for i in range(KH):
        for j in range(KW):
            piece = p2_ref[i, pl.ds(j, 1), :]           # (1, Cin)
            acc = acc + jnp.dot(piece, w3_ref[i, j],
                                preferred_element_type=jnp.float32)
    feat = jnp.maximum(acc + b3_ref[...], 0.0)          # (1, 120) == x.view(-1, 120)
    h = jnp.maximum(jnp.dot(feat, f1w_ref[...],
                            preferred_element_type=jnp.float32) + f1b_ref[...], 0.0)
    out_ref[...] = jnp.dot(h, f2w_ref[...],
                           preferred_element_type=jnp.float32) + f2b_ref[...]


def _lenet5_kernel(x_ref, w1_ref, b1_ref, w2_ref, b2_ref, w3_ref, b3_ref,
                   f1w_ref, f1b_ref, f2w_ref, f2b_ref, out_ref,
                   p1_ref, p2_ref, rb1_ref, rb2_ref):
    _conv_pool(x_ref, p1_ref, w1_ref, b1_ref, rb1_ref)   # conv1 + pool + relu
    _conv_pool(p1_ref, p2_ref, w2_ref, b2_ref, rb2_ref)  # conv2 + pool + relu
    _conv3_fc(p2_ref, w3_ref, b3_ref, f1w_ref, f1b_ref, f2w_ref, f2b_ref, out_ref)


# --------------------------------- wrapper -----------------------------------

def lenet5_forward(params, x):
    """x: (N, 1, 28, 28) float32 NCHW (PyTorch layout).  Returns (N, 10) logits."""
    n = x.shape[0]
    # NCHW -> channels-last + zero-pad of 2 for conv1 (single tiny prep op).
    xp = jnp.pad(jnp.transpose(x.astype(jnp.float32), (0, 2, 3, 1)),
                 ((0, 0), (2, 2), (2, 2), (0, 0)))       # (N, 32, 32, 1)

    def conv_w(w):   # (OC, Cin, KH, KW) -> (KH, KW, Cin, OC)
        return jnp.transpose(w.astype(jnp.float32), (2, 3, 1, 0))

    w1, b1 = conv_w(params["conv1_w"]), params["conv1_b"].reshape(1, -1)
    w2, b2 = conv_w(params["conv2_w"]), params["conv2_b"].reshape(1, -1)
    w3, b3 = conv_w(params["conv3_w"]), params["conv3_b"].reshape(1, -1)
    f1w, f1b = params["fc1_w"].T.astype(jnp.float32), params["fc1_b"].reshape(1, -1)
    f2w, f2b = params["fc2_w"].T.astype(jnp.float32), params["fc2_b"].reshape(1, -1)

    def batch_spec(shape):       # one sample per grid step, batch dim squeezed
        nrest = len(shape) - 1
        return pl.BlockSpec((None,) + tuple(shape[1:]),
                            lambda b: (b,) + (0,) * nrest)

    def full_spec(shape):        # same whole-array block for every grid step
        nd = len(shape)
        return pl.BlockSpec(tuple(shape), lambda b: (0,) * nd)

    out = pl.pallas_call(
        _lenet5_kernel,
        out_shape=jax.ShapeDtypeStruct((n, 1, 10), jnp.float32),
        grid=(n,),
        in_specs=[
            batch_spec(xp.shape),
            full_spec(w1.shape), full_spec(b1.shape),
            full_spec(w2.shape), full_spec(b2.shape),
            full_spec(w3.shape), full_spec(b3.shape),
            full_spec(f1w.shape), full_spec(f1b.shape),
            full_spec(f2w.shape), full_spec(f2b.shape),
        ],
        out_specs=batch_spec((n, 1, 10)),
        scratch_shapes=[
            pltpu.VMEM((14, 14, 6), jnp.float32),    # pooled conv1 activations
            pltpu.VMEM((5, 5, 16), jnp.float32),     # pooled conv2 activations
            pltpu.VMEM((28, 6), jnp.float32),        # conv1 row buffer (w-pooling)
            pltpu.VMEM((10, 16), jnp.float32),       # conv2 row buffer (w-pooling)
        ],
        compiler_params=pltpu.CompilerParams(dimension_semantics=("parallel",)),
    )(xp, w1, b1, w2, b2, w3, b3, f1w, f1b, f2w, f2b)
    return out.reshape(n, 10)


# ---------------------------- params / reference -----------------------------

def init_params(key):
    ks = jax.random.split(key, 10)

    def u(k, shape, fan_in):
        bound = 1.0 / jnp.sqrt(jnp.float32(fan_in))
        return jax.random.uniform(k, shape, jnp.float32, -bound, bound)

    return {
        "conv1_w": u(ks[0], (6, 1, 5, 5), 1 * 5 * 5),
        "conv1_b": u(ks[1], (6,), 1 * 5 * 5),
        "conv2_w": u(ks[2], (16, 6, 5, 5), 6 * 5 * 5),
        "conv2_b": u(ks[3], (16,), 6 * 5 * 5),
        "conv3_w": u(ks[4], (120, 16, 5, 5), 16 * 5 * 5),
        "conv3_b": u(ks[5], (120,), 16 * 5 * 5),
        "fc1_w": u(ks[6], (84, 120), 120),   # nn.Linear: (out, in)
        "fc1_b": u(ks[7], (84,), 120),
        "fc2_w": u(ks[8], (10, 84), 84),
        "fc2_b": u(ks[9], (10,), 84),
    }


def _pool_relu_ref(y):
    b, c, h, w = y.shape
    y = y.reshape(b, c, h // 2, 2, w // 2, 2).max(axis=(3, 5))
    return jnp.maximum(y, 0.0)


def lenet5_reference(params, x):
    """Pure-JAX reference of the PyTorch module (for validation)."""
    dn = ("NCHW", "OIHW", "NCHW")
    hp = lax.Precision.HIGHEST
    y = lax.conv_general_dilated(x, params["conv1_w"], (1, 1), ((2, 2), (2, 2)),
                                 dimension_numbers=dn, precision=hp)
    y = _pool_relu_ref(y + params["conv1_b"][None, :, None, None])
    y = lax.conv_general_dilated(y, params["conv2_w"], (1, 1), "VALID",
                                 dimension_numbers=dn, precision=hp)
    y = _pool_relu_ref(y + params["conv2_b"][None, :, None, None])
    y = lax.conv_general_dilated(y, params["conv3_w"], (1, 1), "VALID",
                                 dimension_numbers=dn, precision=hp)
    y = jnp.maximum(y + params["conv3_b"][None, :, None, None], 0.0)
    y = y.reshape(-1, 120)
    y = jnp.maximum(y @ params["fc1_w"].T + params["fc1_b"], 0.0)
    return y @ params["fc2_w"].T + params["fc2_b"]


if __name__ == "__main__":
    key = jax.random.PRNGKey(0)
    pkey, xkey = jax.random.split(key)
    params = init_params(pkey)
    x = jax.random.normal(xkey, (2, 1, 28, 28), jnp.float32)

    out = jax.block_until_ready(jax.jit(lenet5_forward)(params, x))
    assert out.shape == (2, 10) and out.dtype == jnp.float32

    ref = jax.block_until_ready(jax.jit(lenet5_reference)(params, x))
    err = float(jnp.max(jnp.abs(out - ref)))
    if not jnp.allclose(out, ref, rtol=2e-2, atol=2e-2):
        raise AssertionError(f"Pallas LeNet-5 mismatch vs reference, max abs err={err}")
    print("KERNEL_OK")
</pallas_src>

<mosaic_0001>
module attributes {stable_mosaic.version = 11 : i64} {
  func.func @_lenet5_kernel(%arg0: i32, %arg1: memref<1x32x32x1xf32, #tpu.memory_space<vmem>>, %arg2: memref<5x5x1x6xf32, #tpu.memory_space<vmem>>, %arg3: memref<1x6xf32, #tpu.memory_space<vmem>>, %arg4: memref<5x5x6x16xf32, #tpu.memory_space<vmem>>, %arg5: memref<1x16xf32, #tpu.memory_space<vmem>>, %arg6: memref<5x5x16x120xf32, #tpu.memory_space<vmem>>, %arg7: memref<1x120xf32, #tpu.memory_space<vmem>>, %arg8: memref<120x84xf32, #tpu.memory_space<vmem>>, %arg9: memref<1x84xf32, #tpu.memory_space<vmem>>, %arg10: memref<84x10xf32, #tpu.memory_space<vmem>>, %arg11: memref<1x10xf32, #tpu.memory_space<vmem>>, %arg12: memref<1x1x10xf32, #tpu.memory_space<vmem>>, %arg13: memref<14x14x6xf32, #tpu.memory_space<vmem>>, %arg14: memref<5x5x16xf32, #tpu.memory_space<vmem>>, %arg15: memref<28x6xf32, #tpu.memory_space<vmem>>, %arg16: memref<10x16xf32, #tpu.memory_space<vmem>>) attributes {dimension_semantics = [#tpu.dimension_semantics<parallel>], iteration_bounds = array<i64: 2>, scalar_prefetch = 0 : i64, scratch_operands = 4 : i64, tpu.core_type = #tpu.core_type<tc>, window_params = [{transform_indices = @transform_0, window_bounds = array<i64: 1, 32, 32, 1>}, {pipeline_mode = #tpu.pipeline_mode<synchronous>, transform_indices = @transform_1, window_bounds = array<i64: 5, 5, 1, 6>}, {pipeline_mode = #tpu.pipeline_mode<synchronous>, transform_indices = @transform_2, window_bounds = array<i64: 1, 6>}, {pipeline_mode = #tpu.pipeline_mode<synchronous>, transform_indices = @transform_3, window_bounds = array<i64: 5, 5, 6, 16>}, {pipeline_mode = #tpu.pipeline_mode<synchronous>, transform_indices = @transform_4, window_bounds = array<i64: 1, 16>}, {pipeline_mode = #tpu.pipeline_mode<synchronous>, transform_indices = @transform_5, window_bounds = array<i64: 5, 5, 16, 120>}, {pipeline_mode = #tpu.pipeline_mode<synchronous>, transform_indices = @transform_6, window_bounds = array<i64: 1, 120>}, {pipeline_mode = #tpu.pipeline_mode<synchronous>, transform_indices = @transform_7, window_bounds = array<i64: 120, 84>}, {pipeline_mode = #tpu.pipeline_mode<synchronous>, transform_indices = @transform_8, window_bounds = array<i64: 1, 84>}, {pipeline_mode = #tpu.pipeline_mode<synchronous>, transform_indices = @transform_9, window_bounds = array<i64: 84, 10>}, {pipeline_mode = #tpu.pipeline_mode<synchronous>, transform_indices = @transform_10, window_bounds = array<i64: 1, 10>}, {transform_indices = @transform_11, window_bounds = array<i64: 1, 1, 10>}]} {
    %c0 = arith.constant 0 : index
    %c0_0 = arith.constant 0 : index
    %0 = vector.load %arg3[%c0, %c0_0] : memref<1x6xf32, #tpu.memory_space<vmem>>, vector<1x6xf32>
    %c0_i32 = arith.constant 0 : i32
    %c14_i32 = arith.constant 14 : i32
    %1 = arith.addi %c0_i32, %c14_i32 : i32
    %c1_i32 = arith.constant 1 : i32
    scf.for %arg17 = %c0_i32 to %1 step %c1_i32  : i32 {
      %c2_i32 = arith.constant 2 : i32
      %172 = arith.muli %c2_i32, %arg17 : i32
      %c0_220 = arith.constant 0 : index
      %173 = arith.index_cast %172 : i32 to index
      %c0_221 = arith.constant 0 : index
      %c0_222 = arith.constant 0 : index
      %174 = vector.load %arg1[%c0_220, %173, %c0_221, %c0_222] : memref<1x32x32x1xf32, #tpu.memory_space<vmem>>, vector<1x6x28x1xf32>
      %175 = vector.shape_cast %174 : vector<1x6x28x1xf32> to vector<6x28x1xf32>
      %c0_223 = arith.constant 0 : index
      %176 = arith.index_cast %172 : i32 to index
      %c1_224 = arith.constant 1 : index
      %c0_225 = arith.constant 0 : index
      %177 = vector.load %arg1[%c0_223, %176, %c1_224, %c0_225] : memref<1x32x32x1xf32, #tpu.memory_space<vmem>>, vector<1x6x28x1xf32>
      %178 = vector.shape_cast %177 : vector<1x6x28x1xf32> to vector<6x28x1xf32>
      %c0_226 = arith.constant 0 : index
      %179 = arith.index_cast %172 : i32 to index
      %c2_227 = arith.constant 2 : index
      %c0_228 = arith.constant 0 : index
      %180 = vector.load %arg1[%c0_226, %179, %c2_227, %c0_228] : memref<1x32x32x1xf32, #tpu.memory_space<vmem>>, vector<1x6x28x1xf32>
      %181 = vector.shape_cast %180 : vector<1x6x28x1xf32> to vector<6x28x1xf32>
      %c0_229 = arith.constant 0 : index
      %182 = arith.index_cast %172 : i32 to index
      %c3_230 = arith.constant 3 : index
      %c0_231 = arith.constant 0 : index
      %183 = vector.load %arg1[%c0_229, %182, %c3_230, %c0_231] : memref<1x32x32x1xf32, #tpu.memory_space<vmem>>, vector<1x6x28x1xf32>
      %184 = vector.shape_cast %183 : vector<1x6x28x1xf32> to vector<6x28x1xf32>
      %c0_232 = arith.constant 0 : index
      %185 = arith.index_cast %172 : i32 to index
      %c4_233 = arith.constant 4 : index
      %c0_234 = arith.constant 0 : index
      %186 = vector.load %arg1[%c0_232, %185, %c4_233, %c0_234] : memref<1x32x32x1xf32, #tpu.memory_space<vmem>>, vector<1x6x28x1xf32>
      %187 = vector.shape_cast %186 : vector<1x6x28x1xf32> to vector<6x28x1xf32>
      %cst_235 = arith.constant 0.000000e+00 : f32
      %188 = vector.broadcast %cst_235 : f32 to vector<28x6xf32>
      %189 = vector.extract_strided_slice %175 {offsets = [0, 0, 0], sizes = [1, 28, 1], strides = [1, 1, 1]} : vector<6x28x1xf32> to vector<1x28x1xf32>
      %190 = vector.shape_cast %189 : vector<1x28x1xf32> to vector<28x1xf32>
      %c0_236 = arith.constant 0 : index
      %c0_237 = arith.constant 0 : index
      %c0_238 = arith.constant 0 : index
      %c0_239 = arith.constant 0 : index
      %191 = vector.load %arg2[%c0_236, %c0_237, %c0_238, %c0_239] : memref<5x5x1x6xf32, #tpu.memory_space<vmem>>, vector<1x1x1x6xf32>
      %192 = vector.shape_cast %191 : vector<1x1x1x6xf32> to vector<1x6xf32>
      %193 = vector.broadcast %190 : vector<28x1xf32> to vector<28x6xf32>
      %194 = vector.broadcast %192 : vector<1x6xf32> to vector<28x6xf32>
      %195 = arith.mulf %193, %194 : vector<28x6xf32>
      %196 = arith.addf %188, %195 : vector<28x6xf32>
      %197 = vector.extract_strided_slice %178 {offsets = [0, 0, 0], sizes = [1, 28, 1], strides = [1, 1, 1]} : vector<6x28x1xf32> to vector<1x28x1xf32>
      %198 = vector.shape_cast %197 : vector<1x28x1xf32> to vector<28x1xf32>
      %c0_240 = arith.constant 0 : index
      %c1_241 = arith.constant 1 : index
      %c0_242 = arith.constant 0 : index
      %c0_243 = arith.constant 0 : index
      %199 = vector.load %arg2[%c0_240, %c1_241, %c0_242, %c0_243] : memref<5x5x1x6xf32, #tpu.memory_space<vmem>>, vector<1x1x1x6xf32>
      %200 = vector.shape_cast %199 : vector<1x1x1x6xf32> to vector<1x6xf32>
      %201 = vector.broadcast %198 : vector<28x1xf32> to vector<28x6xf32>
      %202 = vector.broadcast %200 : vector<1x6xf32> to vector<28x6xf32>
      %203 = arith.mulf %201, %202 : vector<28x6xf32>
      %204 = arith.addf %196, %203 : vector<28x6xf32>
      %205 = vector.extract_strided_slice %181 {offsets = [0, 0, 0], sizes = [1, 28, 1], strides = [1, 1, 1]} : vector<6x28x1xf32> to vector<1x28x1xf32>
      %206 = vector.shape_cast %205 : vector<1x28x1xf32> to vector<28x1xf32>
      %c0_244 = arith.constant 0 : index
      %c2_245 = arith.constant 2 : index
      %c0_246 = arith.constant 0 : index
      %c0_247 = arith.constant 0 : index
      %207 = vector.load %arg2[%c0_244, %c2_245, %c0_246, %c0_247] : memref<5x5x1x6xf32, #tpu.memory_space<vmem>>, vector<1x1x1x6xf32>
      %208 = vector.shape_cast %207 : vector<1x1x1x6xf32> to vector<1x6xf32>
      %209 = vector.broadcast %206 : vector<28x1xf32> to vector<28x6xf32>
      %210 = vector.broadcast %208 : vector<1x6xf32> to vector<28x6xf32>
      %211 = arith.mulf %209, %210 : vector<28x6xf32>
      %212 = arith.addf %204, %211 : vector<28x6xf32>
      %213 = vector.extract_strided_slice %184 {offsets = [0, 0, 0], sizes = [1, 28, 1], strides = [1, 1, 1]} : vector<6x28x1xf32> to vector<1x28x1xf32>
      %214 = vector.shape_cast %213 : vector<1x28x1xf32> to vector<28x1xf32>
      %c0_248 = arith.constant 0 : index
      %c3_249 = arith.constant 3 : index
      %c0_250 = arith.constant 0 : index
      %c0_251 = arith.constant 0 : index
      %215 = vector.load %arg2[%c0_248, %c3_249, %c0_250, %c0_251] : memref<5x5x1x6xf32, #tpu.memory_space<vmem>>, vector<1x1x1x6xf32>
      %216 = vector.shape_cast %215 : vector<1x1x1x6xf32> to vector<1x6xf32>
      %217 = vector.broadcast %214 : vector<28x1xf32> to vector<28x6xf32>
      %218 = vector.broadcast %216 : vector<1x6xf32> to vector<28x6xf32>
      %219 = arith.mulf %217, %218 : vector<28x6xf32>
      %220 = arith.addf %212, %219 : vector<28x6xf32>
      %221 = vector.extract_strided_slice %187 {offsets = [0, 0, 0], sizes = [1, 28, 1], strides = [1, 1, 1]} : vector<6x28x1xf32> to vector<1x28x1xf32>
      %222 = vector.shape_cast %221 : vector<1x28x1xf32> to vector<28x1xf32>
      %c0_252 = arith.constant 0 : index
      %c4_253 = arith.constant 4 : index
      %c0_254 = arith.constant 0 : index
      %c0_255 = arith.constant 0 : index
      %223 = vector.load %arg2[%c0_252, %c4_253, %c0_254, %c0_255] : memref<5x5x1x6xf32, #tpu.memory_space<vmem>>, vector<1x1x1x6xf32>
      %224 = vector.shape_cast %223 : vector<1x1x1x6xf32> to vector<1x6xf32>
      %225 = vector.broadcast %222 : vector<28x1xf32> to vector<28x6xf32>
      %226 = vector.broadcast %224 : vector<1x6xf32> to vector<28x6xf32>
      %227 = arith.mulf %225, %226 : vector<28x6xf32>
      %228 = arith.addf %220, %227 : vector<28x6xf32>
      %229 = vector.extract_strided_slice %175 {offsets = [1, 0, 0], sizes = [1, 28, 1], strides = [1, 1, 1]} : vector<6x28x1xf32> to vector<1x28x1xf32>
      %230 = vector.shape_cast %229 : vector<1x28x1xf32> to vector<28x1xf32>
      %c1_256 = arith.constant 1 : index
      %c0_257 = arith.constant 0 : index
      %c0_258 = arith.constant 0 : index
      %c0_259 = arith.constant 0 : index
      %231 = vector.load %arg2[%c1_256, %c0_257, %c0_258, %c0_259] : memref<5x5x1x6xf32, #tpu.memory_space<vmem>>, vector<1x1x1x6xf32>
      %232 = vector.shape_cast %231 : vector<1x1x1x6xf32> to vector<1x6xf32>
      %233 = vector.broadcast %230 : vector<28x1xf32> to vector<28x6xf32>
      %234 = vector.broadcast %232 : vector<1x6xf32> to vector<28x6xf32>
      %235 = arith.mulf %233, %234 : vector<28x6xf32>
      %236 = arith.addf %228, %235 : vector<28x6xf32>
      %237 = vector.extract_strided_slice %178 {offsets = [1, 0, 0], sizes = [1, 28, 1], strides = [1, 1, 1]} : vector<6x28x1xf32> to vector<1x28x1xf32>
      %238 = vector.shape_cast %237 : vector<1x28x1xf32> to vector<28x1xf32>
      %c1_260 = arith.constant 1 : index
      %c1_261 = arith.constant 1 : index
      %c0_262 = arith.constant 0 : index
      %c0_263 = arith.constant 0 : index
      %239 = vector.load %arg2[%c1_260, %c1_261, %c0_262, %c0_263] : memref<5x5x1x6xf32, #tpu.memory_space<vmem>>, vector<1x1x1x6xf32>
      %240 = vector.shape_cast %239 : vector<1x1x1x6xf32> to vector<1x6xf32>
      %241 = vector.broadcast %238 : vector<28x1xf32> to vector<28x6xf32>
      %242 = vector.broadcast %240 : vector<1x6xf32> to vector<28x6xf32>
      %243 = arith.mulf %241, %242 : vector<28x6xf32>
      %244 = arith.addf %236, %243 : vector<28x6xf32>
      %245 = vector.extract_strided_slice %181 {offsets = [1, 0, 0], sizes = [1, 28, 1], strides = [1, 1, 1]} : vector<6x28x1xf32> to vector<1x28x1xf32>
      %246 = vector.shape_cast %245 : vector<1x28x1xf32> to vector<28x1xf32>
      %c1_264 = arith.constant 1 : index
      %c2_265 = arith.constant 2 : index
      %c0_266 = arith.constant 0 : index
      %c0_267 = arith.constant 0 : index
      %247 = vector.load %arg2[%c1_264, %c2_265, %c0_266, %c0_267] : memref<5x5x1x6xf32, #tpu.memory_space<vmem>>, vector<1x1x1x6xf32>
      %248 = vector.shape_cast %247 : vector<1x1x1x6xf32> to vector<1x6xf32>
      %249 = vector.broadcast %246 : vector<28x1xf32> to vector<28x6xf32>
      %250 = vector.broadcast %248 : vector<1x6xf32> to vector<28x6xf32>
      %251 = arith.mulf %249, %250 : vector<28x6xf32>
      %252 = arith.addf %244, %251 : vector<28x6xf32>
      %253 = vector.extract_strided_slice %184 {offsets = [1, 0, 0], sizes = [1, 28, 1], strides = [1, 1, 1]} : vector<6x28x1xf32> to vector<1x28x1xf32>
      %254 = vector.shape_cast %253 : vector<1x28x1xf32> to vector<28x1xf32>
      %c1_268 = arith.constant 1 : index
      %c3_269 = arith.constant 3 : index
      %c0_270 = arith.constant 0 : index
      %c0_271 = arith.constant 0 : index
      %255 = vector.load %arg2[%c1_268, %c3_269, %c0_270, %c0_271] : memref<5x5x1x6xf32, #tpu.memory_space<vmem>>, vector<1x1x1x6xf32>
      %256 = vector.shape_cast %255 : vector<1x1x1x6xf32> to vector<1x6xf32>
      %257 = vector.broadcast %254 : vector<28x1xf32> to vector<28x6xf32>
      %258 = vector.broadcast %256 : vector<1x6xf32> to vector<28x6xf32>
      %259 = arith.mulf %257, %258 : vector<28x6xf32>
      %260 = arith.addf %252, %259 : vector<28x6xf32>
      %261 = vector.extract_strided_slice %187 {offsets = [1, 0, 0], sizes = [1, 28, 1], strides = [1, 1, 1]} : vector<6x28x1xf32> to vector<1x28x1xf32>
      %262 = vector.shape_cast %261 : vector<1x28x1xf32> to vector<28x1xf32>
      %c1_272 = arith.constant 1 : index
      %c4_273 = arith.constant 4 : index
      %c0_274 = arith.constant 0 : index
      %c0_275 = arith.constant 0 : index
      %263 = vector.load %arg2[%c1_272, %c4_273, %c0_274, %c0_275] : memref<5x5x1x6xf32, #tpu.memory_space<vmem>>, vector<1x1x1x6xf32>
      %264 = vector.shape_cast %263 : vector<1x1x1x6xf32> to vector<1x6xf32>
      %265 = vector.broadcast %262 : vector<28x1xf32> to vector<28x6xf32>
      %266 = vector.broadcast %264 : vector<1x6xf32> to vector<28x6xf32>
      %267 = arith.mulf %265, %266 : vector<28x6xf32>
      %268 = arith.addf %260, %267 : vector<28x6xf32>
      %269 = vector.extract_strided_slice %175 {offsets = [2, 0, 0], sizes = [1, 28, 1], strides = [1, 1, 1]} : vector<6x28x1xf32> to vector<1x28x1xf32>
      %270 = vector.shape_cast %269 : vector<1x28x1xf32> to vector<28x1xf32>
      %c2_276 = arith.constant 2 : index
      %c0_277 = arith.constant 0 : index
      %c0_278 = arith.constant 0 : index
      %c0_279 = arith.constant 0 : index
      %271 = vector.load %arg2[%c2_276, %c0_277, %c0_278, %c0_279] : memref<5x5x1x6xf32, #tpu.memory_space<vmem>>, vector<1x1x1x6xf32>
      %272 = vector.shape_cast %271 : vector<1x1x1x6xf32> to vector<1x6xf32>
      %273 = vector.broadcast %270 : vector<28x1xf32> to vector<28x6xf32>
      %274 = vector.broadcast %272 : vector<1x6xf32> to vector<28x6xf32>
      %275 = arith.mulf %273, %274 : vector<28x6xf32>
      %276 = arith.addf %268, %275 : vector<28x6xf32>
      %277 = vector.extract_strided_slice %178 {offsets = [2, 0, 0], sizes = [1, 28, 1], strides = [1, 1, 1]} : vector<6x28x1xf32> to vector<1x28x1xf32>
      %278 = vector.shape_cast %277 : vector<1x28x1xf32> to vector<28x1xf32>
      %c2_280 = arith.constant 2 : index
      %c1_281 = arith.constant 1 : index
      %c0_282 = arith.constant 0 : index
      %c0_283 = arith.constant 0 : index
      %279 = vector.load %arg2[%c2_280, %c1_281, %c0_282, %c0_283] : memref<5x5x1x6xf32, #tpu.memory_space<vmem>>, vector<1x1x1x6xf32>
      %280 = vector.shape_cast %279 : vector<1x1x1x6xf32> to vector<1x6xf32>
      %281 = vector.broadcast %278 : vector<28x1xf32> to vector<28x6xf32>
      %282 = vector.broadcast %280 : vector<1x6xf32> to vector<28x6xf32>
      %283 = arith.mulf %281, %282 : vector<28x6xf32>
      %284 = arith.addf %276, %283 : vector<28x6xf32>
      %285 = vector.extract_strided_slice %181 {offsets = [2, 0, 0], sizes = [1, 28, 1], strides = [1, 1, 1]} : vector<6x28x1xf32> to vector<1x28x1xf32>
      %286 = vector.shape_cast %285 : vector<1x28x1xf32> to vector<28x1xf32>
      %c2_284 = arith.constant 2 : index
      %c2_285 = arith.constant 2 : index
      %c0_286 = arith.constant 0 : index
      %c0_287 = arith.constant 0 : index
      %287 = vector.load %arg2[%c2_284, %c2_285, %c0_286, %c0_287] : memref<5x5x1x6xf32, #tpu.memory_space<vmem>>, vector<1x1x1x6xf32>
      %288 = vector.shape_cast %287 : vector<1x1x1x6xf32> to vector<1x6xf32>
      %289 = vector.broadcast %286 : vector<28x1xf32> to vector<28x6xf32>
      %290 = vector.broadcast %288 : vector<1x6xf32> to vector<28x6xf32>
      %291 = arith.mulf %289, %290 : vector<28x6xf32>
      %292 = arith.addf %284, %291 : vector<28x6xf32>
      %293 = vector.extract_strided_slice %184 {offsets = [2, 0, 0], sizes = [1, 28, 1], strides = [1, 1, 1]} : vector<6x28x1xf32> to vector<1x28x1xf32>
      %294 = vector.shape_cast %293 : vector<1x28x1xf32> to vector<28x1xf32>
      %c2_288 = arith.constant 2 : index
      %c3_289 = arith.constant 3 : index
      %c0_290 = arith.constant 0 : index
      %c0_291 = arith.constant 0 : index
      %295 = vector.load %arg2[%c2_288, %c3_289, %c0_290, %c0_291] : memref<5x5x1x6xf32, #tpu.memory_space<vmem>>, vector<1x1x1x6xf32>
      %296 = vector.shape_cast %295 : vector<1x1x1x6xf32> to vector<1x6xf32>
      %297 = vector.broadcast %294 : vector<28x1xf32> to vector<28x6xf32>
      %298 = vector.broadcast %296 : vector<1x6xf32> to vector<28x6xf32>
      %299 = arith.mulf %297, %298 : vector<28x6xf32>
      %300 = arith.addf %292, %299 : vector<28x6xf32>
      %301 = vector.extract_strided_slice %187 {offsets = [2, 0, 0], sizes = [1, 28, 1], strides = [1, 1, 1]} : vector<6x28x1xf32> to vector<1x28x1xf32>
      %302 = vector.shape_cast %301 : vector<1x28x1xf32> to vector<28x1xf32>
      %c2_292 = arith.constant 2 : index
      %c4_293 = arith.constant 4 : index
      %c0_294 = arith.constant 0 : index
      %c0_295 = arith.constant 0 : index
      %303 = vector.load %arg2[%c2_292, %c4_293, %c0_294, %c0_295] : memref<5x5x1x6xf32, #tpu.memory_space<vmem>>, vector<1x1x1x6xf32>
      %304 = vector.shape_cast %303 : vector<1x1x1x6xf32> to vector<1x6xf32>
      %305 = vector.broadcast %302 : vector<28x1xf32> to vector<28x6xf32>
      %306 = vector.broadcast %304 : vector<1x6xf32> to vector<28x6xf32>
      %307 = arith.mulf %305, %306 : vector<28x6xf32>
      %308 = arith.addf %300, %307 : vector<28x6xf32>
      %309 = vector.extract_strided_slice %175 {offsets = [3, 0, 0], sizes = [1, 28, 1], strides = [1, 1, 1]} : vector<6x28x1xf32> to vector<1x28x1xf32>
      %310 = vector.shape_cast %309 : vector<1x28x1xf32> to vector<28x1xf32>
      %c3_296 = arith.constant 3 : index
      %c0_297 = arith.constant 0 : index
      %c0_298 = arith.constant 0 : index
      %c0_299 = arith.constant 0 : index
      %311 = vector.load %arg2[%c3_296, %c0_297, %c0_298, %c0_299] : memref<5x5x1x6xf32, #tpu.memory_space<vmem>>, vector<1x1x1x6xf32>
      %312 = vector.shape_cast %311 : vector<1x1x1x6xf32> to vector<1x6xf32>
      %313 = vector.broadcast %310 : vector<28x1xf32> to vector<28x6xf32>
      %314 = vector.broadcast %312 : vector<1x6xf32> to vector<28x6xf32>
      %315 = arith.mulf %313, %314 : vector<28x6xf32>
      %316 = arith.addf %308, %315 : vector<28x6xf32>
      %317 = vector.extract_strided_slice %178 {offsets = [3, 0, 0], sizes = [1, 28, 1], strides = [1, 1, 1]} : vector<6x28x1xf32> to vector<1x28x1xf32>
      %318 = vector.shape_cast %317 : vector<1x28x1xf32> to vector<28x1xf32>
      %c3_300 = arith.constant 3 : index
      %c1_301 = arith.constant 1 : index
      %c0_302 = arith.constant 0 : index
      %c0_303 = arith.constant 0 : index
      %319 = vector.load %arg2[%c3_300, %c1_301, %c0_302, %c0_303] : memref<5x5x1x6xf32, #tpu.memory_space<vmem>>, vector<1x1x1x6xf32>
      %320 = vector.shape_cast %319 : vector<1x1x1x6xf32> to vector<1x6xf32>
      %321 = vector.broadcast %318 : vector<28x1xf32> to vector<28x6xf32>
      %322 = vector.broadcast %320 : vector<1x6xf32> to vector<28x6xf32>
      %323 = arith.mulf %321, %322 : vector<28x6xf32>
      %324 = arith.addf %316, %323 : vector<28x6xf32>
      %325 = vector.extract_strided_slice %181 {offsets = [3, 0, 0], sizes = [1, 28, 1], strides = [1, 1, 1]} : vector<6x28x1xf32> to vector<1x28x1xf32>
      %326 = vector.shape_cast %325 : vector<1x28x1xf32> to vector<28x1xf32>
      %c3_304 = arith.constant 3 : index
      %c2_305 = arith.constant 2 : index
      %c0_306 = arith.constant 0 : index
      %c0_307 = arith.constant 0 : index
      %327 = vector.load %arg2[%c3_304, %c2_305, %c0_306, %c0_307] : memref<5x5x1x6xf32, #tpu.memory_space<vmem>>, vector<1x1x1x6xf32>
      %328 = vector.shape_cast %327 : vector<1x1x1x6xf32> to vector<1x6xf32>
      %329 = vector.broadcast %326 : vector<28x1xf32> to vector<28x6xf32>
      %330 = vector.broadcast %328 : vector<1x6xf32> to vector<28x6xf32>
      %331 = arith.mulf %329, %330 : vector<28x6xf32>
      %332 = arith.addf %324, %331 : vector<28x6xf32>
      %333 = vector.extract_strided_slice %184 {offsets = [3, 0, 0], sizes = [1, 28, 1], strides = [1, 1, 1]} : vector<6x28x1xf32> to vector<1x28x1xf32>
      %334 = vector.shape_cast %333 : vector<1x28x1xf32> to vector<28x1xf32>
      %c3_308 = arith.constant 3 : index
      %c3_309 = arith.constant 3 : index
      %c0_310 = arith.constant 0 : index
      %c0_311 = arith.constant 0 : index
      %335 = vector.load %arg2[%c3_308, %c3_309, %c0_310, %c0_311] : memref<5x5x1x6xf32, #tpu.memory_space<vmem>>, vector<1x1x1x6xf32>
      %336 = vector.shape_cast %335 : vector<1x1x1x6xf32> to vector<1x6xf32>
      %337 = vector.broadcast %334 : vector<28x1xf32> to vector<28x6xf32>
      %338 = vector.broadcast %336 : vector<1x6xf32> to vector<28x6xf32>
      %339 = arith.mulf %337, %338 : vector<28x6xf32>
      %340 = arith.addf %332, %339 : vector<28x6xf32>
      %341 = vector.extract_strided_slice %187 {offsets = [3, 0, 0], sizes = [1, 28, 1], strides = [1, 1, 1]} : vector<6x28x1xf32> to vector<1x28x1xf32>
      %342 = vector.shape_cast %341 : vector<1x28x1xf32> to vector<28x1xf32>
      %c3_312 = arith.constant 3 : index
      %c4_313 = arith.constant 4 : index
      %c0_314 = arith.constant 0 : index
      %c0_315 = arith.constant 0 : index
      %343 = vector.load %arg2[%c3_312, %c4_313, %c0_314, %c0_315] : memref<5x5x1x6xf32, #tpu.memory_space<vmem>>, vector<1x1x1x6xf32>
      %344 = vector.shape_cast %343 : vector<1x1x1x6xf32> to vector<1x6xf32>
      %345 = vector.broadcast %342 : vector<28x1xf32> to vector<28x6xf32>
      %346 = vector.broadcast %344 : vector<1x6xf32> to vector<28x6xf32>
      %347 = arith.mulf %345, %346 : vector<28x6xf32>
      %348 = arith.addf %340, %347 : vector<28x6xf32>
      %349 = vector.extract_strided_slice %175 {offsets = [4, 0, 0], sizes = [1, 28, 1], strides = [1, 1, 1]} : vector<6x28x1xf32> to vector<1x28x1xf32>
      %350 = vector.shape_cast %349 : vector<1x28x1xf32> to vector<28x1xf32>
      %c4_316 = arith.constant 4 : index
      %c0_317 = arith.constant 0 : index
      %c0_318 = arith.constant 0 : index
      %c0_319 = arith.constant 0 : index
      %351 = vector.load %arg2[%c4_316, %c0_317, %c0_318, %c0_319] : memref<5x5x1x6xf32, #tpu.memory_space<vmem>>, vector<1x1x1x6xf32>
      %352 = vector.shape_cast %351 : vector<1x1x1x6xf32> to vector<1x6xf32>
      %353 = vector.broadcast %350 : vector<28x1xf32> to vector<28x6xf32>
      %354 = vector.broadcast %352 : vector<1x6xf32> to vector<28x6xf32>
      %355 = arith.mulf %353, %354 : vector<28x6xf32>
      %356 = arith.addf %348, %355 : vector<28x6xf32>
      %357 = vector.extract_strided_slice %178 {offsets = [4, 0, 0], sizes = [1, 28, 1], strides = [1, 1, 1]} : vector<6x28x1xf32> to vector<1x28x1xf32>
      %358 = vector.shape_cast %357 : vector<1x28x1xf32> to vector<28x1xf32>
      %c4_320 = arith.constant 4 : index
      %c1_321 = arith.constant 1 : index
      %c0_322 = arith.constant 0 : index
      %c0_323 = arith.constant 0 : index
      %359 = vector.load %arg2[%c4_320, %c1_321, %c0_322, %c0_323] : memref<5x5x1x6xf32, #tpu.memory_space<vmem>>, vector<1x1x1x6xf32>
      %360 = vector.shape_cast %359 : vector<1x1x1x6xf32> to vector<1x6xf32>
      %361 = vector.broadcast %358 : vector<28x1xf32> to vector<28x6xf32>
      %362 = vector.broadcast %360 : vector<1x6xf32> to vector<28x6xf32>
      %363 = arith.mulf %361, %362 : vector<28x6xf32>
      %364 = arith.addf %356, %363 : vector<28x6xf32>
      %365 = vector.extract_strided_slice %181 {offsets = [4, 0, 0], sizes = [1, 28, 1], strides = [1, 1, 1]} : vector<6x28x1xf32> to vector<1x28x1xf32>
      %366 = vector.shape_cast %365 : vector<1x28x1xf32> to vector<28x1xf32>
      %c4_324 = arith.constant 4 : index
      %c2_325 = arith.constant 2 : index
      %c0_326 = arith.constant 0 : index
      %c0_327 = arith.constant 0 : index
      %367 = vector.load %arg2[%c4_324, %c2_325, %c0_326, %c0_327] : memref<5x5x1x6xf32, #tpu.memory_space<vmem>>, vector<1x1x1x6xf32>
      %368 = vector.shape_cast %367 : vector<1x1x1x6xf32> to vector<1x6xf32>
      %369 = vector.broadcast %366 : vector<28x1xf32> to vector<28x6xf32>
      %370 = vector.broadcast %368 : vector<1x6xf32> to vector<28x6xf32>
      %371 = arith.mulf %369, %370 : vector<28x6xf32>
      %372 = arith.addf %364, %371 : vector<28x6xf32>
      %373 = vector.extract_strided_slice %184 {offsets = [4, 0, 0], sizes = [1, 28, 1], strides = [1, 1, 1]} : vector<6x28x1xf32> to vector<1x28x1xf32>
      %374 = vector.shape_cast %373 : vector<1x28x1xf32> to vector<28x1xf32>
      %c4_328 = arith.constant 4 : index
      %c3_329 = arith.constant 3 : index
      %c0_330 = arith.constant 0 : index
      %c0_331 = arith.constant 0 : index
      %375 = vector.load %arg2[%c4_328, %c3_329, %c0_330, %c0_331] : memref<5x5x1x6xf32, #tpu.memory_space<vmem>>, vector<1x1x1x6xf32>
      %376 = vector.shape_cast %375 : vector<1x1x1x6xf32> to vector<1x6xf32>
      %377 = vector.broadcast %374 : vector<28x1xf32> to vector<28x6xf32>
      %378 = vector.broadcast %376 : vector<1x6xf32> to vector<28x6xf32>
      %379 = arith.mulf %377, %378 : vector<28x6xf32>
      %380 = arith.addf %372, %379 : vector<28x6xf32>
      %381 = vector.extract_strided_slice %187 {offsets = [4, 0, 0], sizes = [1, 28, 1], strides = [1, 1, 1]} : vector<6x28x1xf32> to vector<1x28x1xf32>
      %382 = vector.shape_cast %381 : vector<1x28x1xf32> to vector<28x1xf32>
      %c4_332 = arith.constant 4 : index
      %c4_333 = arith.constant 4 : index
      %c0_334 = arith.constant 0 : index
      %c0_335 = arith.constant 0 : index
      %383 = vector.load %arg2[%c4_332, %c4_333, %c0_334, %c0_335] : memref<5x5x1x6xf32, #tpu.memory_space<vmem>>, vector<1x1x1x6xf32>
      %384 = vector.shape_cast %383 : vector<1x1x1x6xf32> to vector<1x6xf32>
      %385 = vector.broadcast %382 : vector<28x1xf32> to vector<28x6xf32>
      %386 = vector.broadcast %384 : vector<1x6xf32> to vector<28x6xf32>
      %387 = arith.mulf %385, %386 : vector<28x6xf32>
      %388 = arith.addf %380, %387 : vector<28x6xf32>
      %cst_336 = arith.constant 0.000000e+00 : f32
      %389 = vector.broadcast %cst_336 : f32 to vector<28x6xf32>
      %390 = vector.extract_strided_slice %175 {offsets = [1, 0, 0], sizes = [1, 28, 1], strides = [1, 1, 1]} : vector<6x28x1xf32> to vector<1x28x1xf32>
      %391 = vector.shape_cast %390 : vector<1x28x1xf32> to vector<28x1xf32>
      %c0_337 = arith.constant 0 : index
      %c0_338 = arith.constant 0 : index
      %c0_339 = arith.constant 0 : index
      %c0_340 = arith.constant 0 : index
      %392 = vector.load %arg2[%c0_337, %c0_338, %c0_339, %c0_340] : memref<5x5x1x6xf32, #tpu.memory_space<vmem>>, vector<1x1x1x6xf32>
      %393 = vector.shape_cast %392 : vector<1x1x1x6xf32> to vector<1x6xf32>
      %394 = vector.broadcast %391 : vector<28x1xf32> to vector<28x6xf32>
      %395 = vector.broadcast %393 : vector<1x6xf32> to vector<28x6xf32>
      %396 = arith.mulf %394, %395 : vector<28x6xf32>
      %397 = arith.addf %389, %396 : vector<28x6xf32>
      %398 = vector.extract_strided_slice %178 {offsets = [1, 0, 0], sizes = [1, 28, 1], strides = [1, 1, 1]} : vector<6x28x1xf32> to vector<1x28x1xf32>
      %399 = vector.shape_cast %398 : vector<1x28x1xf32> to vector<28x1xf32>
      %c0_341 = arith.constant 0 : index
      %c1_342 = arith.constant 1 : index
      %c0_343 = arith.constant 0 : index
      %c0_344 = arith.constant 0 : index
      %400 = vector.load %arg2[%c0_341, %c1_342, %c0_343, %c0_344] : memref<5x5x1x6xf32, #tpu.memory_space<vmem>>, vector<1x1x1x6xf32>
      %401 = vector.shape_cast %400 : vector<1x1x1x6xf32> to vector<1x6xf32>
      %402 = vector.broadcast %399 : vector<28x1xf32> to vector<28x6xf32>
      %403 = vector.broadcast %401 : vector<1x6xf32> to vector<28x6xf32>
      %404 = arith.mulf %402, %403 : vector<28x6xf32>
      %405 = arith.addf %397, %404 : vector<28x6xf32>
      %406 = vector.extract_strided_slice %181 {offsets = [1, 0, 0], sizes = [1, 28, 1], strides = [1, 1, 1]} : vector<6x28x1xf32> to vector<1x28x1xf32>
      %407 = vector.shape_cast %406 : vector<1x28x1xf32> to vector<28x1xf32>
      %c0_345 = arith.constant 0 : index
      %c2_346 = arith.constant 2 : index
      %c0_347 = arith.constant 0 : index
      %c0_348 = arith.constant 0 : index
      %408 = vector.load %arg2[%c0_345, %c2_346, %c0_347, %c0_348] : memref<5x5x1x6xf32, #tpu.memory_space<vmem>>, vector<1x1x1x6xf32>
      %409 = vector.shape_cast %408 : vector<1x1x1x6xf32> to vector<1x6xf32>
      %410 = vector.broadcast %407 : vector<28x1xf32> to vector<28x6xf32>
      %411 = vector.broadcast %409 : vector<1x6xf32> to vector<28x6xf32>
      %412 = arith.mulf %410, %411 : vector<28x6xf32>
      %413 = arith.addf %405, %412 : vector<28x6xf32>
      %414 = vector.extract_strided_slice %184 {offsets = [1, 0, 0], sizes = [1, 28, 1], strides = [1, 1, 1]} : vector<6x28x1xf32> to vector<1x28x1xf32>
      %415 = vector.shape_cast %414 : vector<1x28x1xf32> to vector<28x1xf32>
      %c0_349 = arith.constant 0 : index
      %c3_350 = arith.constant 3 : index
      %c0_351 = arith.constant 0 : index
      %c0_352 = arith.constant 0 : index
      %416 = vector.load %arg2[%c0_349, %c3_350, %c0_351, %c0_352] : memref<5x5x1x6xf32, #tpu.memory_space<vmem>>, vector<1x1x1x6xf32>
      %417 = vector.shape_cast %416 : vector<1x1x1x6xf32> to vector<1x6xf32>
      %418 = vector.broadcast %415 : vector<28x1xf32> to vector<28x6xf32>
      %419 = vector.broadcast %417 : vector<1x6xf32> to vector<28x6xf32>
      %420 = arith.mulf %418, %419 : vector<28x6xf32>
      %421 = arith.addf %413, %420 : vector<28x6xf32>
      %422 = vector.extract_strided_slice %187 {offsets = [1, 0, 0], sizes = [1, 28, 1], strides = [1, 1, 1]} : vector<6x28x1xf32> to vector<1x28x1xf32>
      %423 = vector.shape_cast %422 : vector<1x28x1xf32> to vector<28x1xf32>
      %c0_353 = arith.constant 0 : index
      %c4_354 = arith.constant 4 : index
      %c0_355 = arith.constant 0 : index
      %c0_356 = arith.constant 0 : index
      %424 = vector.load %arg2[%c0_353, %c4_354, %c0_355, %c0_356] : memref<5x5x1x6xf32, #tpu.memory_space<vmem>>, vector<1x1x1x6xf32>
      %425 = vector.shape_cast %424 : vector<1x1x1x6xf32> to vector<1x6xf32>
      %426 = vector.broadcast %423 : vector<28x1xf32> to vector<28x6xf32>
      %427 = vector.broadcast %425 : vector<1x6xf32> to vector<28x6xf32>
      %428 = arith.mulf %426, %427 : vector<28x6xf32>
      %429 = arith.addf %421, %428 : vector<28x6xf32>
      %430 = vector.extract_strided_slice %175 {offsets = [2, 0, 0], sizes = [1, 28, 1], strides = [1, 1, 1]} : vector<6x28x1xf32> to vector<1x28x1xf32>
      %431 = vector.shape_cast %430 : vector<1x28x1xf32> to vector<28x1xf32>
      %c1_357 = arith.constant 1 : index
      %c0_358 = arith.constant 0 : index
      %c0_359 = arith.constant 0 : index
      %c0_360 = arith.constant 0 : index
      %432 = vector.load %arg2[%c1_357, %c0_358, %c0_359, %c0_360] : memref<5x5x1x6xf32, #tpu.memory_space<vmem>>, vector<1x1x1x6xf32>
      %433 = vector.shape_cast %432 : vector<1x1x1x6xf32> to vector<1x6xf32>
      %434 = vector.broadcast %431 : vector<28x1xf32> to vector<28x6xf32>
      %435 = vector.broadcast %433 : vector<1x6xf32> to vector<28x6xf32>
      %436 = arith.mulf %434, %435 : vector<28x6xf32>
      %437 = arith.addf %429, %436 : vector<28x6xf32>
      %438 = vector.extract_strided_slice %178 {offsets = [2, 0, 0], sizes = [1, 28, 1], strides = [1, 1, 1]} : vector<6x28x1xf32> to vector<1x28x1xf32>
      %439 = vector.shape_cast %438 : vector<1x28x1xf32> to vector<28x1xf32>
      %c1_361 = arith.constant 1 : index
      %c1_362 = arith.constant 1 : index
      %c0_363 = arith.constant 0 : index
      %c0_364 = arith.constant 0 : index
      %440 = vector.load %arg2[%c1_361, %c1_362, %c0_363, %c0_364] : memref<5x5x1x6xf32, #tpu.memory_space<vmem>>, vector<1x1x1x6xf32>
      %441 = vector.shape_cast %440 : vector<1x1x1x6xf32> to vector<1x6xf32>
      %442 = vector.broadcast %439 : vector<28x1xf32> to vector<28x6xf32>
      %443 = vector.broadcast %441 : vector<1x6xf32> to vector<28x6xf32>
      %444 = arith.mulf %442, %443 : vector<28x6xf32>
      %445 = arith.addf %437, %444 : vector<28x6xf32>
      %446 = vector.extract_strided_slice %181 {offsets = [2, 0, 0], sizes = [1, 28, 1], strides = [1, 1, 1]} : vector<6x28x1xf32> to vector<1x28x1xf32>
      %447 = vector.shape_cast %446 : vector<1x28x1xf32> to vector<28x1xf32>
      %c1_365 = arith.constant 1 : index
      %c2_366 = arith.constant 2 : index
      %c0_367 = arith.constant 0 : index
      %c0_368 = arith.constant 0 : index
      %448 = vector.load %arg2[%c1_365, %c2_366, %c0_367, %c0_368] : memref<5x5x1x6xf32, #tpu.memory_space<vmem>>, vector<1x1x1x6xf32>
      %449 = vector.shape_cast %448 : vector<1x1x1x6xf32> to vector<1x6xf32>
      %450 = vector.broadcast %447 : vector<28x1xf32> to vector<28x6xf32>
      %451 = vector.broadcast %449 : vector<1x6xf32> to vector<28x6xf32>
      %452 = arith.mulf %450, %451 : vector<28x6xf32>
      %453 = arith.addf %445, %452 : vector<28x6xf32>
      %454 = vector.extract_strided_slice %184 {offsets = [2, 0, 0], sizes = [1, 28, 1], strides = [1, 1, 1]} : vector<6x28x1xf32> to vector<1x28x1xf32>
      %455 = vector.shape_cast %454 : vector<1x28x1xf32> to vector<28x1xf32>
      %c1_369 = arith.constant 1 : index
      %c3_370 = arith.constant 3 : index
      %c0_371 = arith.constant 0 : index
      %c0_372 = arith.constant 0 : index
      %456 = vector.load %arg2[%c1_369, %c3_370, %c0_371, %c0_372] : memref<5x5x1x6xf32, #tpu.memory_space<vmem>>, vector<1x1x1x6xf32>
      %457 = vector.shape_cast %456 : vector<1x1x1x6xf32> to vector<1x6xf32>
      %458 = vector.broadcast %455 : vector<28x1xf32> to vector<28x6xf32>
      %459 = vector.broadcast %457 : vector<1x6xf32> to vector<28x6xf32>
      %460 = arith.mulf %458, %459 : vector<28x6xf32>
      %461 = arith.addf %453, %460 : vector<28x6xf32>
      %462 = vector.extract_strided_slice %187 {offsets = [2, 0, 0], sizes = [1, 28, 1], strides = [1, 1, 1]} : vector<6x28x1xf32> to vector<1x28x1xf32>
      %463 = vector.shape_cast %462 : vector<1x28x1xf32> to vector<28x1xf32>
      %c1_373 = arith.constant 1 : index
      %c4_374 = arith.constant 4 : index
      %c0_375 = arith.constant 0 : index
      %c0_376 = arith.constant 0 : index
      %464 = vector.load %arg2[%c1_373, %c4_374, %c0_375, %c0_376] : memref<5x5x1x6xf32, #tpu.memory_space<vmem>>, vector<1x1x1x6xf32>
      %465 = vector.shape_cast %464 : vector<1x1x1x6xf32> to vector<1x6xf32>
      %466 = vector.broadcast %463 : vector<28x1xf32> to vector<28x6xf32>
      %467 = vector.broadcast %465 : vector<1x6xf32> to vector<28x6xf32>
      %468 = arith.mulf %466, %467 : vector<28x6xf32>
      %469 = arith.addf %461, %468 : vector<28x6xf32>
      %470 = vector.extract_strided_slice %175 {offsets = [3, 0, 0], sizes = [1, 28, 1], strides = [1, 1, 1]} : vector<6x28x1xf32> to vector<1x28x1xf32>
      %471 = vector.shape_cast %470 : vector<1x28x1xf32> to vector<28x1xf32>
      %c2_377 = arith.constant 2 : index
      %c0_378 = arith.constant 0 : index
      %c0_379 = arith.constant 0 : index
      %c0_380 = arith.constant 0 : index
      %472 = vector.load %arg2[%c2_377, %c0_378, %c0_379, %c0_380] : memref<5x5x1x6xf32, #tpu.memory_space<vmem>>, vector<1x1x1x6xf32>
      %473 = vector.shape_cast %472 : vector<1x1x1x6xf32> to vector<1x6xf32>
      %474 = vector.broadcast %471 : vector<28x1xf32> to vector<28x6xf32>
      %475 = vector.broadcast %473 : vector<1x6xf32> to vector<28x6xf32>
      %476 = arith.mulf %474, %475 : vector<28x6xf32>
      %477 = arith.addf %469, %476 : vector<28x6xf32>
      %478 = vector.extract_strided_slice %178 {offsets = [3, 0, 0], sizes = [1, 28, 1], strides = [1, 1, 1]} : vector<6x28x1xf32> to vector<1x28x1xf32>
      %479 = vector.shape_cast %478 : vector<1x28x1xf32> to vector<28x1xf32>
      %c2_381 = arith.constant 2 : index
      %c1_382 = arith.constant 1 : index
      %c0_383 = arith.constant 0 : index
      %c0_384 = arith.constant 0 : index
      %480 = vector.load %arg2[%c2_381, %c1_382, %c0_383, %c0_384] : memref<5x5x1x6xf32, #tpu.memory_space<vmem>>, vector<1x1x1x6xf32>
      %481 = vector.shape_cast %480 : vector<1x1x1x6xf32> to vector<1x6xf32>
      %482 = vector.broadcast %479 : vector<28x1xf32> to vector<28x6xf32>
      %483 = vector.broadcast %481 : vector<1x6xf32> to vector<28x6xf32>
      %484 = arith.mulf %482, %483 : vector<28x6xf32>
      %485 = arith.addf %477, %484 : vector<28x6xf32>
      %486 = vector.extract_strided_slice %181 {offsets = [3, 0, 0], sizes = [1, 28, 1], strides = [1, 1, 1]} : vector<6x28x1xf32> to vector<1x28x1xf32>
      %487 = vector.shape_cast %486 : vector<1x28x1xf32> to vector<28x1xf32>
      %c2_385 = arith.constant 2 : index
      %c2_386 = arith.constant 2 : index
      %c0_387 = arith.constant 0 : index
      %c0_388 = arith.constant 0 : index
      %488 = vector.load %arg2[%c2_385, %c2_386, %c0_387, %c0_388] : memref<5x5x1x6xf32, #tpu.memory_space<vmem>>, vector<1x1x1x6xf32>
      %489 = vector.shape_cast %488 : vector<1x1x1x6xf32> to vector<1x6xf32>
      %490 = vector.broadcast %487 : vector<28x1xf32> to vector<28x6xf32>
      %491 = vector.broadcast %489 : vector<1x6xf32> to vector<28x6xf32>
      %492 = arith.mulf %490, %491 : vector<28x6xf32>
      %493 = arith.addf %485, %492 : vector<28x6xf32>
      %494 = vector.extract_strided_slice %184 {offsets = [3, 0, 0], sizes = [1, 28, 1], strides = [1, 1, 1]} : vector<6x28x1xf32> to vector<1x28x1xf32>
      %495 = vector.shape_cast %494 : vector<1x28x1xf32> to vector<28x1xf32>
      %c2_389 = arith.constant 2 : index
      %c3_390 = arith.constant 3 : index
      %c0_391 = arith.constant 0 : index
      %c0_392 = arith.constant 0 : index
      %496 = vector.load %arg2[%c2_389, %c3_390, %c0_391, %c0_392] : memref<5x5x1x6xf32, #tpu.memory_space<vmem>>, vector<1x1x1x6xf32>
      %497 = vector.shape_cast %496 : vector<1x1x1x6xf32> to vector<1x6xf32>
      %498 = vector.broadcast %495 : vector<28x1xf32> to vector<28x6xf32>
      %499 = vector.broadcast %497 : vector<1x6xf32> to vector<28x6xf32>
      %500 = arith.mulf %498, %499 : vector<28x6xf32>
      %501 = arith.addf %493, %500 : vector<28x6xf32>
      %502 = vector.extract_strided_slice %187 {offsets = [3, 0, 0], sizes = [1, 28, 1], strides = [1, 1, 1]} : vector<6x28x1xf32> to vector<1x28x1xf32>
      %503 = vector.shape_cast %502 : vector<1x28x1xf32> to vector<28x1xf32>
      %c2_393 = arith.constant 2 : index
      %c4_394 = arith.constant 4 : index
      %c0_395 = arith.constant 0 : index
      %c0_396 = arith.constant 0 : index
      %504 = vector.load %arg2[%c2_393, %c4_394, %c0_395, %c0_396] : memref<5x5x1x6xf32, #tpu.memory_space<vmem>>, vector<1x1x1x6xf32>
      %505 = vector.shape_cast %504 : vector<1x1x1x6xf32> to vector<1x6xf32>
      %506 = vector.broadcast %503 : vector<28x1xf32> to vector<28x6xf32>
      %507 = vector.broadcast %505 : vector<1x6xf32> to vector<28x6xf32>
      %508 = arith.mulf %506, %507 : vector<28x6xf32>
      %509 = arith.addf %501, %508 : vector<28x6xf32>
      %510 = vector.extract_strided_slice %175 {offsets = [4, 0, 0], sizes = [1, 28, 1], strides = [1, 1, 1]} : vector<6x28x1xf32> to vector<1x28x1xf32>
      %511 = vector.shape_cast %510 : vector<1x28x1xf32> to vector<28x1xf32>
      %c3_397 = arith.constant 3 : index
      %c0_398 = arith.constant 0 : index
      %c0_399 = arith.constant 0 : index
      %c0_400 = arith.constant 0 : index
      %512 = vector.load %arg2[%c3_397, %c0_398, %c0_399, %c0_400] : memref<5x5x1x6xf32, #tpu.memory_space<vmem>>, vector<1x1x1x6xf32>
      %513 = vector.shape_cast %512 : vector<1x1x1x6xf32> to vector<1x6xf32>
      %514 = vector.broadcast %511 : vector<28x1xf32> to vector<28x6xf32>
      %515 = vector.broadcast %513 : vector<1x6xf32> to vector<28x6xf32>
      %516 = arith.mulf %514, %515 : vector<28x6xf32>
      %517 = arith.addf %509, %516 : vector<28x6xf32>
      %518 = vector.extract_strided_slice %178 {offsets = [4, 0, 0], sizes = [1, 28, 1], strides = [1, 1, 1]} : vector<6x28x1xf32> to vector<1x28x1xf32>
      %519 = vector.shape_cast %518 : vector<1x28x1xf32> to vector<28x1xf32>
      %c3_401 = arith.constant 3 : index
      %c1_402 = arith.constant 1 : index
      %c0_403 = arith.constant 0 : index
      %c0_404 = arith.constant 0 : index
      %520 = vector.load %arg2[%c3_401, %c1_402, %c0_403, %c0_404] : memref<5x5x1x6xf32, #tpu.memory_space<vmem>>, vector<1x1x1x6xf32>
      %521 = vector.shape_cast %520 : vector<1x1x1x6xf32> to vector<1x6xf32>
      %522 = vector.broadcast %519 : vector<28x1xf32> to vector<28x6xf32>
      %523 = vector.broadcast %521 : vector<1x6xf32> to vector<28x6xf32>
      %524 = arith.mulf %522, %523 : vector<28x6xf32>
      %525 = arith.addf %517, %524 : vector<28x6xf32>
      %526 = vector.extract_strided_slice %181 {offsets = [4, 0, 0], sizes = [1, 28, 1], strides = [1, 1, 1]} : vector<6x28x1xf32> to vector<1x28x1xf32>
      %527 = vector.shape_cast %526 : vector<1x28x1xf32> to vector<28x1xf32>
      %c3_405 = arith.constant 3 : index
      %c2_406 = arith.constant 2 : index
      %c0_407 = arith.constant 0 : index
      %c0_408 = arith.constant 0 : index
      %528 = vector.load %arg2[%c3_405, %c2_406, %c0_407, %c0_408] : memref<5x5x1x6xf32, #tpu.memory_space<vmem>>, vector<1x1x1x6xf32>
      %529 = vector.shape_cast %528 : vector<1x1x1x6xf32> to vector<1x6xf32>
      %530 = vector.broadcast %527 : vector<28x1xf32> to vector<28x6xf32>
      %531 = vector.broadcast %529 : vector<1x6xf32> to vector<28x6xf32>
      %532 = arith.mulf %530, %531 : vector<28x6xf32>
      %533 = arith.addf %525, %532 : vector<28x6xf32>
      %534 = vector.extract_strided_slice %184 {offsets = [4, 0, 0], sizes = [1, 28, 1], strides = [1, 1, 1]} : vector<6x28x1xf32> to vector<1x28x1xf32>
      %535 = vector.shape_cast %534 : vector<1x28x1xf32> to vector<28x1xf32>
      %c3_409 = arith.constant 3 : index
      %c3_410 = arith.constant 3 : index
      %c0_411 = arith.constant 0 : index
      %c0_412 = arith.constant 0 : index
      %536 = vector.load %arg2[%c3_409, %c3_410, %c0_411, %c0_412] : memref<5x5x1x6xf32, #tpu.memory_space<vmem>>, vector<1x1x1x6xf32>
      %537 = vector.shape_cast %536 : vector<1x1x1x6xf32> to vector<1x6xf32>
      %538 = vector.broadcast %535 : vector<28x1xf32> to vector<28x6xf32>
      %539 = vector.broadcast %537 : vector<1x6xf32> to vector<28x6xf32>
      %540 = arith.mulf %538, %539 : vector<28x6xf32>
      %541 = arith.addf %533, %540 : vector<28x6xf32>
      %542 = vector.extract_strided_slice %187 {offsets = [4, 0, 0], sizes = [1, 28, 1], strides = [1, 1, 1]} : vector<6x28x1xf32> to vector<1x28x1xf32>
      %543 = vector.shape_cast %542 : vector<1x28x1xf32> to vector<28x1xf32>
      %c3_413 = arith.constant 3 : index
      %c4_414 = arith.constant 4 : index
      %c0_415 = arith.constant 0 : index
      %c0_416 = arith.constant 0 : index
      %544 = vector.load %arg2[%c3_413, %c4_414, %c0_415, %c0_416] : memref<5x5x1x6xf32, #tpu.memory_space<vmem>>, vector<1x1x1x6xf32>
      %545 = vector.shape_cast %544 : vector<1x1x1x6xf32> to vector<1x6xf32>
      %546 = vector.broadcast %543 : vector<28x1xf32> to vector<28x6xf32>
      %547 = vector.broadcast %545 : vector<1x6xf32> to vector<28x6xf32>
      %548 = arith.mulf %546, %547 : vector<28x6xf32>
      %549 = arith.addf %541, %548 : vector<28x6xf32>
      %550 = vector.extract_strided_slice %175 {offsets = [5, 0, 0], sizes = [1, 28, 1], strides = [1, 1, 1]} : vector<6x28x1xf32> to vector<1x28x1xf32>
      %551 = vector.shape_cast %550 : vector<1x28x1xf32> to vector<28x1xf32>
      %c4_417 = arith.constant 4 : index
      %c0_418 = arith.constant 0 : index
      %c0_419 = arith.constant 0 : index
      %c0_420 = arith.constant 0 : index
      %552 = vector.load %arg2[%c4_417, %c0_418, %c0_419, %c0_420] : memref<5x5x1x6xf32, #tpu.memory_space<vmem>>, vector<1x1x1x6xf32>
      %553 = vector.shape_cast %552 : vector<1x1x1x6xf32> to vector<1x6xf32>
      %554 = vector.broadcast %551 : vector<28x1xf32> to vector<28x6xf32>
      %555 = vector.broadcast %553 : vector<1x6xf32> to vector<28x6xf32>
      %556 = arith.mulf %554, %555 : vector<28x6xf32>
      %557 = arith.addf %549, %556 : vector<28x6xf32>
      %558 = vector.extract_strided_slice %178 {offsets = [5, 0, 0], sizes = [1, 28, 1], strides = [1, 1, 1]} : vector<6x28x1xf32> to vector<1x28x1xf32>
      %559 = vector.shape_cast %558 : vector<1x28x1xf32> to vector<28x1xf32>
      %c4_421 = arith.constant 4 : index
      %c1_422 = arith.constant 1 : index
      %c0_423 = arith.constant 0 : index
      %c0_424 = arith.constant 0 : index
      %560 = vector.load %arg2[%c4_421, %c1_422, %c0_423, %c0_424] : memref<5x5x1x6xf32, #tpu.memory_space<vmem>>, vector<1x1x1x6xf32>
      %561 = vector.shape_cast %560 : vector<1x1x1x6xf32> to vector<1x6xf32>
      %562 = vector.broadcast %559 : vector<28x1xf32> to vector<28x6xf32>
      %563 = vector.broadcast %561 : vector<1x6xf32> to vector<28x6xf32>
      %564 = arith.mulf %562, %563 : vector<28x6xf32>
      %565 = arith.addf %557, %564 : vector<28x6xf32>
      %566 = vector.extract_strided_slice %181 {offsets = [5, 0, 0], sizes = [1, 28, 1], strides = [1, 1, 1]} : vector<6x28x1xf32> to vector<1x28x1xf32>
      %567 = vector.shape_cast %566 : vector<1x28x1xf32> to vector<28x1xf32>
      %c4_425 = arith.constant 4 : index
      %c2_426 = arith.constant 2 : index
      %c0_427 = arith.constant 0 : index
      %c0_428 = arith.constant 0 : index
      %568 = vector.load %arg2[%c4_425, %c2_426, %c0_427, %c0_428] : memref<5x5x1x6xf32, #tpu.memory_space<vmem>>, vector<1x1x1x6xf32>
      %569 = vector.shape_cast %568 : vector<1x1x1x6xf32> to vector<1x6xf32>
      %570 = vector.broadcast %567 : vector<28x1xf32> to vector<28x6xf32>
      %571 = vector.broadcast %569 : vector<1x6xf32> to vector<28x6xf32>
      %572 = arith.mulf %570, %571 : vector<28x6xf32>
      %573 = arith.addf %565, %572 : vector<28x6xf32>
      %574 = vector.extract_strided_slice %184 {offsets = [5, 0, 0], sizes = [1, 28, 1], strides = [1, 1, 1]} : vector<6x28x1xf32> to vector<1x28x1xf32>
      %575 = vector.shape_cast %574 : vector<1x28x1xf32> to vector<28x1xf32>
      %c4_429 = arith.constant 4 : index
      %c3_430 = arith.constant 3 : index
      %c0_431 = arith.constant 0 : index
      %c0_432 = arith.constant 0 : index
      %576 = vector.load %arg2[%c4_429, %c3_430, %c0_431, %c0_432] : memref<5x5x1x6xf32, #tpu.memory_space<vmem>>, vector<1x1x1x6xf32>
      %577 = vector.shape_cast %576 : vector<1x1x1x6xf32> to vector<1x6xf32>
      %578 = vector.broadcast %575 : vector<28x1xf32> to vector<28x6xf32>
      %579 = vector.broadcast %577 : vector<1x6xf32> to vector<28x6xf32>
      %580 = arith.mulf %578, %579 : vector<28x6xf32>
      %581 = arith.addf %573, %580 : vector<28x6xf32>
      %582 = vector.extract_strided_slice %187 {offsets = [5, 0, 0], sizes = [1, 28, 1], strides = [1, 1, 1]} : vector<6x28x1xf32> to vector<1x28x1xf32>
      %583 = vector.shape_cast %582 : vector<1x28x1xf32> to vector<28x1xf32>
      %c4_433 = arith.constant 4 : index
      %c4_434 = arith.constant 4 : index
      %c0_435 = arith.constant 0 : index
      %c0_436 = arith.constant 0 : index
      %584 = vector.load %arg2[%c4_433, %c4_434, %c0_435, %c0_436] : memref<5x5x1x6xf32, #tpu.memory_space<vmem>>, vector<1x1x1x6xf32>
      %585 = vector.shape_cast %584 : vector<1x1x1x6xf32> to vector<1x6xf32>
      %586 = vector.broadcast %583 : vector<28x1xf32> to vector<28x6xf32>
      %587 = vector.broadcast %585 : vector<1x6xf32> to vector<28x6xf32>
      %588 = arith.mulf %586, %587 : vector<28x6xf32>
      %589 = arith.addf %581, %588 : vector<28x6xf32>
      %590 = arith.maximumf %388, %589 : vector<28x6xf32>
      %591 = vector.broadcast %0 : vector<1x6xf32> to vector<28x6xf32>
      %592 = arith.addf %590, %591 : vector<28x6xf32>
      %c0_437 = arith.constant 0 : index
      %c0_438 = arith.constant 0 : index
      %593 = vector.load %arg15[%c0_437, %c0_438] : memref<28x6xf32, #tpu.memory_space<vmem>>, vector<28x6xf32>
      tpu.vector_store %arg15[%c0_437, %c0_438], %592 {strides = array<i32>} : memref<28x6xf32, #tpu.memory_space<vmem>>, vector<28x6xf32>,
      %c0_439 = arith.constant 0 : index
      %c0_440 = arith.constant 0 : index
      %594 = tpu.strided_load %arg15[%c0_439, %c0_440] {strides = array<i32: 2, 1>} : memref<28x6xf32, #tpu.memory_space<vmem>>, vector<14x6xf32>
      %c1_441 = arith.constant 1 : index
      %c0_442 = arith.constant 0 : index
      %595 = tpu.strided_load %arg15[%c1_441, %c0_442] {strides = array<i32: 2, 1>} : memref<28x6xf32, #tpu.memory_space<vmem>>, vector<14x6xf32>
      %596 = arith.maximumf %594, %595 : vector<14x6xf32>
      %cst_443 = arith.constant 0.000000e+00 : f32
      %597 = vector.broadcast %cst_443 : f32 to vector<14x6xf32>
      %598 = arith.maximumf %596, %597 : vector<14x6xf32>
      %599 = arith.index_cast %arg17 : i32 to index
      %c0_444 = arith.constant 0 : index
      %c0_445 = arith.constant 0 : index
      %600 = vector.load %arg13[%599, %c0_444, %c0_445] : memref<14x14x6xf32, #tpu.memory_space<vmem>>, vector<1x14x6xf32>
      %601 = vector.shape_cast %600 : vector<1x14x6xf32> to vector<14x6xf32>
      %602 = vector.shape_cast %598 : vector<14x6xf32> to vector<1x14x6xf32>
      tpu.vector_store %arg13[%599, %c0_444, %c0_445], %602 {strides = array<i32>} : memref<14x14x6xf32, #tpu.memory_space<vmem>>, vector<1x14x6xf32>,
    }
    %c14_i32_1 = arith.constant 14 : i32
    %c0_2 = arith.constant 0 : index
    %c0_3 = arith.constant 0 : index
    %2 = vector.load %arg5[%c0_2, %c0_3] : memref<1x16xf32, #tpu.memory_space<vmem>>, vector<1x16xf32>
    %c0_i32_4 = arith.constant 0 : i32
    %c5_i32 = arith.constant 5 : i32
    %3 = arith.addi %c0_i32_4, %c5_i32 : i32
    %c1_i32_5 = arith.constant 1 : i32
    scf.for %arg17 = %c0_i32_4 to %3 step %c1_i32_5  : i32 {
      %c2_i32 = arith.constant 2 : i32
      %172 = arith.muli %c2_i32, %arg17 : i32
      %173 = arith.index_cast %172 : i32 to index
      %c0_220 = arith.constant 0 : index
      %c0_221 = arith.constant 0 : index
      %174 = vector.load %arg13[%173, %c0_220, %c0_221] : memref<14x14x6xf32, #tpu.memory_space<vmem>>, vector<6x10x6xf32>
      %175 = arith.index_cast %172 : i32 to index
      %c1_222 = arith.constant 1 : index
      %c0_223 = arith.constant 0 : index
      %176 = vector.load %arg13[%175, %c1_222, %c0_223] : memref<14x14x6xf32, #tpu.memory_space<vmem>>, vector<6x10x6xf32>
      %177 = arith.index_cast %172 : i32 to index
      %c2_224 = arith.constant 2 : index
      %c0_225 = arith.constant 0 : index
      %178 = vector.load %arg13[%177, %c2_224, %c0_225] : memref<14x14x6xf32, #tpu.memory_space<vmem>>, vector<6x10x6xf32>
      %179 = arith.index_cast %172 : i32 to index
      %c3_226 = arith.constant 3 : index
      %c0_227 = arith.constant 0 : index
      %180 = vector.load %arg13[%179, %c3_226, %c0_227] : memref<14x14x6xf32, #tpu.memory_space<vmem>>, vector<6x10x6xf32>
      %181 = arith.index_cast %172 : i32 to index
      %c4_228 = arith.constant 4 : index
      %c0_229 = arith.constant 0 : index
      %182 = vector.load %arg13[%181, %c4_228, %c0_229] : memref<14x14x6xf32, #tpu.memory_space<vmem>>, vector<6x10x6xf32>
      %cst_230 = arith.constant 0.000000e+00 : f32
      %183 = vector.broadcast %cst_230 : f32 to vector<10x16xf32>
      %184 = vector.extract_strided_slice %174 {offsets = [0, 0, 0], sizes = [1, 10, 6], strides = [1, 1, 1]} : vector<6x10x6xf32> to vector<1x10x6xf32>
      %185 = vector.shape_cast %184 : vector<1x10x6xf32> to vector<10x6xf32>
      %c0_231 = arith.constant 0 : index
      %c0_232 = arith.constant 0 : index
      %c0_233 = arith.constant 0 : index
      %c0_234 = arith.constant 0 : index
      %186 = vector.load %arg4[%c0_231, %c0_232, %c0_233, %c0_234] : memref<5x5x6x16xf32, #tpu.memory_space<vmem>>, vector<1x1x6x16xf32>
      %187 = vector.shape_cast %186 : vector<1x1x6x16xf32> to vector<6x16xf32>
      %cst_235 = arith.constant dense<0.000000e+00> : vector<10x16xf32>
      %188 = tpu.matmul %185, %187, %cst_235 {dimension_numbers = #tpu.dot_dimension_numbers<[1], [0], [0], [1], [0, 0, 1, 1], [], []>} : vector<10x6xf32>, vector<6x16xf32>, vector<10x16xf32> -> vector<10x16xf32>
      %189 = arith.addf %183, %188 : vector<10x16xf32>
      %190 = vector.extract_strided_slice %176 {offsets = [0, 0, 0], sizes = [1, 10, 6], strides = [1, 1, 1]} : vector<6x10x6xf32> to vector<1x10x6xf32>
      %191 = vector.shape_cast %190 : vector<1x10x6xf32> to vector<10x6xf32>
      %c0_236 = arith.constant 0 : index
      %c1_237 = arith.constant 1 : index
      %c0_238 = arith.constant 0 : index
      %c0_239 = arith.constant 0 : index
      %192 = vector.load %arg4[%c0_236, %c1_237, %c0_238, %c0_239] : memref<5x5x6x16xf32, #tpu.memory_space<vmem>>, vector<1x1x6x16xf32>
      %193 = vector.shape_cast %192 : vector<1x1x6x16xf32> to vector<6x16xf32>
      %cst_240 = arith.constant dense<0.000000e+00> : vector<10x16xf32>
      %194 = tpu.matmul %191, %193, %cst_240 {dimension_numbers = #tpu.dot_dimension_numbers<[1], [0], [0], [1], [0, 0, 1, 1], [], []>} : vector<10x6xf32>, vector<6x16xf32>, vector<10x16xf32> -> vector<10x16xf32>
      %195 = arith.addf %189, %194 : vector<10x16xf32>
      %196 = vector.extract_strided_slice %178 {offsets = [0, 0, 0], sizes = [1, 10, 6], strides = [1, 1, 1]} : vector<6x10x6xf32> to vector<1x10x6xf32>
      %197 = vector.shape_cast %196 : vector<1x10x6xf32> to vector<10x6xf32>
      %c0_241 = arith.constant 0 : index
      %c2_242 = arith.constant 2 : index
      %c0_243 = arith.constant 0 : index
      %c0_244 = arith.constant 0 : index
      %198 = vector.load %arg4[%c0_241, %c2_242, %c0_243, %c0_244] : memref<5x5x6x16xf32, #tpu.memory_space<vmem>>, vector<1x1x6x16xf32>
      %199 = vector.shape_cast %198 : vector<1x1x6x16xf32> to vector<6x16xf32>
      %cst_245 = arith.constant dense<0.000000e+00> : vector<10x16xf32>
      %200 = tpu.matmul %197, %199, %cst_245 {dimension_numbers = #tpu.dot_dimension_numbers<[1], [0], [0], [1], [0, 0, 1, 1], [], []>} : vector<10x6xf32>, vector<6x16xf32>, vector<10x16xf32> -> vector<10x16xf32>
      %201 = arith.addf %195, %200 : vector<10x16xf32>
      %202 = vector.extract_strided_slice %180 {offsets = [0, 0, 0], sizes = [1, 10, 6], strides = [1, 1, 1]} : vector<6x10x6xf32> to vector<1x10x6xf32>
      %203 = vector.shape_cast %202 : vector<1x10x6xf32> to vector<10x6xf32>
      %c0_246 = arith.constant 0 : index
      %c3_247 = arith.constant 3 : index
      %c0_248 = arith.constant 0 : index
      %c0_249 = arith.constant 0 : index
      %204 = vector.load %arg4[%c0_246, %c3_247, %c0_248, %c0_249] : memref<5x5x6x16xf32, #tpu.memory_space<vmem>>, vector<1x1x6x16xf32>
      %205 = vector.shape_cast %204 : vector<1x1x6x16xf32> to vector<6x16xf32>
      %cst_250 = arith.constant dense<0.000000e+00> : vector<10x16xf32>
      %206 = tpu.matmul %203, %205, %cst_250 {dimension_numbers = #tpu.dot_dimension_numbers<[1], [0], [0], [1], [0, 0, 1, 1], [], []>} : vector<10x6xf32>, vector<6x16xf32>, vector<10x16xf32> -> vector<10x16xf32>
      %207 = arith.addf %201, %206 : vector<10x16xf32>
      %208 = vector.extract_strided_slice %182 {offsets = [0, 0, 0], sizes = [1, 10, 6], strides = [1, 1, 1]} : vector<6x10x6xf32> to vector<1x10x6xf32>
      %209 = vector.shape_cast %208 : vector<1x10x6xf32> to vector<10x6xf32>
      %c0_251 = arith.constant 0 : index
      %c4_252 = arith.constant 4 : index
      %c0_253 = arith.constant 0 : index
      %c0_254 = arith.constant 0 : index
      %210 = vector.load %arg4[%c0_251, %c4_252, %c0_253, %c0_254] : memref<5x5x6x16xf32, #tpu.memory_space<vmem>>, vector<1x1x6x16xf32>
      %211 = vector.shape_cast %210 : vector<1x1x6x16xf32> to vector<6x16xf32>
      %cst_255 = arith.constant dense<0.000000e+00> : vector<10x16xf32>
      %212 = tpu.matmul %209, %211, %cst_255 {dimension_numbers = #tpu.dot_dimension_numbers<[1], [0], [0], [1], [0, 0, 1, 1], [], []>} : vector<10x6xf32>, vector<6x16xf32>, vector<10x16xf32> -> vector<10x16xf32>
      %213 = arith.addf %207, %212 : vector<10x16xf32>
      %214 = vector.extract_strided_slice %174 {offsets = [1, 0, 0], sizes = [1, 10, 6], strides = [1, 1, 1]} : vector<6x10x6xf32> to vector<1x10x6xf32>
      %215 = vector.shape_cast %214 : vector<1x10x6xf32> to vector<10x6xf32>
      %c1_256 = arith.constant 1 : index
      %c0_257 = arith.constant 0 : index
      %c0_258 = arith.constant 0 : index
      %c0_259 = arith.constant 0 : index
      %216 = vector.load %arg4[%c1_256, %c0_257, %c0_258, %c0_259] : memref<5x5x6x16xf32, #tpu.memory_space<vmem>>, vector<1x1x6x16xf32>
      %217 = vector.shape_cast %216 : vector<1x1x6x16xf32> to vector<6x16xf32>
      %cst_260 = arith.constant dense<0.000000e+00> : vector<10x16xf32>
      %218 = tpu.matmul %215, %217, %cst_260 {dimension_numbers = #tpu.dot_dimension_numbers<[1], [0], [0], [1], [0, 0, 1, 1], [], []>} : vector<10x6xf32>, vector<6x16xf32>, vector<10x16xf32> -> vector<10x16xf32>
      %219 = arith.addf %213, %218 : vector<10x16xf32>
      %220 = vector.extract_strided_slice %176 {offsets = [1, 0, 0], sizes = [1, 10, 6], strides = [1, 1, 1]} : vector<6x10x6xf32> to vector<1x10x6xf32>
      %221 = vector.shape_cast %220 : vector<1x10x6xf32> to vector<10x6xf32>
      %c1_261 = arith.constant 1 : index
      %c1_262 = arith.constant 1 : index
      %c0_263 = arith.constant 0 : index
      %c0_264 = arith.constant 0 : index
      %222 = vector.load %arg4[%c1_261, %c1_262, %c0_263, %c0_264] : memref<5x5x6x16xf32, #tpu.memory_space<vmem>>, vector<1x1x6x16xf32>
      %223 = vector.shape_cast %222 : vector<1x1x6x16xf32> to vector<6x16xf32>
      %cst_265 = arith.constant dense<0.000000e+00> : vector<10x16xf32>
      %224 = tpu.matmul %221, %223, %cst_265 {dimension_numbers = #tpu.dot_dimension_numbers<[1], [0], [0], [1], [0, 0, 1, 1], [], []>} : vector<10x6xf32>, vector<6x16xf32>, vector<10x16xf32> -> vector<10x16xf32>
      %225 = arith.addf %219, %224 : vector<10x16xf32>
      %226 = vector.extract_strided_slice %178 {offsets = [1, 0, 0], sizes = [1, 10, 6], strides = [1, 1, 1]} : vector<6x10x6xf32> to vector<1x10x6xf32>
      %227 = vector.shape_cast %226 : vector<1x10x6xf32> to vector<10x6xf32>
      %c1_266 = arith.constant 1 : index
      %c2_267 = arith.constant 2 : index
      %c0_268 = arith.constant 0 : index
      %c0_269 = arith.constant 0 : index
      %228 = vector.load %arg4[%c1_266, %c2_267, %c0_268, %c0_269] : memref<5x5x6x16xf32, #tpu.memory_space<vmem>>, vector<1x1x6x16xf32>
      %229 = vector.shape_cast %228 : vector<1x1x6x16xf32> to vector<6x16xf32>
      %cst_270 = arith.constant dense<0.000000e+00> : vector<10x16xf32>
      %230 = tpu.matmul %227, %229, %cst_270 {dimension_numbers = #tpu.dot_dimension_numbers<[1], [0], [0], [1], [0, 0, 1, 1], [], []>} : vector<10x6xf32>, vector<6x16xf32>, vector<10x16xf32> -> vector<10x16xf32>
      %231 = arith.addf %225, %230 : vector<10x16xf32>
      %232 = vector.extract_strided_slice %180 {offsets = [1, 0, 0], sizes = [1, 10, 6], strides = [1, 1, 1]} : vector<6x10x6xf32> to vector<1x10x6xf32>
      %233 = vector.shape_cast %232 : vector<1x10x6xf32> to vector<10x6xf32>
      %c1_271 = arith.constant 1 : index
      %c3_272 = arith.constant 3 : index
      %c0_273 = arith.constant 0 : index
      %c0_274 = arith.constant 0 : index
      %234 = vector.load %arg4[%c1_271, %c3_272, %c0_273, %c0_274] : memref<5x5x6x16xf32, #tpu.memory_space<vmem>>, vector<1x1x6x16xf32>
      %235 = vector.shape_cast %234 : vector<1x1x6x16xf32> to vector<6x16xf32>
      %cst_275 = arith.constant dense<0.000000e+00> : vector<10x16xf32>
      %236 = tpu.matmul %233, %235, %cst_275 {dimension_numbers = #tpu.dot_dimension_numbers<[1], [0], [0], [1], [0, 0, 1, 1], [], []>} : vector<10x6xf32>, vector<6x16xf32>, vector<10x16xf32> -> vector<10x16xf32>
      %237 = arith.addf %231, %236 : vector<10x16xf32>
      %238 = vector.extract_strided_slice %182 {offsets = [1, 0, 0], sizes = [1, 10, 6], strides = [1, 1, 1]} : vector<6x10x6xf32> to vector<1x10x6xf32>
      %239 = vector.shape_cast %238 : vector<1x10x6xf32> to vector<10x6xf32>
      %c1_276 = arith.constant 1 : index
      %c4_277 = arith.constant 4 : index
      %c0_278 = arith.constant 0 : index
      %c0_279 = arith.constant 0 : index
      %240 = vector.load %arg4[%c1_276, %c4_277, %c0_278, %c0_279] : memref<5x5x6x16xf32, #tpu.memory_space<vmem>>, vector<1x1x6x16xf32>
      %241 = vector.shape_cast %240 : vector<1x1x6x16xf32> to vector<6x16xf32>
      %cst_280 = arith.constant dense<0.000000e+00> : vector<10x16xf32>
      %242 = tpu.matmul %239, %241, %cst_280 {dimension_numbers = #tpu.dot_dimension_numbers<[1], [0], [0], [1], [0, 0, 1, 1], [], []>} : vector<10x6xf32>, vector<6x16xf32>, vector<10x16xf32> -> vector<10x16xf32>
      %243 = arith.addf %237, %242 : vector<10x16xf32>
      %244 = vector.extract_strided_slice %174 {offsets = [2, 0, 0], sizes = [1, 10, 6], strides = [1, 1, 1]} : vector<6x10x6xf32> to vector<1x10x6xf32>
      %245 = vector.shape_cast %244 : vector<1x10x6xf32> to vector<10x6xf32>
      %c2_281 = arith.constant 2 : index
      %c0_282 = arith.constant 0 : index
      %c0_283 = arith.constant 0 : index
      %c0_284 = arith.constant 0 : index
      %246 = vector.load %arg4[%c2_281, %c0_282, %c0_283, %c0_284] : memref<5x5x6x16xf32, #tpu.memory_space<vmem>>, vector<1x1x6x16xf32>
      %247 = vector.shape_cast %246 : vector<1x1x6x16xf32> to vector<6x16xf32>
      %cst_285 = arith.constant dense<0.000000e+00> : vector<10x16xf32>
      %248 = tpu.matmul %245, %247, %cst_285 {dimension_numbers = #tpu.dot_dimension_numbers<[1], [0], [0], [1], [0, 0, 1, 1], [], []>} : vector<10x6xf32>, vector<6x16xf32>, vector<10x16xf32> -> vector<10x16xf32>
      %249 = arith.addf %243, %248 : vector<10x16xf32>
      %250 = vector.extract_strided_slice %176 {offsets = [2, 0, 0], sizes = [1, 10, 6], strides = [1, 1, 1]} : vector<6x10x6xf32> to vector<1x10x6xf32>
      %251 = vector.shape_cast %250 : vector<1x10x6xf32> to vector<10x6xf32>
      %c2_286 = arith.constant 2 : index
      %c1_287 = arith.constant 1 : index
      %c0_288 = arith.constant 0 : index
      %c0_289 = arith.constant 0 : index
      %252 = vector.load %arg4[%c2_286, %c1_287, %c0_288, %c0_289] : memref<5x5x6x16xf32, #tpu.memory_space<vmem>>, vector<1x1x6x16xf32>
      %253 = vector.shape_cast %252 : vector<1x1x6x16xf32> to vector<6x16xf32>
      %cst_290 = arith.constant dense<0.000000e+00> : vector<10x16xf32>
      %254 = tpu.matmul %251, %253, %cst_290 {dimension_numbers = #tpu.dot_dimension_numbers<[1], [0], [0], [1], [0, 0, 1, 1], [], []>} : vector<10x6xf32>, vector<6x16xf32>, vector<10x16xf32> -> vector<10x16xf32>
      %255 = arith.addf %249, %254 : vector<10x16xf32>
      %256 = vector.extract_strided_slice %178 {offsets = [2, 0, 0], sizes = [1, 10, 6], strides = [1, 1, 1]} : vector<6x10x6xf32> to vector<1x10x6xf32>
      %257 = vector.shape_cast %256 : vector<1x10x6xf32> to vector<10x6xf32>
      %c2_291 = arith.constant 2 : index
      %c2_292 = arith.constant 2 : index
      %c0_293 = arith.constant 0 : index
      %c0_294 = arith.constant 0 : index
      %258 = vector.load %arg4[%c2_291, %c2_292, %c0_293, %c0_294] : memref<5x5x6x16xf32, #tpu.memory_space<vmem>>, vector<1x1x6x16xf32>
      %259 = vector.shape_cast %258 : vector<1x1x6x16xf32> to vector<6x16xf32>
      %cst_295 = arith.constant dense<0.000000e+00> : vector<10x16xf32>
      %260 = tpu.matmul %257, %259, %cst_295 {dimension_numbers = #tpu.dot_dimension_numbers<[1], [0], [0], [1], [0, 0, 1, 1], [], []>} : vector<10x6xf32>, vector<6x16xf32>, vector<10x16xf32> -> vector<10x16xf32>
      %261 = arith.addf %255, %260 : vector<10x16xf32>
      %262 = vector.extract_strided_slice %180 {offsets = [2, 0, 0], sizes = [1, 10, 6], strides = [1, 1, 1]} : vector<6x10x6xf32> to vector<1x10x6xf32>
      %263 = vector.shape_cast %262 : vector<1x10x6xf32> to vector<10x6xf32>
      %c2_296 = arith.constant 2 : index
      %c3_297 = arith.constant 3 : index
      %c0_298 = arith.constant 0 : index
      %c0_299 = arith.constant 0 : index
      %264 = vector.load %arg4[%c2_296, %c3_297, %c0_298, %c0_299] : memref<5x5x6x16xf32, #tpu.memory_space<vmem>>, vector<1x1x6x16xf32>
      %265 = vector.shape_cast %264 : vector<1x1x6x16xf32> to vector<6x16xf32>
      %cst_300 = arith.constant dense<0.000000e+00> : vector<10x16xf32>
      %266 = tpu.matmul %263, %265, %cst_300 {dimension_numbers = #tpu.dot_dimension_numbers<[1], [0], [0], [1], [0, 0, 1, 1], [], []>} : vector<10x6xf32>, vector<6x16xf32>, vector<10x16xf32> -> vector<10x16xf32>
      %267 = arith.addf %261, %266 : vector<10x16xf32>
      %268 = vector.extract_strided_slice %182 {offsets = [2, 0, 0], sizes = [1, 10, 6], strides = [1, 1, 1]} : vector<6x10x6xf32> to vector<1x10x6xf32>
      %269 = vector.shape_cast %268 : vector<1x10x6xf32> to vector<10x6xf32>
      %c2_301 = arith.constant 2 : index
      %c4_302 = arith.constant 4 : index
      %c0_303 = arith.constant 0 : index
      %c0_304 = arith.constant 0 : index
      %270 = vector.load %arg4[%c2_301, %c4_302, %c0_303, %c0_304] : memref<5x5x6x16xf32, #tpu.memory_space<vmem>>, vector<1x1x6x16xf32>
      %271 = vector.shape_cast %270 : vector<1x1x6x16xf32> to vector<6x16xf32>
      %cst_305 = arith.constant dense<0.000000e+00> : vector<10x16xf32>
      %272 = tpu.matmul %269, %271, %cst_305 {dimension_numbers = #tpu.dot_dimension_numbers<[1], [0], [0], [1], [0, 0, 1, 1], [], []>} : vector<10x6xf32>, vector<6x16xf32>, vector<10x16xf32> -> vector<10x16xf32>
      %273 = arith.addf %267, %272 : vector<10x16xf32>
      %274 = vector.extract_strided_slice %174 {offsets = [3, 0, 0], sizes = [1, 10, 6], strides = [1, 1, 1]} : vector<6x10x6xf32> to vector<1x10x6xf32>
      %275 = vector.shape_cast %274 : vector<1x10x6xf32> to vector<10x6xf32>
      %c3_306 = arith.constant 3 : index
      %c0_307 = arith.constant 0 : index
      %c0_308 = arith.constant 0 : index
      %c0_309 = arith.constant 0 : index
      %276 = vector.load %arg4[%c3_306, %c0_307, %c0_308, %c0_309] : memref<5x5x6x16xf32, #tpu.memory_space<vmem>>, vector<1x1x6x16xf32>
      %277 = vector.shape_cast %276 : vector<1x1x6x16xf32> to vector<6x16xf32>
      %cst_310 = arith.constant dense<0.000000e+00> : vector<10x16xf32>
      %278 = tpu.matmul %275, %277, %cst_310 {dimension_numbers = #tpu.dot_dimension_numbers<[1], [0], [0], [1], [0, 0, 1, 1], [], []>} : vector<10x6xf32>, vector<6x16xf32>, vector<10x16xf32> -> vector<10x16xf32>
      %279 = arith.addf %273, %278 : vector<10x16xf32>
      %280 = vector.extract_strided_slice %176 {offsets = [3, 0, 0], sizes = [1, 10, 6], strides = [1, 1, 1]} : vector<6x10x6xf32> to vector<1x10x6xf32>
      %281 = vector.shape_cast %280 : vector<1x10x6xf32> to vector<10x6xf32>
      %c3_311 = arith.constant 3 : index
      %c1_312 = arith.constant 1 : index
      %c0_313 = arith.constant 0 : index
      %c0_314 = arith.constant 0 : index
      %282 = vector.load %arg4[%c3_311, %c1_312, %c0_313, %c0_314] : memref<5x5x6x16xf32, #tpu.memory_space<vmem>>, vector<1x1x6x16xf32>
      %283 = vector.shape_cast %282 : vector<1x1x6x16xf32> to vector<6x16xf32>
      %cst_315 = arith.constant dense<0.000000e+00> : vector<10x16xf32>
      %284 = tpu.matmul %281, %283, %cst_315 {dimension_numbers = #tpu.dot_dimension_numbers<[1], [0], [0], [1], [0, 0, 1, 1], [], []>} : vector<10x6xf32>, vector<6x16xf32>, vector<10x16xf32> -> vector<10x16xf32>
      %285 = arith.addf %279, %284 : vector<10x16xf32>
      %286 = vector.extract_strided_slice %178 {offsets = [3, 0, 0], sizes = [1, 10, 6], strides = [1, 1, 1]} : vector<6x10x6xf32> to vector<1x10x6xf32>
      %287 = vector.shape_cast %286 : vector<1x10x6xf32> to vector<10x6xf32>
      %c3_316 = arith.constant 3 : index
      %c2_317 = arith.constant 2 : index
      %c0_318 = arith.constant 0 : index
      %c0_319 = arith.constant 0 : index
      %288 = vector.load %arg4[%c3_316, %c2_317, %c0_318, %c0_319] : memref<5x5x6x16xf32, #tpu.memory_space<vmem>>, vector<1x1x6x16xf32>
      %289 = vector.shape_cast %288 : vector<1x1x6x16xf32> to vector<6x16xf32>
      %cst_320 = arith.constant dense<0.000000e+00> : vector<10x16xf32>
      %290 = tpu.matmul %287, %289, %cst_320 {dimension_numbers = #tpu.dot_dimension_numbers<[1], [0], [0], [1], [0, 0, 1, 1], [], []>} : vector<10x6xf32>, vector<6x16xf32>, vector<10x16xf32> -> vector<10x16xf32>
      %291 = arith.addf %285, %290 : vector<10x16xf32>
      %292 = vector.extract_strided_slice %180 {offsets = [3, 0, 0], sizes = [1, 10, 6], strides = [1, 1, 1]} : vector<6x10x6xf32> to vector<1x10x6xf32>
      %293 = vector.shape_cast %292 : vector<1x10x6xf32> to vector<10x6xf32>
      %c3_321 = arith.constant 3 : index
      %c3_322 = arith.constant 3 : index
      %c0_323 = arith.constant 0 : index
      %c0_324 = arith.constant 0 : index
      %294 = vector.load %arg4[%c3_321, %c3_322, %c0_323, %c0_324] : memref<5x5x6x16xf32, #tpu.memory_space<vmem>>, vector<1x1x6x16xf32>
      %295 = vector.shape_cast %294 : vector<1x1x6x16xf32> to vector<6x16xf32>
      %cst_325 = arith.constant dense<0.000000e+00> : vector<10x16xf32>
      %296 = tpu.matmul %293, %295, %cst_325 {dimension_numbers = #tpu.dot_dimension_numbers<[1], [0], [0], [1], [0, 0, 1, 1], [], []>} : vector<10x6xf32>, vector<6x16xf32>, vector<10x16xf32> -> vector<10x16xf32>
      %297 = arith.addf %291, %296 : vector<10x16xf32>
      %298 = vector.extract_strided_slice %182 {offsets = [3, 0, 0], sizes = [1, 10, 6], strides = [1, 1, 1]} : vector<6x10x6xf32> to vector<1x10x6xf32>
      %299 = vector.shape_cast %298 : vector<1x10x6xf32> to vector<10x6xf32>
      %c3_326 = arith.constant 3 : index
      %c4_327 = arith.constant 4 : index
      %c0_328 = arith.constant 0 : index
      %c0_329 = arith.constant 0 : index
      %300 = vector.load %arg4[%c3_326, %c4_327, %c0_328, %c0_329] : memref<5x5x6x16xf32, #tpu.memory_space<vmem>>, vector<1x1x6x16xf32>
      %301 = vector.shape_cast %300 : vector<1x1x6x16xf32> to vector<6x16xf32>
      %cst_330 = arith.constant dense<0.000000e+00> : vector<10x16xf32>
      %302 = tpu.matmul %299, %301, %cst_330 {dimension_numbers = #tpu.dot_dimension_numbers<[1], [0], [0], [1], [0, 0, 1, 1], [], []>} : vector<10x6xf32>, vector<6x16xf32>, vector<10x16xf32> -> vector<10x16xf32>
      %303 = arith.addf %297, %302 : vector<10x16xf32>
      %304 = vector.extract_strided_slice %174 {offsets = [4, 0, 0], sizes = [1, 10, 6], strides = [1, 1, 1]} : vector<6x10x6xf32> to vector<1x10x6xf32>
      %305 = vector.shape_cast %304 : vector<1x10x6xf32> to vector<10x6xf32>
      %c4_331 = arith.constant 4 : index
      %c0_332 = arith.constant 0 : index
      %c0_333 = arith.constant 0 : index
      %c0_334 = arith.constant 0 : index
      %306 = vector.load %arg4[%c4_331, %c0_332, %c0_333, %c0_334] : memref<5x5x6x16xf32, #tpu.memory_space<vmem>>, vector<1x1x6x16xf32>
      %307 = vector.shape_cast %306 : vector<1x1x6x16xf32> to vector<6x16xf32>
      %cst_335 = arith.constant dense<0.000000e+00> : vector<10x16xf32>
      %308 = tpu.matmul %305, %307, %cst_335 {dimension_numbers = #tpu.dot_dimension_numbers<[1], [0], [0], [1], [0, 0, 1, 1], [], []>} : vector<10x6xf32>, vector<6x16xf32>, vector<10x16xf32> -> vector<10x16xf32>
      %309 = arith.addf %303, %308 : vector<10x16xf32>
      %310 = vector.extract_strided_slice %176 {offsets = [4, 0, 0], sizes = [1, 10, 6], strides = [1, 1, 1]} : vector<6x10x6xf32> to vector<1x10x6xf32>
      %311 = vector.shape_cast %310 : vector<1x10x6xf32> to vector<10x6xf32>
      %c4_336 = arith.constant 4 : index
      %c1_337 = arith.constant 1 : index
      %c0_338 = arith.constant 0 : index
      %c0_339 = arith.constant 0 : index
      %312 = vector.load %arg4[%c4_336, %c1_337, %c0_338, %c0_339] : memref<5x5x6x16xf32, #tpu.memory_space<vmem>>, vector<1x1x6x16xf32>
      %313 = vector.shape_cast %312 : vector<1x1x6x16xf32> to vector<6x16xf32>
      %cst_340 = arith.constant dense<0.000000e+00> : vector<10x16xf32>
      %314 = tpu.matmul %311, %313, %cst_340 {dimension_numbers = #tpu.dot_dimension_numbers<[1], [0], [0], [1], [0, 0, 1, 1], [], []>} : vector<10x6xf32>, vector<6x16xf32>, vector<10x16xf32> -> vector<10x16xf32>
      %315 = arith.addf %309, %314 : vector<10x16xf32>
      %316 = vector.extract_strided_slice %178 {offsets = [4, 0, 0], sizes = [1, 10, 6], strides = [1, 1, 1]} : vector<6x10x6xf32> to vector<1x10x6xf32>
      %317 = vector.shape_cast %316 : vector<1x10x6xf32> to vector<10x6xf32>
      %c4_341 = arith.constant 4 : index
      %c2_342 = arith.constant 2 : index
      %c0_343 = arith.constant 0 : index
      %c0_344 = arith.constant 0 : index
      %318 = vector.load %arg4[%c4_341, %c2_342, %c0_343, %c0_344] : memref<5x5x6x16xf32, #tpu.memory_space<vmem>>, vector<1x1x6x16xf32>
      %319 = vector.shape_cast %318 : vector<1x1x6x16xf32> to vector<6x16xf32>
      %cst_345 = arith.constant dense<0.000000e+00> : vector<10x16xf32>
      %320 = tpu.matmul %317, %319, %cst_345 {dimension_numbers = #tpu.dot_dimension_numbers<[1], [0], [0], [1], [0, 0, 1, 1], [], []>} : vector<10x6xf32>, vector<6x16xf32>, vector<10x16xf32> -> vector<10x16xf32>
      %321 = arith.addf %315, %320 : vector<10x16xf32>
      %322 = vector.extract_strided_slice %180 {offsets = [4, 0, 0], sizes = [1, 10, 6], strides = [1, 1, 1]} : vector<6x10x6xf32> to vector<1x10x6xf32>
      %323 = vector.shape_cast %322 : vector<1x10x6xf32> to vector<10x6xf32>
      %c4_346 = arith.constant 4 : index
      %c3_347 = arith.constant 3 : index
      %c0_348 = arith.constant 0 : index
      %c0_349 = arith.constant 0 : index
      %324 = vector.load %arg4[%c4_346, %c3_347, %c0_348, %c0_349] : memref<5x5x6x16xf32, #tpu.memory_space<vmem>>, vector<1x1x6x16xf32>
      %325 = vector.shape_cast %324 : vector<1x1x6x16xf32> to vector<6x16xf32>
      %cst_350 = arith.constant dense<0.000000e+00> : vector<10x16xf32>
      %326 = tpu.matmul %323, %325, %cst_350 {dimension_numbers = #tpu.dot_dimension_numbers<[1], [0], [0], [1], [0, 0, 1, 1], [], []>} : vector<10x6xf32>, vector<6x16xf32>, vector<10x16xf32> -> vector<10x16xf32>
      %327 = arith.addf %321, %326 : vector<10x16xf32>
      %328 = vector.extract_strided_slice %182 {offsets = [4, 0, 0], sizes = [1, 10, 6], strides = [1, 1, 1]} : vector<6x10x6xf32> to vector<1x10x6xf32>
      %329 = vector.shape_cast %328 : vector<1x10x6xf32> to vector<10x6xf32>
      %c4_351 = arith.constant 4 : index
      %c4_352 = arith.constant 4 : index
      %c0_353 = arith.constant 0 : index
      %c0_354 = arith.constant 0 : index
      %330 = vector.load %arg4[%c4_351, %c4_352, %c0_353, %c0_354] : memref<5x5x6x16xf32, #tpu.memory_space<vmem>>, vector<1x1x6x16xf32>
      %331 = vector.shape_cast %330 : vector<1x1x6x16xf32> to vector<6x16xf32>
      %cst_355 = arith.constant dense<0.000000e+00> : vector<10x16xf32>
      %332 = tpu.matmul %329, %331, %cst_355 {dimension_numbers = #tpu.dot_dimension_numbers<[1], [0], [0], [1], [0, 0, 1, 1], [], []>} : vector<10x6xf32>, vector<6x16xf32>, vector<10x16xf32> -> vector<10x16xf32>
      %333 = arith.addf %327, %332 : vector<10x16xf32>
      %cst_356 = arith.constant 0.000000e+00 : f32
      %334 = vector.broadcast %cst_356 : f32 to vector<10x16xf32>
      %335 = vector.extract_strided_slice %174 {offsets = [1, 0, 0], sizes = [1, 10, 6], strides = [1, 1, 1]} : vector<6x10x6xf32> to vector<1x10x6xf32>
      %336 = vector.shape_cast %335 : vector<1x10x6xf32> to vector<10x6xf32>
      %c0_357 = arith.constant 0 : index
      %c0_358 = arith.constant 0 : index
      %c0_359 = arith.constant 0 : index
      %c0_360 = arith.constant 0 : index
      %337 = vector.load %arg4[%c0_357, %c0_358, %c0_359, %c0_360] : memref<5x5x6x16xf32, #tpu.memory_space<vmem>>, vector<1x1x6x16xf32>
      %338 = vector.shape_cast %337 : vector<1x1x6x16xf32> to vector<6x16xf32>
      %cst_361 = arith.constant dense<0.000000e+00> : vector<10x16xf32>
      %339 = tpu.matmul %336, %338, %cst_361 {dimension_numbers = #tpu.dot_dimension_numbers<[1], [0], [0], [1], [0, 0, 1, 1], [], []>} : vector<10x6xf32>, vector<6x16xf32>, vector<10x16xf32> -> vector<10x16xf32>
      %340 = arith.addf %334, %339 : vector<10x16xf32>
      %341 = vector.extract_strided_slice %176 {offsets = [1, 0, 0], sizes = [1, 10, 6], strides = [1, 1, 1]} : vector<6x10x6xf32> to vector<1x10x6xf32>
      %342 = vector.shape_cast %341 : vector<1x10x6xf32> to vector<10x6xf32>
      %c0_362 = arith.constant 0 : index
      %c1_363 = arith.constant 1 : index
      %c0_364 = arith.constant 0 : index
      %c0_365 = arith.constant 0 : index
      %343 = vector.load %arg4[%c0_362, %c1_363, %c0_364, %c0_365] : memref<5x5x6x16xf32, #tpu.memory_space<vmem>>, vector<1x1x6x16xf32>
      %344 = vector.shape_cast %343 : vector<1x1x6x16xf32> to vector<6x16xf32>
      %cst_366 = arith.constant dense<0.000000e+00> : vector<10x16xf32>
      %345 = tpu.matmul %342, %344, %cst_366 {dimension_numbers = #tpu.dot_dimension_numbers<[1], [0], [0], [1], [0, 0, 1, 1], [], []>} : vector<10x6xf32>, vector<6x16xf32>, vector<10x16xf32> -> vector<10x16xf32>
      %346 = arith.addf %340, %345 : vector<10x16xf32>
      %347 = vector.extract_strided_slice %178 {offsets = [1, 0, 0], sizes = [1, 10, 6], strides = [1, 1, 1]} : vector<6x10x6xf32> to vector<1x10x6xf32>
      %348 = vector.shape_cast %347 : vector<1x10x6xf32> to vector<10x6xf32>
      %c0_367 = arith.constant 0 : index
      %c2_368 = arith.constant 2 : index
      %c0_369 = arith.constant 0 : index
      %c0_370 = arith.constant 0 : index
      %349 = vector.load %arg4[%c0_367, %c2_368, %c0_369, %c0_370] : memref<5x5x6x16xf32, #tpu.memory_space<vmem>>, vector<1x1x6x16xf32>
      %350 = vector.shape_cast %349 : vector<1x1x6x16xf32> to vector<6x16xf32>
      %cst_371 = arith.constant dense<0.000000e+00> : vector<10x16xf32>
      %351 = tpu.matmul %348, %350, %cst_371 {dimension_numbers = #tpu.dot_dimension_numbers<[1], [0], [0], [1], [0, 0, 1, 1], [], []>} : vector<10x6xf32>, vector<6x16xf32>, vector<10x16xf32> -> vector<10x16xf32>
      %352 = arith.addf %346, %351 : vector<10x16xf32>
      %353 = vector.extract_strided_slice %180 {offsets = [1, 0, 0], sizes = [1, 10, 6], strides = [1, 1, 1]} : vector<6x10x6xf32> to vector<1x10x6xf32>
      %354 = vector.shape_cast %353 : vector<1x10x6xf32> to vector<10x6xf32>
      %c0_372 = arith.constant 0 : index
      %c3_373 = arith.constant 3 : index
      %c0_374 = arith.constant 0 : index
      %c0_375 = arith.constant 0 : index
      %355 = vector.load %arg4[%c0_372, %c3_373, %c0_374, %c0_375] : memref<5x5x6x16xf32, #tpu.memory_space<vmem>>, vector<1x1x6x16xf32>
      %356 = vector.shape_cast %355 : vector<1x1x6x16xf32> to vector<6x16xf32>
      %cst_376 = arith.constant dense<0.000000e+00> : vector<10x16xf32>
      %357 = tpu.matmul %354, %356, %cst_376 {dimension_numbers = #tpu.dot_dimension_numbers<[1], [0], [0], [1], [0, 0, 1, 1], [], []>} : vector<10x6xf32>, vector<6x16xf32>, vector<10x16xf32> -> vector<10x16xf32>
      %358 = arith.addf %352, %357 : vector<10x16xf32>
      %359 = vector.extract_strided_slice %182 {offsets = [1, 0, 0], sizes = [1, 10, 6], strides = [1, 1, 1]} : vector<6x10x6xf32> to vector<1x10x6xf32>
      %360 = vector.shape_cast %359 : vector<1x10x6xf32> to vector<10x6xf32>
      %c0_377 = arith.constant 0 : index
      %c4_378 = arith.constant 4 : index
      %c0_379 = arith.constant 0 : index
      %c0_380 = arith.constant 0 : index
      %361 = vector.load %arg4[%c0_377, %c4_378, %c0_379, %c0_380] : memref<5x5x6x16xf32, #tpu.memory_space<vmem>>, vector<1x1x6x16xf32>
      %362 = vector.shape_cast %361 : vector<1x1x6x16xf32> to vector<6x16xf32>
      %cst_381 = arith.constant dense<0.000000e+00> : vector<10x16xf32>
      %363 = tpu.matmul %360, %362, %cst_381 {dimension_numbers = #tpu.dot_dimension_numbers<[1], [0], [0], [1], [0, 0, 1, 1], [], []>} : vector<10x6xf32>, vector<6x16xf32>, vector<10x16xf32> -> vector<10x16xf32>
      %364 = arith.addf %358, %363 : vector<10x16xf32>
      %365 = vector.extract_strided_slice %174 {offsets = [2, 0, 0], sizes = [1, 10, 6], strides = [1, 1, 1]} : vector<6x10x6xf32> to vector<1x10x6xf32>
      %366 = vector.shape_cast %365 : vector<1x10x6xf32> to vector<10x6xf32>
      %c1_382 = arith.constant 1 : index
      %c0_383 = arith.constant 0 : index
      %c0_384 = arith.constant 0 : index
      %c0_385 = arith.constant 0 : index
      %367 = vector.load %arg4[%c1_382, %c0_383, %c0_384, %c0_385] : memref<5x5x6x16xf32, #tpu.memory_space<vmem>>, vector<1x1x6x16xf32>
      %368 = vector.shape_cast %367 : vector<1x1x6x16xf32> to vector<6x16xf32>
      %cst_386 = arith.constant dense<0.000000e+00> : vector<10x16xf32>
      %369 = tpu.matmul %366, %368, %cst_386 {dimension_numbers = #tpu.dot_dimension_numbers<[1], [0], [0], [1], [0, 0, 1, 1], [], []>} : vector<10x6xf32>, vector<6x16xf32>, vector<10x16xf32> -> vector<10x16xf32>
      %370 = arith.addf %364, %369 : vector<10x16xf32>
      %371 = vector.extract_strided_slice %176 {offsets = [2, 0, 0], sizes = [1, 10, 6], strides = [1, 1, 1]} : vector<6x10x6xf32> to vector<1x10x6xf32>
      %372 = vector.shape_cast %371 : vector<1x10x6xf32> to vector<10x6xf32>
      %c1_387 = arith.constant 1 : index
      %c1_388 = arith.constant 1 : index
      %c0_389 = arith.constant 0 : index
      %c0_390 = arith.constant 0 : index
      %373 = vector.load %arg4[%c1_387, %c1_388, %c0_389, %c0_390] : memref<5x5x6x16xf32, #tpu.memory_space<vmem>>, vector<1x1x6x16xf32>
      %374 = vector.shape_cast %373 : vector<1x1x6x16xf32> to vector<6x16xf32>
      %cst_391 = arith.constant dense<0.000000e+00> : vector<10x16xf32>
      %375 = tpu.matmul %372, %374, %cst_391 {dimension_numbers = #tpu.dot_dimension_numbers<[1], [0], [0], [1], [0, 0, 1, 1], [], []>} : vector<10x6xf32>, vector<6x16xf32>, vector<10x16xf32> -> vector<10x16xf32>
      %376 = arith.addf %370, %375 : vector<10x16xf32>
      %377 = vector.extract_strided_slice %178 {offsets = [2, 0, 0], sizes = [1, 10, 6], strides = [1, 1, 1]} : vector<6x10x6xf32> to vector<1x10x6xf32>
      %378 = vector.shape_cast %377 : vector<1x10x6xf32> to vector<10x6xf32>
      %c1_392 = arith.constant 1 : index
      %c2_393 = arith.constant 2 : index
      %c0_394 = arith.constant 0 : index
      %c0_395 = arith.constant 0 : index
      %379 = vector.load %arg4[%c1_392, %c2_393, %c0_394, %c0_395] : memref<5x5x6x16xf32, #tpu.memory_space<vmem>>, vector<1x1x6x16xf32>
      %380 = vector.shape_cast %379 : vector<1x1x6x16xf32> to vector<6x16xf32>
      %cst_396 = arith.constant dense<0.000000e+00> : vector<10x16xf32>
      %381 = tpu.matmul %378, %380, %cst_396 {dimension_numbers = #tpu.dot_dimension_numbers<[1], [0], [0], [1], [0, 0, 1, 1], [], []>} : vector<10x6xf32>, vector<6x16xf32>, vector<10x16xf32> -> vector<10x16xf32>
      %382 = arith.addf %376, %381 : vector<10x16xf32>
      %383 = vector.extract_strided_slice %180 {offsets = [2, 0, 0], sizes = [1, 10, 6], strides = [1, 1, 1]} : vector<6x10x6xf32> to vector<1x10x6xf32>
      %384 = vector.shape_cast %383 : vector<1x10x6xf32> to vector<10x6xf32>
      %c1_397 = arith.constant 1 : index
      %c3_398 = arith.constant 3 : index
      %c0_399 = arith.constant 0 : index
      %c0_400 = arith.constant 0 : index
      %385 = vector.load %arg4[%c1_397, %c3_398, %c0_399, %c0_400] : memref<5x5x6x16xf32, #tpu.memory_space<vmem>>, vector<1x1x6x16xf32>
      %386 = vector.shape_cast %385 : vector<1x1x6x16xf32> to vector<6x16xf32>
      %cst_401 = arith.constant dense<0.000000e+00> : vector<10x16xf32>
      %387 = tpu.matmul %384, %386, %cst_401 {dimension_numbers = #tpu.dot_dimension_numbers<[1], [0], [0], [1], [0, 0, 1, 1], [], []>} : vector<10x6xf32>, vector<6x16xf32>, vector<10x16xf32> -> vector<10x16xf32>
      %388 = arith.addf %382, %387 : vector<10x16xf32>
      %389 = vector.extract_strided_slice %182 {offsets = [2, 0, 0], sizes = [1, 10, 6], strides = [1, 1, 1]} : vector<6x10x6xf32> to vector<1x10x6xf32>
      %390 = vector.shape_cast %389 : vector<1x10x6xf32> to vector<10x6xf32>
      %c1_402 = arith.constant 1 : index
      %c4_403 = arith.constant 4 : index
      %c0_404 = arith.constant 0 : index
      %c0_405 = arith.constant 0 : index
      %391 = vector.load %arg4[%c1_402, %c4_403, %c0_404, %c0_405] : memref<5x5x6x16xf32, #tpu.memory_space<vmem>>, vector<1x1x6x16xf32>
      %392 = vector.shape_cast %391 : vector<1x1x6x16xf32> to vector<6x16xf32>
      %cst_406 = arith.constant dense<0.000000e+00> : vector<10x16xf32>
      %393 = tpu.matmul %390, %392, %cst_406 {dimension_numbers = #tpu.dot_dimension_numbers<[1], [0], [0], [1], [0, 0, 1, 1], [], []>} : vector<10x6xf32>, vector<6x16xf32>, vector<10x16xf32> -> vector<10x16xf32>
      %394 = arith.addf %388, %393 : vector<10x16xf32>
      %395 = vector.extract_strided_slice %174 {offsets = [3, 0, 0], sizes = [1, 10, 6], strides = [1, 1, 1]} : vector<6x10x6xf32> to vector<1x10x6xf32>
      %396 = vector.shape_cast %395 : vector<1x10x6xf32> to vector<10x6xf32>
      %c2_407 = arith.constant 2 : index
      %c0_408 = arith.constant 0 : index
      %c0_409 = arith.constant 0 : index
      %c0_410 = arith.constant 0 : index
      %397 = vector.load %arg4[%c2_407, %c0_408, %c0_409, %c0_410] : memref<5x5x6x16xf32, #tpu.memory_space<vmem>>, vector<1x1x6x16xf32>
      %398 = vector.shape_cast %397 : vector<1x1x6x16xf32> to vector<6x16xf32>
      %cst_411 = arith.constant dense<0.000000e+00> : vector<10x16xf32>
      %399 = tpu.matmul %396, %398, %cst_411 {dimension_numbers = #tpu.dot_dimension_numbers<[1], [0], [0], [1], [0, 0, 1, 1], [], []>} : vector<10x6xf32>, vector<6x16xf32>, vector<10x16xf32> -> vector<10x16xf32>
      %400 = arith.addf %394, %399 : vector<10x16xf32>
      %401 = vector.extract_strided_slice %176 {offsets = [3, 0, 0], sizes = [1, 10, 6], strides = [1, 1, 1]} : vector<6x10x6xf32> to vector<1x10x6xf32>
      %402 = vector.shape_cast %401 : vector<1x10x6xf32> to vector<10x6xf32>
      %c2_412 = arith.constant 2 : index
      %c1_413 = arith.constant 1 : index
      %c0_414 = arith.constant 0 : index
      %c0_415 = arith.constant 0 : index
      %403 = vector.load %arg4[%c2_412, %c1_413, %c0_414, %c0_415] : memref<5x5x6x16xf32, #tpu.memory_space<vmem>>, vector<1x1x6x16xf32>
      %404 = vector.shape_cast %403 : vector<1x1x6x16xf32> to vector<6x16xf32>
      %cst_416 = arith.constant dense<0.000000e+00> : vector<10x16xf32>
      %405 = tpu.matmul %402, %404, %cst_416 {dimension_numbers = #tpu.dot_dimension_numbers<[1], [0], [0], [1], [0, 0, 1, 1], [], []>} : vector<10x6xf32>, vector<6x16xf32>, vector<10x16xf32> -> vector<10x16xf32>
      %406 = arith.addf %400, %405 : vector<10x16xf32>
      %407 = vector.extract_strided_slice %178 {offsets = [3, 0, 0], sizes = [1, 10, 6], strides = [1, 1, 1]} : vector<6x10x6xf32> to vector<1x10x6xf32>
      %408 = vector.shape_cast %407 : vector<1x10x6xf32> to vector<10x6xf32>
      %c2_417 = arith.constant 2 : index
      %c2_418 = arith.constant 2 : index
      %c0_419 = arith.constant 0 : index
      %c0_420 = arith.constant 0 : index
      %409 = vector.load %arg4[%c2_417, %c2_418, %c0_419, %c0_420] : memref<5x5x6x16xf32, #tpu.memory_space<vmem>>, vector<1x1x6x16xf32>
      %410 = vector.shape_cast %409 : vector<1x1x6x16xf32> to vector<6x16xf32>
      %cst_421 = arith.constant dense<0.000000e+00> : vector<10x16xf32>
      %411 = tpu.matmul %408, %410, %cst_421 {dimension_numbers = #tpu.dot_dimension_numbers<[1], [0], [0], [1], [0, 0, 1, 1], [], []>} : vector<10x6xf32>, vector<6x16xf32>, vector<10x16xf32> -> vector<10x16xf32>
      %412 = arith.addf %406, %411 : vector<10x16xf32>
      %413 = vector.extract_strided_slice %180 {offsets = [3, 0, 0], sizes = [1, 10, 6], strides = [1, 1, 1]} : vector<6x10x6xf32> to vector<1x10x6xf32>
      %414 = vector.shape_cast %413 : vector<1x10x6xf32> to vector<10x6xf32>
      %c2_422 = arith.constant 2 : index
      %c3_423 = arith.constant 3 : index
      %c0_424 = arith.constant 0 : index
      %c0_425 = arith.constant 0 : index
      %415 = vector.load %arg4[%c2_422, %c3_423, %c0_424, %c0_425] : memref<5x5x6x16xf32, #tpu.memory_space<vmem>>, vector<1x1x6x16xf32>
      %416 = vector.shape_cast %415 : vector<1x1x6x16xf32> to vector<6x16xf32>
      %cst_426 = arith.constant dense<0.000000e+00> : vector<10x16xf32>
      %417 = tpu.matmul %414, %416, %cst_426 {dimension_numbers = #tpu.dot_dimension_numbers<[1], [0], [0], [1], [0, 0, 1, 1], [], []>} : vector<10x6xf32>, vector<6x16xf32>, vector<10x16xf32> -> vector<10x16xf32>
      %418 = arith.addf %412, %417 : vector<10x16xf32>
      %419 = vector.extract_strided_slice %182 {offsets = [3, 0, 0], sizes = [1, 10, 6], strides = [1, 1, 1]} : vector<6x10x6xf32> to vector<1x10x6xf32>
      %420 = vector.shape_cast %419 : vector<1x10x6xf32> to vector<10x6xf32>
      %c2_427 = arith.constant 2 : index
      %c4_428 = arith.constant 4 : index
      %c0_429 = arith.constant 0 : index
      %c0_430 = arith.constant 0 : index
      %421 = vector.load %arg4[%c2_427, %c4_428, %c0_429, %c0_430] : memref<5x5x6x16xf32, #tpu.memory_space<vmem>>, vector<1x1x6x16xf32>
      %422 = vector.shape_cast %421 : vector<1x1x6x16xf32> to vector<6x16xf32>
      %cst_431 = arith.constant dense<0.000000e+00> : vector<10x16xf32>
      %423 = tpu.matmul %420, %422, %cst_431 {dimension_numbers = #tpu.dot_dimension_numbers<[1], [0], [0], [1], [0, 0, 1, 1], [], []>} : vector<10x6xf32>, vector<6x16xf32>, vector<10x16xf32> -> vector<10x16xf32>
      %424 = arith.addf %418, %423 : vector<10x16xf32>
      %425 = vector.extract_strided_slice %174 {offsets = [4, 0, 0], sizes = [1, 10, 6], strides = [1, 1, 1]} : vector<6x10x6xf32> to vector<1x10x6xf32>
      %426 = vector.shape_cast %425 : vector<1x10x6xf32> to vector<10x6xf32>
      %c3_432 = arith.constant 3 : index
      %c0_433 = arith.constant 0 : index
      %c0_434 = arith.constant 0 : index
      %c0_435 = arith.constant 0 : index
      %427 = vector.load %arg4[%c3_432, %c0_433, %c0_434, %c0_435] : memref<5x5x6x16xf32, #tpu.memory_space<vmem>>, vector<1x1x6x16xf32>
      %428 = vector.shape_cast %427 : vector<1x1x6x16xf32> to vector<6x16xf32>
      %cst_436 = arith.constant dense<0.000000e+00> : vector<10x16xf32>
      %429 = tpu.matmul %426, %428, %cst_436 {dimension_numbers = #tpu.dot_dimension_numbers<[1], [0], [0], [1], [0, 0, 1, 1], [], []>} : vector<10x6xf32>, vector<6x16xf32>, vector<10x16xf32> -> vector<10x16xf32>
      %430 = arith.addf %424, %429 : vector<10x16xf32>
      %431 = vector.extract_strided_slice %176 {offsets = [4, 0, 0], sizes = [1, 10, 6], strides = [1, 1, 1]} : vector<6x10x6xf32> to vector<1x10x6xf32>
      %432 = vector.shape_cast %431 : vector<1x10x6xf32> to vector<10x6xf32>
      %c3_437 = arith.constant 3 : index
      %c1_438 = arith.constant 1 : index
      %c0_439 = arith.constant 0 : index
      %c0_440 = arith.constant 0 : index
      %433 = vector.load %arg4[%c3_437, %c1_438, %c0_439, %c0_440] : memref<5x5x6x16xf32, #tpu.memory_space<vmem>>, vector<1x1x6x16xf32>
      %434 = vector.shape_cast %433 : vector<1x1x6x16xf32> to vector<6x16xf32>
      %cst_441 = arith.constant dense<0.000000e+00> : vector<10x16xf32>
      %435 = tpu.matmul %432, %434, %cst_441 {dimension_numbers = #tpu.dot_dimension_numbers<[1], [0], [0], [1], [0, 0, 1, 1], [], []>} : vector<10x6xf32>, vector<6x16xf32>, vector<10x16xf32> -> vector<10x16xf32>
      %436 = arith.addf %430, %435 : vector<10x16xf32>
      %437 = vector.extract_strided_slice %178 {offsets = [4, 0, 0], sizes = [1, 10, 6], strides = [1, 1, 1]} : vector<6x10x6xf32> to vector<1x10x6xf32>
      %438 = vector.shape_cast %437 : vector<1x10x6xf32> to vector<10x6xf32>
      %c3_442 = arith.constant 3 : index
      %c2_443 = arith.constant 2 : index
      %c0_444 = arith.constant 0 : index
      %c0_445 = arith.constant 0 : index
      %439 = vector.load %arg4[%c3_442, %c2_443, %c0_444, %c0_445] : memref<5x5x6x16xf32, #tpu.memory_space<vmem>>, vector<1x1x6x16xf32>
      %440 = vector.shape_cast %439 : vector<1x1x6x16xf32> to vector<6x16xf32>
      %cst_446 = arith.constant dense<0.000000e+00> : vector<10x16xf32>
      %441 = tpu.matmul %438, %440, %cst_446 {dimension_numbers = #tpu.dot_dimension_numbers<[1], [0], [0], [1], [0, 0, 1, 1], [], []>} : vector<10x6xf32>, vector<6x16xf32>, vector<10x16xf32> -> vector<10x16xf32>
      %442 = arith.addf %436, %441 : vector<10x16xf32>
      %443 = vector.extract_strided_slice %180 {offsets = [4, 0, 0], sizes = [1, 10, 6], strides = [1, 1, 1]} : vector<6x10x6xf32> to vector<1x10x6xf32>
      %444 = vector.shape_cast %443 : vector<1x10x6xf32> to vector<10x6xf32>
      %c3_447 = arith.constant 3 : index
      %c3_448 = arith.constant 3 : index
      %c0_449 = arith.constant 0 : index
      %c0_450 = arith.constant 0 : index
      %445 = vector.load %arg4[%c3_447, %c3_448, %c0_449, %c0_450] : memref<5x5x6x16xf32, #tpu.memory_space<vmem>>, vector<1x1x6x16xf32>
      %446 = vector.shape_cast %445 : vector<1x1x6x16xf32> to vector<6x16xf32>
      %cst_451 = arith.constant dense<0.000000e+00> : vector<10x16xf32>
      %447 = tpu.matmul %444, %446, %cst_451 {dimension_numbers = #tpu.dot_dimension_numbers<[1], [0], [0], [1], [0, 0, 1, 1], [], []>} : vector<10x6xf32>, vector<6x16xf32>, vector<10x16xf32> -> vector<10x16xf32>
      %448 = arith.addf %442, %447 : vector<10x16xf32>
      %449 = vector.extract_strided_slice %182 {offsets = [4, 0, 0], sizes = [1, 10, 6], strides = [1, 1, 1]} : vector<6x10x6xf32> to vector<1x10x6xf32>
      %450 = vector.shape_cast %449 : vector<1x10x6xf32> to vector<10x6xf32>
      %c3_452 = arith.constant 3 : index
      %c4_453 = arith.constant 4 : index
      %c0_454 = arith.constant 0 : index
      %c0_455 = arith.constant 0 : index
      %451 = vector.load %arg4[%c3_452, %c4_453, %c0_454, %c0_455] : memref<5x5x6x16xf32, #tpu.memory_space<vmem>>, vector<1x1x6x16xf32>
      %452 = vector.shape_cast %451 : vector<1x1x6x16xf32> to vector<6x16xf32>
      %cst_456 = arith.constant dense<0.000000e+00> : vector<10x16xf32>
      %453 = tpu.matmul %450, %452, %cst_456 {dimension_numbers = #tpu.dot_dimension_numbers<[1], [0], [0], [1], [0, 0, 1, 1], [], []>} : vector<10x6xf32>, vector<6x16xf32>, vector<10x16xf32> -> vector<10x16xf32>
      %454 = arith.addf %448, %453 : vector<10x16xf32>
      %455 = vector.extract_strided_slice %174 {offsets = [5, 0, 0], sizes = [1, 10, 6], strides = [1, 1, 1]} : vector<6x10x6xf32> to vector<1x10x6xf32>
      %456 = vector.shape_cast %455 : vector<1x10x6xf32> to vector<10x6xf32>
      %c4_457 = arith.constant 4 : index
      %c0_458 = arith.constant 0 : index
      %c0_459 = arith.constant 0 : index
      %c0_460 = arith.constant 0 : index
      %457 = vector.load %arg4[%c4_457, %c0_458, %c0_459, %c0_460] : memref<5x5x6x16xf32, #tpu.memory_space<vmem>>, vector<1x1x6x16xf32>
      %458 = vector.shape_cast %457 : vector<1x1x6x16xf32> to vector<6x16xf32>
      %cst_461 = arith.constant dense<0.000000e+00> : vector<10x16xf32>
      %459 = tpu.matmul %456, %458, %cst_461 {dimension_numbers = #tpu.dot_dimension_numbers<[1], [0], [0], [1], [0, 0, 1, 1], [], []>} : vector<10x6xf32>, vector<6x16xf32>, vector<10x16xf32> -> vector<10x16xf32>
      %460 = arith.addf %454, %459 : vector<10x16xf32>
      %461 = vector.extract_strided_slice %176 {offsets = [5, 0, 0], sizes = [1, 10, 6], strides = [1, 1, 1]} : vector<6x10x6xf32> to vector<1x10x6xf32>
      %462 = vector.shape_cast %461 : vector<1x10x6xf32> to vector<10x6xf32>
      %c4_462 = arith.constant 4 : index
      %c1_463 = arith.constant 1 : index
      %c0_464 = arith.constant 0 : index
      %c0_465 = arith.constant 0 : index
      %463 = vector.load %arg4[%c4_462, %c1_463, %c0_464, %c0_465] : memref<5x5x6x16xf32, #tpu.memory_space<vmem>>, vector<1x1x6x16xf32>
      %464 = vector.shape_cast %463 : vector<1x1x6x16xf32> to vector<6x16xf32>
      %cst_466 = arith.constant dense<0.000000e+00> : vector<10x16xf32>
      %465 = tpu.matmul %462, %464, %cst_466 {dimension_numbers = #tpu.dot_dimension_numbers<[1], [0], [0], [1], [0, 0, 1, 1], [], []>} : vector<10x6xf32>, vector<6x16xf32>, vector<10x16xf32> -> vector<10x16xf32>
      %466 = arith.addf %460, %465 : vector<10x16xf32>
      %467 = vector.extract_strided_slice %178 {offsets = [5, 0, 0], sizes = [1, 10, 6], strides = [1, 1, 1]} : vector<6x10x6xf32> to vector<1x10x6xf32>
      %468 = vector.shape_cast %467 : vector<1x10x6xf32> to vector<10x6xf32>
      %c4_467 = arith.constant 4 : index
      %c2_468 = arith.constant 2 : index
      %c0_469 = arith.constant 0 : index
      %c0_470 = arith.constant 0 : index
      %469 = vector.load %arg4[%c4_467, %c2_468, %c0_469, %c0_470] : memref<5x5x6x16xf32, #tpu.memory_space<vmem>>, vector<1x1x6x16xf32>
      %470 = vector.shape_cast %469 : vector<1x1x6x16xf32> to vector<6x16xf32>
      %cst_471 = arith.constant dense<0.000000e+00> : vector<10x16xf32>
      %471 = tpu.matmul %468, %470, %cst_471 {dimension_numbers = #tpu.dot_dimension_numbers<[1], [0], [0], [1], [0, 0, 1, 1], [], []>} : vector<10x6xf32>, vector<6x16xf32>, vector<10x16xf32> -> vector<10x16xf32>
      %472 = arith.addf %466, %471 : vector<10x16xf32>
      %473 = vector.extract_strided_slice %180 {offsets = [5, 0, 0], sizes = [1, 10, 6], strides = [1, 1, 1]} : vector<6x10x6xf32> to vector<1x10x6xf32>
      %474 = vector.shape_cast %473 : vector<1x10x6xf32> to vector<10x6xf32>
      %c4_472 = arith.constant 4 : index
      %c3_473 = arith.constant 3 : index
      %c0_474 = arith.constant 0 : index
      %c0_475 = arith.constant 0 : index
      %475 = vector.load %arg4[%c4_472, %c3_473, %c0_474, %c0_475] : memref<5x5x6x16xf32, #tpu.memory_space<vmem>>, vector<1x1x6x16xf32>
      %476 = vector.shape_cast %475 : vector<1x1x6x16xf32> to vector<6x16xf32>
      %cst_476 = arith.constant dense<0.000000e+00> : vector<10x16xf32>
      %477 = tpu.matmul %474, %476, %cst_476 {dimension_numbers = #tpu.dot_dimension_numbers<[1], [0], [0], [1], [0, 0, 1, 1], [], []>} : vector<10x6xf32>, vector<6x16xf32>, vector<10x16xf32> -> vector<10x16xf32>
      %478 = arith.addf %472, %477 : vector<10x16xf32>
      %479 = vector.extract_strided_slice %182 {offsets = [5, 0, 0], sizes = [1, 10, 6], strides = [1, 1, 1]} : vector<6x10x6xf32> to vector<1x10x6xf32>
      %480 = vector.shape_cast %479 : vector<1x10x6xf32> to vector<10x6xf32>
      %c4_477 = arith.constant 4 : index
      %c4_478 = arith.constant 4 : index
      %c0_479 = arith.constant 0 : index
      %c0_480 = arith.constant 0 : index
      %481 = vector.load %arg4[%c4_477, %c4_478, %c0_479, %c0_480] : memref<5x5x6x16xf32, #tpu.memory_space<vmem>>, vector<1x1x6x16xf32>
      %482 = vector.shape_cast %481 : vector<1x1x6x16xf32> to vector<6x16xf32>
      %cst_481 = arith.constant dense<0.000000e+00> : vector<10x16xf32>
      %483 = tpu.matmul %480, %482, %cst_481 {dimension_numbers = #tpu.dot_dimension_numbers<[1], [0], [0], [1], [0, 0, 1, 1], [], []>} : vector<10x6xf32>, vector<6x16xf32>, vector<10x16xf32> -> vector<10x16xf32>
      %484 = arith.addf %478, %483 : vector<10x16xf32>
      %485 = arith.maximumf %333, %484 : vector<10x16xf32>
      %486 = vector.broadcast %2 : vector<1x16xf32> to vector<10x16xf32>
      %487 = arith.addf %485, %486 : vector<10x16xf32>
      %c0_482 = arith.constant 0 : index
      %c0_483 = arith.constant 0 : index
      %488 = vector.load %arg16[%c0_482, %c0_483] : memref<10x16xf32, #tpu.memory_space<vmem>>, vector<10x16xf32>
      tpu.vector_store %arg16[%c0_482, %c0_483], %487 {strides = array<i32>} : memref<10x16xf32, #tpu.memory_space<vmem>>, vector<10x16xf32>,
      %c0_484 = arith.constant 0 : index
      %c0_485 = arith.constant 0 : index
      %489 = tpu.strided_load %arg16[%c0_484, %c0_485] {strides = array<i32: 2, 1>} : memref<10x16xf32, #tpu.memory_space<vmem>>, vector<5x16xf32>
      %c1_486 = arith.constant 1 : index
      %c0_487 = arith.constant 0 : index
      %490 = tpu.strided_load %arg16[%c1_486, %c0_487] {strides = array<i32: 2, 1>} : memref<10x16xf32, #tpu.memory_space<vmem>>, vector<5x16xf32>
      %491 = arith.maximumf %489, %490 : vector<5x16xf32>
      %cst_488 = arith.constant 0.000000e+00 : f32
      %492 = vector.broadcast %cst_488 : f32 to vector<5x16xf32>
      %493 = arith.maximumf %491, %492 : vector<5x16xf32>
      %494 = arith.index_cast %arg17 : i32 to index
      %c0_489 = arith.constant 0 : index
      %c0_490 = arith.constant 0 : index
      %495 = vector.load %arg14[%494, %c0_489, %c0_490] : memref<5x5x16xf32, #tpu.memory_space<vmem>>, vector<1x5x16xf32>
      %496 = vector.shape_cast %495 : vector<1x5x16xf32> to vector<5x16xf32>
      %497 = vector.shape_cast %493 : vector<5x16xf32> to vector<1x5x16xf32>
      tpu.vector_store %arg14[%494, %c0_489, %c0_490], %497 {strides = array<i32>} : memref<5x5x16xf32, #tpu.memory_space<vmem>>, vector<1x5x16xf32>,
    }
    %c5_i32_6 = arith.constant 5 : i32
    %cst = arith.constant 0.000000e+00 : f32
    %4 = vector.broadcast %cst : f32 to vector<1x120xf32>
    %c0_7 = arith.constant 0 : index
    %c0_8 = arith.constant 0 : index
    %c0_9 = arith.constant 0 : index
    %5 = vector.load %arg14[%c0_7, %c0_8, %c0_9] : memref<5x5x16xf32, #tpu.memory_space<vmem>>, vector<1x1x16xf32>
    %6 = vector.shape_cast %5 : vector<1x1x16xf32> to vector<1x16xf32>
    %c0_10 = arith.constant 0 : index
    %c0_11 = arith.constant 0 : index
    %c0_12 = arith.constant 0 : index
    %c0_13 = arith.constant 0 : index
    %7 = vector.load %arg6[%c0_10, %c0_11, %c0_12, %c0_13] : memref<5x5x16x120xf32, #tpu.memory_space<vmem>>, vector<1x1x16x120xf32>
    %8 = vector.shape_cast %7 : vector<1x1x16x120xf32> to vector<16x120xf32>
    %cst_14 = arith.constant dense<0.000000e+00> : vector<1x120xf32>
    %9 = tpu.matmul %6, %8, %cst_14 {dimension_numbers = #tpu.dot_dimension_numbers<[1], [0], [0], [1], [0, 0, 1, 1], [], []>} : vector<1x16xf32>, vector<16x120xf32>, vector<1x120xf32> -> vector<1x120xf32>
    %10 = arith.addf %4, %9 : vector<1x120xf32>
    %c0_15 = arith.constant 0 : index
    %c1 = arith.constant 1 : index
    %c0_16 = arith.constant 0 : index
    %11 = vector.load %arg14[%c0_15, %c1, %c0_16] : memref<5x5x16xf32, #tpu.memory_space<vmem>>, vector<1x1x16xf32>
    %12 = vector.shape_cast %11 : vector<1x1x16xf32> to vector<1x16xf32>
    %c0_17 = arith.constant 0 : index
    %c1_18 = arith.constant 1 : index
    %c0_19 = arith.constant 0 : index
    %c0_20 = arith.constant 0 : index
    %13 = vector.load %arg6[%c0_17, %c1_18, %c0_19, %c0_20] : memref<5x5x16x120xf32, #tpu.memory_space<vmem>>, vector<1x1x16x120xf32>
    %14 = vector.shape_cast %13 : vector<1x1x16x120xf32> to vector<16x120xf32>
    %cst_21 = arith.constant dense<0.000000e+00> : vector<1x120xf32>
    %15 = tpu.matmul %12, %14, %cst_21 {dimension_numbers = #tpu.dot_dimension_numbers<[1], [0], [0], [1], [0, 0, 1, 1], [], []>} : vector<1x16xf32>, vector<16x120xf32>, vector<1x120xf32> -> vector<1x120xf32>
    %16 = arith.addf %10, %15 : vector<1x120xf32>
    %c0_22 = arith.constant 0 : index
    %c2 = arith.constant 2 : index
    %c0_23 = arith.constant 0 : index
    %17 = vector.load %arg14[%c0_22, %c2, %c0_23] : memref<5x5x16xf32, #tpu.memory_space<vmem>>, vector<1x1x16xf32>
    %18 = vector.shape_cast %17 : vector<1x1x16xf32> to vector<1x16xf32>
    %c0_24 = arith.constant 0 : index
    %c2_25 = arith.constant 2 : index
    %c0_26 = arith.constant 0 : index
    %c0_27 = arith.constant 0 : index
    %19 = vector.load %arg6[%c0_24, %c2_25, %c0_26, %c0_27] : memref<5x5x16x120xf32, #tpu.memory_space<vmem>>, vector<1x1x16x120xf32>
    %20 = vector.shape_cast %19 : vector<1x1x16x120xf32> to vector<16x120xf32>
    %cst_28 = arith.constant dense<0.000000e+00> : vector<1x120xf32>
    %21 = tpu.matmul %18, %20, %cst_28 {dimension_numbers = #tpu.dot_dimension_numbers<[1], [0], [0], [1], [0, 0, 1, 1], [], []>} : vector<1x16xf32>, vector<16x120xf32>, vector<1x120xf32> -> vector<1x120xf32>
    %22 = arith.addf %16, %21 : vector<1x120xf32>
    %c0_29 = arith.constant 0 : index
    %c3 = arith.constant 3 : index
    %c0_30 = arith.constant 0 : index
    %23 = vector.load %arg14[%c0_29, %c3, %c0_30] : memref<5x5x16xf32, #tpu.memory_space<vmem>>, vector<1x1x16xf32>
    %24 = vector.shape_cast %23 : vector<1x1x16xf32> to vector<1x16xf32>
    %c0_31 = arith.constant 0 : index
    %c3_32 = arith.constant 3 : index
    %c0_33 = arith.constant 0 : index
    %c0_34 = arith.constant 0 : index
    %25 = vector.load %arg6[%c0_31, %c3_32, %c0_33, %c0_34] : memref<5x5x16x120xf32, #tpu.memory_space<vmem>>, vector<1x1x16x120xf32>
    %26 = vector.shape_cast %25 : vector<1x1x16x120xf32> to vector<16x120xf32>
    %cst_35 = arith.constant dense<0.000000e+00> : vector<1x120xf32>
    %27 = tpu.matmul %24, %26, %cst_35 {dimension_numbers = #tpu.dot_dimension_numbers<[1], [0], [0], [1], [0, 0, 1, 1], [], []>} : vector<1x16xf32>, vector<16x120xf32>, vector<1x120xf32> -> vector<1x120xf32>
    %28 = arith.addf %22, %27 : vector<1x120xf32>
    %c0_36 = arith.constant 0 : index
    %c4 = arith.constant 4 : index
    %c0_37 = arith.constant 0 : index
    %29 = vector.load %arg14[%c0_36, %c4, %c0_37] : memref<5x5x16xf32, #tpu.memory_space<vmem>>, vector<1x1x16xf32>
    %30 = vector.shape_cast %29 : vector<1x1x16xf32> to vector<1x16xf32>
    %c0_38 = arith.constant 0 : index
    %c4_39 = arith.constant 4 : index
    %c0_40 = arith.constant 0 : index
    %c0_41 = arith.constant 0 : index
    %31 = vector.load %arg6[%c0_38, %c4_39, %c0_40, %c0_41] : memref<5x5x16x120xf32, #tpu.memory_space<vmem>>, vector<1x1x16x120xf32>
    %32 = vector.shape_cast %31 : vector<1x1x16x120xf32> to vector<16x120xf32>
    %cst_42 = arith.constant dense<0.000000e+00> : vector<1x120xf32>
    %33 = tpu.matmul %30, %32, %cst_42 {dimension_numbers = #tpu.dot_dimension_numbers<[1], [0], [0], [1], [0, 0, 1, 1], [], []>} : vector<1x16xf32>, vector<16x120xf32>, vector<1x120xf32> -> vector<1x120xf32>
    %34 = arith.addf %28, %33 : vector<1x120xf32>
    %c1_43 = arith.constant 1 : index
    %c0_44 = arith.constant 0 : index
    %c0_45 = arith.constant 0 : index
    %35 = vector.load %arg14[%c1_43, %c0_44, %c0_45] : memref<5x5x16xf32, #tpu.memory_space<vmem>>, vector<1x1x16xf32>
    %36 = vector.shape_cast %35 : vector<1x1x16xf32> to vector<1x16xf32>
    %c1_46 = arith.constant 1 : index
    %c0_47 = arith.constant 0 : index
    %c0_48 = arith.constant 0 : index
    %c0_49 = arith.constant 0 : index
    %37 = vector.load %arg6[%c1_46, %c0_47, %c0_48, %c0_49] : memref<5x5x16x120xf32, #tpu.memory_space<vmem>>, vector<1x1x16x120xf32>
    %38 = vector.shape_cast %37 : vector<1x1x16x120xf32> to vector<16x120xf32>
    %cst_50 = arith.constant dense<0.000000e+00> : vector<1x120xf32>
    %39 = tpu.matmul %36, %38, %cst_50 {dimension_numbers = #tpu.dot_dimension_numbers<[1], [0], [0], [1], [0, 0, 1, 1], [], []>} : vector<1x16xf32>, vector<16x120xf32>, vector<1x120xf32> -> vector<1x120xf32>
    %40 = arith.addf %34, %39 : vector<1x120xf32>
    %c1_51 = arith.constant 1 : index
    %c1_52 = arith.constant 1 : index
    %c0_53 = arith.constant 0 : index
    %41 = vector.load %arg14[%c1_51, %c1_52, %c0_53] : memref<5x5x16xf32, #tpu.memory_space<vmem>>, vector<1x1x16xf32>
    %42 = vector.shape_cast %41 : vector<1x1x16xf32> to vector<1x16xf32>
    %c1_54 = arith.constant 1 : index
    %c1_55 = arith.constant 1 : index
    %c0_56 = arith.constant 0 : index
    %c0_57 = arith.constant 0 : index
    %43 = vector.load %arg6[%c1_54, %c1_55, %c0_56, %c0_57] : memref<5x5x16x120xf32, #tpu.memory_space<vmem>>, vector<1x1x16x120xf32>
    %44 = vector.shape_cast %43 : vector<1x1x16x120xf32> to vector<16x120xf32>
    %cst_58 = arith.constant dense<0.000000e+00> : vector<1x120xf32>
    %45 = tpu.matmul %42, %44, %cst_58 {dimension_numbers = #tpu.dot_dimension_numbers<[1], [0], [0], [1], [0, 0, 1, 1], [], []>} : vector<1x16xf32>, vector<16x120xf32>, vector<1x120xf32> -> vector<1x120xf32>
    %46 = arith.addf %40, %45 : vector<1x120xf32>
    %c1_59 = arith.constant 1 : index
    %c2_60 = arith.constant 2 : index
    %c0_61 = arith.constant 0 : index
    %47 = vector.load %arg14[%c1_59, %c2_60, %c0_61] : memref<5x5x16xf32, #tpu.memory_space<vmem>>, vector<1x1x16xf32>
    %48 = vector.shape_cast %47 : vector<1x1x16xf32> to vector<1x16xf32>
    %c1_62 = arith.constant 1 : index
    %c2_63 = arith.constant 2 : index
    %c0_64 = arith.constant 0 : index
    %c0_65 = arith.constant 0 : index
    %49 = vector.load %arg6[%c1_62, %c2_63, %c0_64, %c0_65] : memref<5x5x16x120xf32, #tpu.memory_space<vmem>>, vector<1x1x16x120xf32>
    %50 = vector.shape_cast %49 : vector<1x1x16x120xf32> to vector<16x120xf32>
    %cst_66 = arith.constant dense<0.000000e+00> : vector<1x120xf32>
    %51 = tpu.matmul %48, %50, %cst_66 {dimension_numbers = #tpu.dot_dimension_numbers<[1], [0], [0], [1], [0, 0, 1, 1], [], []>} : vector<1x16xf32>, vector<16x120xf32>, vector<1x120xf32> -> vector<1x120xf32>
    %52 = arith.addf %46, %51 : vector<1x120xf32>
    %c1_67 = arith.constant 1 : index
    %c3_68 = arith.constant 3 : index
    %c0_69 = arith.constant 0 : index
    %53 = vector.load %arg14[%c1_67, %c3_68, %c0_69] : memref<5x5x16xf32, #tpu.memory_space<vmem>>, vector<1x1x16xf32>
    %54 = vector.shape_cast %53 : vector<1x1x16xf32> to vector<1x16xf32>
    %c1_70 = arith.constant 1 : index
    %c3_71 = arith.constant 3 : index
    %c0_72 = arith.constant 0 : index
    %c0_73 = arith.constant 0 : index
    %55 = vector.load %arg6[%c1_70, %c3_71, %c0_72, %c0_73] : memref<5x5x16x120xf32, #tpu.memory_space<vmem>>, vector<1x1x16x120xf32>
    %56 = vector.shape_cast %55 : vector<1x1x16x120xf32> to vector<16x120xf32>
    %cst_74 = arith.constant dense<0.000000e+00> : vector<1x120xf32>
    %57 = tpu.matmul %54, %56, %cst_74 {dimension_numbers = #tpu.dot_dimension_numbers<[1], [0], [0], [1], [0, 0, 1, 1], [], []>} : vector<1x16xf32>, vector<16x120xf32>, vector<1x120xf32> -> vector<1x120xf32>
    %58 = arith.addf %52, %57 : vector<1x120xf32>
    %c1_75 = arith.constant 1 : index
    %c4_76 = arith.constant 4 : index
    %c0_77 = arith.constant 0 : index
    %59 = vector.load %arg14[%c1_75, %c4_76, %c0_77] : memref<5x5x16xf32, #tpu.memory_space<vmem>>, vector<1x1x16xf32>
    %60 = vector.shape_cast %59 : vector<1x1x16xf32> to vector<1x16xf32>
    %c1_78 = arith.constant 1 : index
    %c4_79 = arith.constant 4 : index
    %c0_80 = arith.constant 0 : index
    %c0_81 = arith.constant 0 : index
    %61 = vector.load %arg6[%c1_78, %c4_79, %c0_80, %c0_81] : memref<5x5x16x120xf32, #tpu.memory_space<vmem>>, vector<1x1x16x120xf32>
    %62 = vector.shape_cast %61 : vector<1x1x16x120xf32> to vector<16x120xf32>
    %cst_82 = arith.constant dense<0.000000e+00> : vector<1x120xf32>
    %63 = tpu.matmul %60, %62, %cst_82 {dimension_numbers = #tpu.dot_dimension_numbers<[1], [0], [0], [1], [0, 0, 1, 1], [], []>} : vector<1x16xf32>, vector<16x120xf32>, vector<1x120xf32> -> vector<1x120xf32>
    %64 = arith.addf %58, %63 : vector<1x120xf32>
    %c2_83 = arith.constant 2 : index
    %c0_84 = arith.constant 0 : index
    %c0_85 = arith.constant 0 : index
    %65 = vector.load %arg14[%c2_83, %c0_84, %c0_85] : memref<5x5x16xf32, #tpu.memory_space<vmem>>, vector<1x1x16xf32>
    %66 = vector.shape_cast %65 : vector<1x1x16xf32> to vector<1x16xf32>
    %c2_86 = arith.constant 2 : index
    %c0_87 = arith.constant 0 : index
    %c0_88 = arith.constant 0 : index
    %c0_89 = arith.constant 0 : index
    %67 = vector.load %arg6[%c2_86, %c0_87, %c0_88, %c0_89] : memref<5x5x16x120xf32, #tpu.memory_space<vmem>>, vector<1x1x16x120xf32>
    %68 = vector.shape_cast %67 : vector<1x1x16x120xf32> to vector<16x120xf32>
    %cst_90 = arith.constant dense<0.000000e+00> : vector<1x120xf32>
    %69 = tpu.matmul %66, %68, %cst_90 {dimension_numbers = #tpu.dot_dimension_numbers<[1], [0], [0], [1], [0, 0, 1, 1], [], []>} : vector<1x16xf32>, vector<16x120xf32>, vector<1x120xf32> -> vector<1x120xf32>
    %70 = arith.addf %64, %69 : vector<1x120xf32>
    %c2_91 = arith.constant 2 : index
    %c1_92 = arith.constant 1 : index
    %c0_93 = arith.constant 0 : index
    %71 = vector.load %arg14[%c2_91, %c1_92, %c0_93] : memref<5x5x16xf32, #tpu.memory_space<vmem>>, vector<1x1x16xf32>
    %72 = vector.shape_cast %71 : vector<1x1x16xf32> to vector<1x16xf32>
    %c2_94 = arith.constant 2 : index
    %c1_95 = arith.constant 1 : index
    %c0_96 = arith.constant 0 : index
    %c0_97 = arith.constant 0 : index
    %73 = vector.load %arg6[%c2_94, %c1_95, %c0_96, %c0_97] : memref<5x5x16x120xf32, #tpu.memory_space<vmem>>, vector<1x1x16x120xf32>
    %74 = vector.shape_cast %73 : vector<1x1x16x120xf32> to vector<16x120xf32>
    %cst_98 = arith.constant dense<0.000000e+00> : vector<1x120xf32>
    %75 = tpu.matmul %72, %74, %cst_98 {dimension_numbers = #tpu.dot_dimension_numbers<[1], [0], [0], [1], [0, 0, 1, 1], [], []>} : vector<1x16xf32>, vector<16x120xf32>, vector<1x120xf32> -> vector<1x120xf32>
    %76 = arith.addf %70, %75 : vector<1x120xf32>
    %c2_99 = arith.constant 2 : index
    %c2_100 = arith.constant 2 : index
    %c0_101 = arith.constant 0 : index
    %77 = vector.load %arg14[%c2_99, %c2_100, %c0_101] : memref<5x5x16xf32, #tpu.memory_space<vmem>>, vector<1x1x16xf32>
    %78 = vector.shape_cast %77 : vector<1x1x16xf32> to vector<1x16xf32>
    %c2_102 = arith.constant 2 : index
    %c2_103 = arith.constant 2 : index
    %c0_104 = arith.constant 0 : index
    %c0_105 = arith.constant 0 : index
    %79 = vector.load %arg6[%c2_102, %c2_103, %c0_104, %c0_105] : memref<5x5x16x120xf32, #tpu.memory_space<vmem>>, vector<1x1x16x120xf32>
    %80 = vector.shape_cast %79 : vector<1x1x16x120xf32> to vector<16x120xf32>
    %cst_106 = arith.constant dense<0.000000e+00> : vector<1x120xf32>
    %81 = tpu.matmul %78, %80, %cst_106 {dimension_numbers = #tpu.dot_dimension_numbers<[1], [0], [0], [1], [0, 0, 1, 1], [], []>} : vector<1x16xf32>, vector<16x120xf32>, vector<1x120xf32> -> vector<1x120xf32>
    %82 = arith.addf %76, %81 : vector<1x120xf32>
    %c2_107 = arith.constant 2 : index
    %c3_108 = arith.constant 3 : index
    %c0_109 = arith.constant 0 : index
    %83 = vector.load %arg14[%c2_107, %c3_108, %c0_109] : memref<5x5x16xf32, #tpu.memory_space<vmem>>, vector<1x1x16xf32>
    %84 = vector.shape_cast %83 : vector<1x1x16xf32> to vector<1x16xf32>
    %c2_110 = arith.constant 2 : index
    %c3_111 = arith.constant 3 : index
    %c0_112 = arith.constant 0 : index
    %c0_113 = arith.constant 0 : index
    %85 = vector.load %arg6[%c2_110, %c3_111, %c0_112, %c0_113] : memref<5x5x16x120xf32, #tpu.memory_space<vmem>>, vector<1x1x16x120xf32>
    %86 = vector.shape_cast %85 : vector<1x1x16x120xf32> to vector<16x120xf32>
    %cst_114 = arith.constant dense<0.000000e+00> : vector<1x120xf32>
    %87 = tpu.matmul %84, %86, %cst_114 {dimension_numbers = #tpu.dot_dimension_numbers<[1], [0], [0], [1], [0, 0, 1, 1], [], []>} : vector<1x16xf32>, vector<16x120xf32>, vector<1x120xf32> -> vector<1x120xf32>
    %88 = arith.addf %82, %87 : vector<1x120xf32>
    %c2_115 = arith.constant 2 : index
    %c4_116 = arith.constant 4 : index
    %c0_117 = arith.constant 0 : index
    %89 = vector.load %arg14[%c2_115, %c4_116, %c0_117] : memref<5x5x16xf32, #tpu.memory_space<vmem>>, vector<1x1x16xf32>
    %90 = vector.shape_cast %89 : vector<1x1x16xf32> to vector<1x16xf32>
    %c2_118 = arith.constant 2 : index
    %c4_119 = arith.constant 4 : index
    %c0_120 = arith.constant 0 : index
    %c0_121 = arith.constant 0 : index
    %91 = vector.load %arg6[%c2_118, %c4_119, %c0_120, %c0_121] : memref<5x5x16x120xf32, #tpu.memory_space<vmem>>, vector<1x1x16x120xf32>
    %92 = vector.shape_cast %91 : vector<1x1x16x120xf32> to vector<16x120xf32>
    %cst_122 = arith.constant dense<0.000000e+00> : vector<1x120xf32>
    %93 = tpu.matmul %90, %92, %cst_122 {dimension_numbers = #tpu.dot_dimension_numbers<[1], [0], [0], [1], [0, 0, 1, 1], [], []>} : vector<1x16xf32>, vector<16x120xf32>, vector<1x120xf32> -> vector<1x120xf32>
    %94 = arith.addf %88, %93 : vector<1x120xf32>
    %c3_123 = arith.constant 3 : index
    %c0_124 = arith.constant 0 : index
    %c0_125 = arith.constant 0 : index
    %95 = vector.load %arg14[%c3_123, %c0_124, %c0_125] : memref<5x5x16xf32, #tpu.memory_space<vmem>>, vector<1x1x16xf32>
    %96 = vector.shape_cast %95 : vector<1x1x16xf32> to vector<1x16xf32>
    %c3_126 = arith.constant 3 : index
    %c0_127 = arith.constant 0 : index
    %c0_128 = arith.constant 0 : index
    %c0_129 = arith.constant 0 : index
    %97 = vector.load %arg6[%c3_126, %c0_127, %c0_128, %c0_129] : memref<5x5x16x120xf32, #tpu.memory_space<vmem>>, vector<1x1x16x120xf32>
    %98 = vector.shape_cast %97 : vector<1x1x16x120xf32> to vector<16x120xf32>
    %cst_130 = arith.constant dense<0.000000e+00> : vector<1x120xf32>
    %99 = tpu.matmul %96, %98, %cst_130 {dimension_numbers = #tpu.dot_dimension_numbers<[1], [0], [0], [1], [0, 0, 1, 1], [], []>} : vector<1x16xf32>, vector<16x120xf32>, vector<1x120xf32> -> vector<1x120xf32>
    %100 = arith.addf %94, %99 : vector<1x120xf32>
    %c3_131 = arith.constant 3 : index
    %c1_132 = arith.constant 1 : index
    %c0_133 = arith.constant 0 : index
    %101 = vector.load %arg14[%c3_131, %c1_132, %c0_133] : memref<5x5x16xf32, #tpu.memory_space<vmem>>, vector<1x1x16xf32>
    %102 = vector.shape_cast %101 : vector<1x1x16xf32> to vector<1x16xf32>
    %c3_134 = arith.constant 3 : index
    %c1_135 = arith.constant 1 : index
    %c0_136 = arith.constant 0 : index
    %c0_137 = arith.constant 0 : index
    %103 = vector.load %arg6[%c3_134, %c1_135, %c0_136, %c0_137] : memref<5x5x16x120xf32, #tpu.memory_space<vmem>>, vector<1x1x16x120xf32>
    %104 = vector.shape_cast %103 : vector<1x1x16x120xf32> to vector<16x120xf32>
    %cst_138 = arith.constant dense<0.000000e+00> : vector<1x120xf32>
    %105 = tpu.matmul %102, %104, %cst_138 {dimension_numbers = #tpu.dot_dimension_numbers<[1], [0], [0], [1], [0, 0, 1, 1], [], []>} : vector<1x16xf32>, vector<16x120xf32>, vector<1x120xf32> -> vector<1x120xf32>
    %106 = arith.addf %100, %105 : vector<1x120xf32>
    %c3_139 = arith.constant 3 : index
    %c2_140 = arith.constant 2 : index
    %c0_141 = arith.constant 0 : index
    %107 = vector.load %arg14[%c3_139, %c2_140, %c0_141] : memref<5x5x16xf32, #tpu.memory_space<vmem>>, vector<1x1x16xf32>
    %108 = vector.shape_cast %107 : vector<1x1x16xf32> to vector<1x16xf32>
    %c3_142 = arith.constant 3 : index
    %c2_143 = arith.constant 2 : index
    %c0_144 = arith.constant 0 : index
    %c0_145 = arith.constant 0 : index
    %109 = vector.load %arg6[%c3_142, %c2_143, %c0_144, %c0_145] : memref<5x5x16x120xf32, #tpu.memory_space<vmem>>, vector<1x1x16x120xf32>
    %110 = vector.shape_cast %109 : vector<1x1x16x120xf32> to vector<16x120xf32>
    %cst_146 = arith.constant dense<0.000000e+00> : vector<1x120xf32>
    %111 = tpu.matmul %108, %110, %cst_146 {dimension_numbers = #tpu.dot_dimension_numbers<[1], [0], [0], [1], [0, 0, 1, 1], [], []>} : vector<1x16xf32>, vector<16x120xf32>, vector<1x120xf32> -> vector<1x120xf32>
    %112 = arith.addf %106, %111 : vector<1x120xf32>
    %c3_147 = arith.constant 3 : index
    %c3_148 = arith.constant 3 : index
    %c0_149 = arith.constant 0 : index
    %113 = vector.load %arg14[%c3_147, %c3_148, %c0_149] : memref<5x5x16xf32, #tpu.memory_space<vmem>>, vector<1x1x16xf32>
    %114 = vector.shape_cast %113 : vector<1x1x16xf32> to vector<1x16xf32>
    %c3_150 = arith.constant 3 : index
    %c3_151 = arith.constant 3 : index
    %c0_152 = arith.constant 0 : index
    %c0_153 = arith.constant 0 : index
    %115 = vector.load %arg6[%c3_150, %c3_151, %c0_152, %c0_153] : memref<5x5x16x120xf32, #tpu.memory_space<vmem>>, vector<1x1x16x120xf32>
    %116 = vector.shape_cast %115 : vector<1x1x16x120xf32> to vector<16x120xf32>
    %cst_154 = arith.constant dense<0.000000e+00> : vector<1x120xf32>
    %117 = tpu.matmul %114, %116, %cst_154 {dimension_numbers = #tpu.dot_dimension_numbers<[1], [0], [0], [1], [0, 0, 1, 1], [], []>} : vector<1x16xf32>, vector<16x120xf32>, vector<1x120xf32> -> vector<1x120xf32>
    %118 = arith.addf %112, %117 : vector<1x120xf32>
    %c3_155 = arith.constant 3 : index
    %c4_156 = arith.constant 4 : index
    %c0_157 = arith.constant 0 : index
    %119 = vector.load %arg14[%c3_155, %c4_156, %c0_157] : memref<5x5x16xf32, #tpu.memory_space<vmem>>, vector<1x1x16xf32>
    %120 = vector.shape_cast %119 : vector<1x1x16xf32> to vector<1x16xf32>
    %c3_158 = arith.constant 3 : index
    %c4_159 = arith.constant 4 : index
    %c0_160 = arith.constant 0 : index
    %c0_161 = arith.constant 0 : index
    %121 = vector.load %arg6[%c3_158, %c4_159, %c0_160, %c0_161] : memref<5x5x16x120xf32, #tpu.memory_space<vmem>>, vector<1x1x16x120xf32>
    %122 = vector.shape_cast %121 : vector<1x1x16x120xf32> to vector<16x120xf32>
    %cst_162 = arith.constant dense<0.000000e+00> : vector<1x120xf32>
    %123 = tpu.matmul %120, %122, %cst_162 {dimension_numbers = #tpu.dot_dimension_numbers<[1], [0], [0], [1], [0, 0, 1, 1], [], []>} : vector<1x16xf32>, vector<16x120xf32>, vector<1x120xf32> -> vector<1x120xf32>
    %124 = arith.addf %118, %123 : vector<1x120xf32>
    %c4_163 = arith.constant 4 : index
    %c0_164 = arith.constant 0 : index
    %c0_165 = arith.constant 0 : index
    %125 = vector.load %arg14[%c4_163, %c0_164, %c0_165] : memref<5x5x16xf32, #tpu.memory_space<vmem>>, vector<1x1x16xf32>
    %126 = vector.shape_cast %125 : vector<1x1x16xf32> to vector<1x16xf32>
    %c4_166 = arith.constant 4 : index
    %c0_167 = arith.constant 0 : index
    %c0_168 = arith.constant 0 : index
    %c0_169 = arith.constant 0 : index
    %127 = vector.load %arg6[%c4_166, %c0_167, %c0_168, %c0_169] : memref<5x5x16x120xf32, #tpu.memory_space<vmem>>, vector<1x1x16x120xf32>
    %128 = vector.shape_cast %127 : vector<1x1x16x120xf32> to vector<16x120xf32>
    %cst_170 = arith.constant dense<0.000000e+00> : vector<1x120xf32>
    %129 = tpu.matmul %126, %128, %cst_170 {dimension_numbers = #tpu.dot_dimension_numbers<[1], [0], [0], [1], [0, 0, 1, 1], [], []>} : vector<1x16xf32>, vector<16x120xf32>, vector<1x120xf32> -> vector<1x120xf32>
    %130 = arith.addf %124, %129 : vector<1x120xf32>
    %c4_171 = arith.constant 4 : index
    %c1_172 = arith.constant 1 : index
    %c0_173 = arith.constant 0 : index
    %131 = vector.load %arg14[%c4_171, %c1_172, %c0_173] : memref<5x5x16xf32, #tpu.memory_space<vmem>>, vector<1x1x16xf32>
    %132 = vector.shape_cast %131 : vector<1x1x16xf32> to vector<1x16xf32>
    %c4_174 = arith.constant 4 : index
    %c1_175 = arith.constant 1 : index
    %c0_176 = arith.constant 0 : index
    %c0_177 = arith.constant 0 : index
    %133 = vector.load %arg6[%c4_174, %c1_175, %c0_176, %c0_177] : memref<5x5x16x120xf32, #tpu.memory_space<vmem>>, vector<1x1x16x120xf32>
    %134 = vector.shape_cast %133 : vector<1x1x16x120xf32> to vector<16x120xf32>
    %cst_178 = arith.constant dense<0.000000e+00> : vector<1x120xf32>
    %135 = tpu.matmul %132, %134, %cst_178 {dimension_numbers = #tpu.dot_dimension_numbers<[1], [0], [0], [1], [0, 0, 1, 1], [], []>} : vector<1x16xf32>, vector<16x120xf32>, vector<1x120xf32> -> vector<1x120xf32>
    %136 = arith.addf %130, %135 : vector<1x120xf32>
    %c4_179 = arith.constant 4 : index
    %c2_180 = arith.constant 2 : index
    %c0_181 = arith.constant 0 : index
    %137 = vector.load %arg14[%c4_179, %c2_180, %c0_181] : memref<5x5x16xf32, #tpu.memory_space<vmem>>, vector<1x1x16xf32>
    %138 = vector.shape_cast %137 : vector<1x1x16xf32> to vector<1x16xf32>
    %c4_182 = arith.constant 4 : index
    %c2_183 = arith.constant 2 : index
    %c0_184 = arith.constant 0 : index
    %c0_185 = arith.constant 0 : index
    %139 = vector.load %arg6[%c4_182, %c2_183, %c0_184, %c0_185] : memref<5x5x16x120xf32, #tpu.memory_space<vmem>>, vector<1x1x16x120xf32>
    %140 = vector.shape_cast %139 : vector<1x1x16x120xf32> to vector<16x120xf32>
    %cst_186 = arith.constant dense<0.000000e+00> : vector<1x120xf32>
    %141 = tpu.matmul %138, %140, %cst_186 {dimension_numbers = #tpu.dot_dimension_numbers<[1], [0], [0], [1], [0, 0, 1, 1], [], []>} : vector<1x16xf32>, vector<16x120xf32>, vector<1x120xf32> -> vector<1x120xf32>
    %142 = arith.addf %136, %141 : vector<1x120xf32>
    %c4_187 = arith.constant 4 : index
    %c3_188 = arith.constant 3 : index
    %c0_189 = arith.constant 0 : index
    %143 = vector.load %arg14[%c4_187, %c3_188, %c0_189] : memref<5x5x16xf32, #tpu.memory_space<vmem>>, vector<1x1x16xf32>
    %144 = vector.shape_cast %143 : vector<1x1x16xf32> to vector<1x16xf32>
    %c4_190 = arith.constant 4 : index
    %c3_191 = arith.constant 3 : index
    %c0_192 = arith.constant 0 : index
    %c0_193 = arith.constant 0 : index
    %145 = vector.load %arg6[%c4_190, %c3_191, %c0_192, %c0_193] : memref<5x5x16x120xf32, #tpu.memory_space<vmem>>, vector<1x1x16x120xf32>
    %146 = vector.shape_cast %145 : vector<1x1x16x120xf32> to vector<16x120xf32>
    %cst_194 = arith.constant dense<0.000000e+00> : vector<1x120xf32>
    %147 = tpu.matmul %144, %146, %cst_194 {dimension_numbers = #tpu.dot_dimension_numbers<[1], [0], [0], [1], [0, 0, 1, 1], [], []>} : vector<1x16xf32>, vector<16x120xf32>, vector<1x120xf32> -> vector<1x120xf32>
    %148 = arith.addf %142, %147 : vector<1x120xf32>
    %c4_195 = arith.constant 4 : index
    %c4_196 = arith.constant 4 : index
    %c0_197 = arith.constant 0 : index
    %149 = vector.load %arg14[%c4_195, %c4_196, %c0_197] : memref<5x5x16xf32, #tpu.memory_space<vmem>>, vector<1x1x16xf32>
    %150 = vector.shape_cast %149 : vector<1x1x16xf32> to vector<1x16xf32>
    %c4_198 = arith.constant 4 : index
    %c4_199 = arith.constant 4 : index
    %c0_200 = arith.constant 0 : index
    %c0_201 = arith.constant 0 : index
    %151 = vector.load %arg6[%c4_198, %c4_199, %c0_200, %c0_201] : memref<5x5x16x120xf32, #tpu.memory_space<vmem>>, vector<1x1x16x120xf32>
    %152 = vector.shape_cast %151 : vector<1x1x16x120xf32> to vector<16x120xf32>
    %cst_202 = arith.constant dense<0.000000e+00> : vector<1x120xf32>
    %153 = tpu.matmul %150, %152, %cst_202 {dimension_numbers = #tpu.dot_dimension_numbers<[1], [0], [0], [1], [0, 0, 1, 1], [], []>} : vector<1x16xf32>, vector<16x120xf32>, vector<1x120xf32> -> vector<1x120xf32>
    %154 = arith.addf %148, %153 : vector<1x120xf32>
    %c0_203 = arith.constant 0 : index
    %c0_204 = arith.constant 0 : index
    %155 = vector.load %arg7[%c0_203, %c0_204] : memref<1x120xf32, #tpu.memory_space<vmem>>, vector<1x120xf32>
    %156 = arith.addf %154, %155 : vector<1x120xf32>
    %cst_205 = arith.constant 0.000000e+00 : f32
    %157 = vector.broadcast %cst_205 : f32 to vector<1x120xf32>
    %158 = arith.maximumf %156, %157 : vector<1x120xf32>
    %c0_206 = arith.constant 0 : index
    %c0_207 = arith.constant 0 : index
    %159 = vector.load %arg8[%c0_206, %c0_207] : memref<120x84xf32, #tpu.memory_space<vmem>>, vector<120x84xf32>
    %cst_208 = arith.constant dense<0.000000e+00> : vector<1x84xf32>
    %160 = tpu.matmul %158, %159, %cst_208 {dimension_numbers = #tpu.dot_dimension_numbers<[1], [0], [0], [1], [0, 0, 1, 1], [], []>} : vector<1x120xf32>, vector<120x84xf32>, vector<1x84xf32> -> vector<1x84xf32>
    %c0_209 = arith.constant 0 : index
    %c0_210 = arith.constant 0 : index
    %161 = vector.load %arg9[%c0_209, %c0_210] : memref<1x84xf32, #tpu.memory_space<vmem>>, vector<1x84xf32>
    %162 = arith.addf %160, %161 : vector<1x84xf32>
    %cst_211 = arith.constant 0.000000e+00 : f32
    %163 = vector.broadcast %cst_211 : f32 to vector<1x84xf32>
    %164 = arith.maximumf %162, %163 : vector<1x84xf32>
    %c0_212 = arith.constant 0 : index
    %c0_213 = arith.constant 0 : index
    %165 = vector.load %arg10[%c0_212, %c0_213] : memref<84x10xf32, #tpu.memory_space<vmem>>, vector<84x10xf32>
    %cst_214 = arith.constant dense<0.000000e+00> : vector<1x10xf32>
    %166 = tpu.matmul %164, %165, %cst_214 {dimension_numbers = #tpu.dot_dimension_numbers<[1], [0], [0], [1], [0, 0, 1, 1], [], []>} : vector<1x84xf32>, vector<84x10xf32>, vector<1x10xf32> -> vector<1x10xf32>
    %c0_215 = arith.constant 0 : index
    %c0_216 = arith.constant 0 : index
    %167 = vector.load %arg11[%c0_215, %c0_216] : memref<1x10xf32, #tpu.memory_space<vmem>>, vector<1x10xf32>
    %168 = arith.addf %166, %167 : vector<1x10xf32>
    %c0_217 = arith.constant 0 : index
    %c0_218 = arith.constant 0 : index
    %c0_219 = arith.constant 0 : index
    %169 = vector.load %arg12[%c0_217, %c0_218, %c0_219] : memref<1x1x10xf32, #tpu.memory_space<vmem>>, vector<1x1x10xf32>
    %170 = vector.shape_cast %169 : vector<1x1x10xf32> to vector<1x10xf32>
    %171 = vector.shape_cast %168 : vector<1x10xf32> to vector<1x1x10xf32>
    tpu.vector_store %arg12[%c0_217, %c0_218, %c0_219], %171 {strides = array<i32>} : memref<1x1x10xf32, #tpu.memory_space<vmem>>, vector<1x1x10xf32>,
    return
  }
  func.func @transform_0(%arg0: i32) -> (i32, i32, i32, i32) {
    %c0_i32 = arith.constant 0 : i32
    %c0_i32_0 = arith.constant 0 : i32
    %c0_i32_1 = arith.constant 0 : i32
    %c0_i32_2 = arith.constant 0 : i32
    return %arg0, %c0_i32, %c0_i32_0, %c0_i32_1 : i32, i32, i32, i32
  }
  func.func @transform_1(%arg0: i32) -> (i32, i32, i32, i32) {
    %c0_i32 = arith.constant 0 : i32
    %c0_i32_0 = arith.constant 0 : i32
    %c0_i32_1 = arith.constant 0 : i32
    %c0_i32_2 = arith.constant 0 : i32
    %c0_i32_3 = arith.constant 0 : i32
    return %c0_i32, %c0_i32_0, %c0_i32_1, %c0_i32_2 : i32, i32, i32, i32
  }
  func.func @transform_2(%arg0: i32) -> (i32, i32) {
    %c0_i32 = arith.constant 0 : i32
    %c0_i32_0 = arith.constant 0 : i32
    %c0_i32_1 = arith.constant 0 : i32
    return %c0_i32, %c0_i32_0 : i32, i32
  }
  func.func @transform_3(%arg0: i32) -> (i32, i32, i32, i32) {
    %c0_i32 = arith.constant 0 : i32
    %c0_i32_0 = arith.constant 0 : i32
    %c0_i32_1 = arith.constant 0 : i32
    %c0_i32_2 = arith.constant 0 : i32
    %c0_i32_3 = arith.constant 0 : i32
    return %c0_i32, %c0_i32_0, %c0_i32_1, %c0_i32_2 : i32, i32, i32, i32
  }
  func.func @transform_4(%arg0: i32) -> (i32, i32) {
    %c0_i32 = arith.constant 0 : i32
    %c0_i32_0 = arith.constant 0 : i32
    %c0_i32_1 = arith.constant 0 : i32
    return %c0_i32, %c0_i32_0 : i32, i32
  }
  func.func @transform_5(%arg0: i32) -> (i32, i32, i32, i32) {
    %c0_i32 = arith.constant 0 : i32
    %c0_i32_0 = arith.constant 0 : i32
    %c0_i32_1 = arith.constant 0 : i32
    %c0_i32_2 = arith.constant 0 : i32
    %c0_i32_3 = arith.constant 0 : i32
    return %c0_i32, %c0_i32_0, %c0_i32_1, %c0_i32_2 : i32, i32, i32, i32
  }
  func.func @transform_6(%arg0: i32) -> (i32, i32) {
    %c0_i32 = arith.constant 0 : i32
    %c0_i32_0 = arith.constant 0 : i32
    %c0_i32_1 = arith.constant 0 : i32
    return %c0_i32, %c0_i32_0 : i32, i32
  }
  func.func @transform_7(%arg0: i32) -> (i32, i32) {
    %c0_i32 = arith.constant 0 : i32
    %c0_i32_0 = arith.constant 0 : i32
    %c0_i32_1 = arith.constant 0 : i32
    return %c0_i32, %c0_i32_0 : i32, i32
  }
  func.func @transform_8(%arg0: i32) -> (i32, i32) {
    %c0_i32 = arith.constant 0 : i32
    %c0_i32_0 = arith.constant 0 : i32
    %c0_i32_1 = arith.constant 0 : i32
    return %c0_i32, %c0_i32_0 : i32, i32
  }
  func.func @transform_9(%arg0: i32) -> (i32, i32) {
    %c0_i32 = arith.constant 0 : i32
    %c0_i32_0 = arith.constant 0 : i32
    %c0_i32_1 = arith.constant 0 : i32
    return %c0_i32, %c0_i32_0 : i32, i32
  }
  func.func @transform_10(%arg0: i32) -> (i32, i32) {
    %c0_i32 = arith.constant 0 : i32
    %c0_i32_0 = arith.constant 0 : i32
    %c0_i32_1 = arith.constant 0 : i32
    return %c0_i32, %c0_i32_0 : i32, i32
  }
  func.func @transform_11(%arg0: i32) -> (i32, i32, i32) {
    %c0_i32 = arith.constant 0 : i32
    %c0_i32_0 = arith.constant 0 : i32
    %c0_i32_1 = arith.constant 0 : i32
    return %arg0, %c0_i32, %c0_i32_0 : i32, i32, i32
  }
}

</mosaic_0001>

<bundles_post_ra>
// kernel: lenet5_forward.1
= control target key start
LH: loop header
LB: loop body
LE: loop exit
PB: predicated region body
PF: predicated region fallthrough
CT: control target
= control target key end

     0   :  { %s6199_s0 = inlined_call_operand.vmem [shape: f32[2,32,32,1], index: 0, kind: input, shape index: {}]   ;;  %s6200_s1 = inlined_call_operand.vmem [shape: f32[5,5,1,6], index: 1, kind: input, shape index: {}]   ;;  %s6201_s2 = inlined_call_operand.vmem [shape: f32[1,6], index: 2, kind: input, shape index: {}]   ;;  %s6202_s3 = inlined_call_operand.vmem [shape: f32[5,5,6,16], index: 3, kind: input, shape index: {}]   ;;  %s6203_s4 = inlined_call_operand.vmem [shape: f32[1,16], index: 4, kind: input, shape index: {}]   ;;  %s6204_s5 = inlined_call_operand.vmem [shape: f32[5,5,16,120], index: 5, kind: input, shape index: {}]   ;;  %s6205_s6 = inlined_call_operand.vmem [shape: f32[1,120], index: 6, kind: input, shape index: {}]   ;;  %s6206_s7 = inlined_call_operand.vmem [shape: f32[120,84], index: 7, kind: input, shape index: {}]   ;;  %s6207_s8 = inlined_call_operand.vmem [shape: f32[1,84], index: 8, kind: input, shape index: {}]   ;;  %s6208_s9 = inlined_call_operand.vmem [shape: f32[84,10], index: 9, kind: input, shape index: {}]   ;;  %s6209_s10 = inlined_call_operand.vmem [shape: f32[1,10], index: 10, kind: input, shape index: {}]   ;;  %s6210_s11 = inlined_call_operand.hbm [shape: f32[2,1,10], index: 11, kind: output, shape index: {}]  }
   0x1   :  { %6212 = sst [smem:[#allocation9_spill]] %s6199_s0 }
   0x2   :  { %6213 = sst [smem:[#allocation10_spill]] %s6200_s1 }
   0x3   :  { %16 = vsyncpa [#allocation7], 0 }
   0x4   :  { %18 = vsyncpa [#allocation7 + $0x1], 0  ;;  %s4701_s17 = smov 0   ;;  %s4703_s18 = smov 0  }
   0x5   :  { %s4705_s19 = smov 0   ;;  %s4707_s20 = smov 0  }
   0x6 LB: > { %s4722_s21 = sadd.s32 4294967295, %s4630_s20   ;;  %s4183_s22 = sadd.s32 4294967294, %s4630_s20   ;;  %s4630_s20 = sphi %s4707_s20, %s6222_s20   ;;  %s4626_s19 = sphi %s4705_s19, %s6221_s19   ;;  %s4622_s18 = sphi %s4703_s18, %s6220_s18   ;;  %s4618_s17 = sphi %s4701_s17, %s6219_s17  }
   0x7   : > { %s4726_s23 = sadd.s32 1, %s4630_s20   ;;  %s267_s24 = sadd.s32 1, %s4626_s19 }
   0x8   : > { %s264_s25 = ssub.s32 %s4630_s20, %s4726_s23  ;;  %p277_p0 = scmp.ne.s32.totalorder %s4626_s19, %s4622_s18 }
   0x9   : > { %p265_p1 = scmp.eq.s32.totalorder %s264_s25, 0  ;;  %p278_p2 = scmp.eq.s32.totalorder %s4722_s21, 1 }
   0xa   : > { %p283_p3 = scmp.ne.s32.totalorder %s4622_s18, %s4618_s17  ;;  %p284_p4 = scmp.eq.s32.totalorder %s4183_s22, 1 }
   0xb   : > { %s4737_s26 = scalar_select %p265_p1, %s4626_s19, %s267_s24  }
   0xc   : > { %p4739_p5 = por %p278_p2, %p277_p0  ;;  %p4743_p6 = por %p284_p4, %p283_p3 }
   0xd   : > { %p4186_p7 = scmp.ge.s32.totalorder %s4630_s20, 1  ;;  %p340_p8 = scmp.lt.s32.totalorder %s4630_s20, 3 }
   0xf   : > { %p341_p9 = pnand %p4186_p7, %p340_p8 }
  0x10   : > { %s6211_s29 = sand.u32 (!%p341_p9), 1, %s4622_s18   ;;  %p379_p10 = scmp.lt.s32.totalorder (!%p341_p9), %s4722_s21, 1 }
  0x11   : > { %344 = sbr.rel (%p341_p9) target bundleno = 1304 (0x518), region = 64  ;;  %s6216_s0 = sld [smem:[#allocation9_spill]] (!%p341_p9) }
  0x12   : > { %s4764_s24 = scalar_lea.vmem (!%p341_p9), [#allocation6], %s6211_s29  ;;  %s4766_s25 = smov (!%p341_p9), 0  }
  0x16   : > { %v4754_v0 = vld [vmem:[%s6201_s2] sm:$0x1]  ;;  %s380_s13 = scalar_select %p379_p10, %s4722_s21, 1 }
  0x18   : > { %s4471_s14 = sshll.u32 %s380_s13, 10 }
  0x19   : > { %s4760_s22 = scalar_lea.vmem %s6216_s0, %s4471_s14 }
  0x1a LB: >> { %v4640_v1 = vmov 0   ;;  %s4472_s30 = sshll.u32 %s4634_s25, 6  ;;  %s6217_s1 = sld [smem:[#allocation10_spill]]  ;;  %vm1649_vm0 = vcmask 48128   ;;  %vm1653_vm1 = vcmask 44032   ;;  %vm1669_vm2 = vcmask 46080   ;;  %s4634_s25 = sphi %s4766_s25, %s390_s25  }
  0x1b   : >> { %4534 = vset.pattern.permute.xlu2 %v4640_v1  ;;  %4533 = vset.pattern.permute.xlu1 %v4640_v1  ;;  %s4773_s12 = scalar_lea.vmem %s4760_s22, %s4472_s30  ;;  %s4215_s29 = sshll.u32 %s4634_s25, 4 }
  0x1c   : >> { %4532 = vset.pattern.permute.xlu0 %v4640_v1  ;;  %v418_v2 = vld [vmem:[%s4773_s12 + $0x1] sm:$0xff]  ;;  %v396_v3 = vld [vmem:[%s4773_s12 + $0x10] sm:$0xff]  ;;  %v397_v6 = vld [vmem:[%s4773_s12 + $0x18] sm:$0xf]  ;;  %s1667_s13 = scalar_lea.vmem [#allocation2], %s4215_s29  ;;  %s390_s25 = sadd.s32 1, %s4634_s25  }
  0x1d   : >> { %v394_v4 = vld [vmem:[%s4773_s12] sm:$0xff]  ;;  %550 = vperm.xlu2 %4534, %v418_v2   ;;  %527 = vperm.xlu1 %4533, %v396_v3   ;;  %v419_v5 = vld [vmem:[%s4773_s12 + $0x9] sm:$0xff]  ;;  %v421_v9 = vld [vmem:[%s4773_s12 + $0x19] sm:$0xf]  ;;  %p387_p11 = scmp.ge.s32.totalorder %s390_s25, 14  }
  0x1e   : >> { %517 = vperm.xlu0 %4532, %v394_v4   ;;  %v395_v7 = vld [vmem:[%s4773_s12 + $0x8] sm:$0xff]  ;;  %v420_v10 = vld [vmem:[%s4773_s12 + $0x11] sm:$0xff]  ;;  %v445_v11 = vld [vmem:[%s4773_s12 + $0x1a] sm:$0xf]  ;;  %s5333_s16 = smov (%p387_p11), 0  }
  0x1f   : >> { %v442_v8 = vld [vmem:[%s4773_s12 + $0x2] sm:$0xff]  ;;  %v444_v12 = vld [vmem:[%s4773_s12 + $0x12] sm:$0xff]  ;;  %v443_v13 = vld [vmem:[%s4773_s12 + $0xa] sm:$0xff] }
  0x20   : >> { %v468_v14 = vld [vmem:[%s4773_s12 + $0x13] sm:$0xff]  ;;  %v467_v15 = vld [vmem:[%s4773_s12 + $0xb] sm:$0xff]  ;;  %v466_v16 = vld [vmem:[%s4773_s12 + $0x3] sm:$0xff] }
  0x21   : >> { %v491_v17 = vld [vmem:[%s4773_s12 + $0xc] sm:$0xff]  ;;  %v490_v18 = vld [vmem:[%s4773_s12 + $0x4] sm:$0xff]  ;;  %v469_v19 = vld [vmem:[%s4773_s12 + $0x1b] sm:$0xf] }
  0x22   : >> { %v398_v20 = vld [vmem:[%s4773_s12 + $0x20] sm:$0xff]  ;;  %v493_v21 = vld [vmem:[%s4773_s12 + $0x1c] sm:$0xf]  ;;  %v492_v22 = vld [vmem:[%s4773_s12 + $0x14] sm:$0xff] }
  0x23   : >> { %v401_v23 = vld [vmem:[%s4773_s12 + $0x38] sm:$0xf]  ;;  %v400_v24 = vld [vmem:[%s4773_s12 + $0x30] sm:$0xff]  ;;  %v399_v25 = vld [vmem:[%s4773_s12 + $0x28] sm:$0xff] }
  0x24   : >> { %v424_v26 = vld [vmem:[%s4773_s12 + $0x31] sm:$0xff]  ;;  %v423_v27 = vld [vmem:[%s4773_s12 + $0x29] sm:$0xff]  ;;  %v422_v28 = vld [vmem:[%s4773_s12 + $0x21] sm:$0xff] }
  0x25   : >> { %555 = vperm.xlu2 %4534, %v419_v5   ;;  %532 = vperm.xlu1 %4533, %v397_v6   ;;  %v447_v29 = vld [vmem:[%s4773_s12 + $0x2a] sm:$0xff]  ;;  %v446_v30 = vld [vmem:[%s4773_s12 + $0x22] sm:$0xff]  ;;  %v425_v31 = vld [vmem:[%s4773_s12 + $0x39] sm:$0xf] }
  0x26   : >> { %522 = vperm.xlu0 %4532, %v395_v7   ;;  %v470_v32 = vld [vmem:[%s4773_s12 + $0x23] sm:$0xff]  ;;  %v449_v33 = vld [vmem:[%s4773_s12 + $0x3a] sm:$0xf]  ;;  %v448_v34 = vld [vmem:[%s4773_s12 + $0x32] sm:$0xff] }
  0x27   : >> { %v473_v35 = vld [vmem:[%s4773_s12 + $0x3b] sm:$0xf]  ;;  %v472_v36 = vld [vmem:[%s4773_s12 + $0x33] sm:$0xff]  ;;  %v471_v37 = vld [vmem:[%s4773_s12 + $0x2b] sm:$0xff] }
  0x28   : >> { %v496_v39 = vld [vmem:[%s4773_s12 + $0x34] sm:$0xff]  ;;  %v495_v40 = vld [vmem:[%s4773_s12 + $0x2c] sm:$0xff]  ;;  %v494_v41 = vld [vmem:[%s4773_s12 + $0x24] sm:$0xff] }
  0x29   : >> { %v403_v43 = vld [vmem:[%s4773_s12 + $0x48] sm:$0xff]  ;;  %v402_v44 = vld [vmem:[%s4773_s12 + $0x40] sm:$0xff]  ;;  %v497_v45 = vld [vmem:[%s4773_s12 + $0x3c] sm:$0xf] }
  0x2a   : >> { %v426_v47 = vld [vmem:[%s4773_s12 + $0x41] sm:$0xff]  ;;  %v405_v48 = vld [vmem:[%s4773_s12 + $0x58] sm:$0xf]  ;;  %v404_v50 = vld [vmem:[%s4773_s12 + $0x50] sm:$0xff] }
  0x2b   : >> { %v4822_v49 = vld [vmem:[%s6217_s1 + $0x1] ss:$0 sm:$0xff]  ;;  %v4828_v51 = vld [vmem:[%s6217_s1] ss:$0 sm:$0xff]  ;;  %v4834_v53 = vld [vmem:[%s6217_s1 + $0x2] ss:$0 sm:$0xff] }
  0x2c   : >> { %v429_v58 = vld [vmem:[%s4773_s12 + $0x59] sm:$0xf]  ;;  %v428_v59 = vld [vmem:[%s4773_s12 + $0x51] sm:$0xff]  ;;  %v427_v62 = vld [vmem:[%s4773_s12 + $0x49] sm:$0xff] }
  0x2d   : >> { %583 = vperm.xlu2 %4534, %v442_v8   ;;  %565 = vperm.xlu1 %4533, %v421_v9   ;;  %v452_v6 = vld [vmem:[%s4773_s12 + $0x52] sm:$0xff]  ;;  %v451_v7 = vld [vmem:[%s4773_s12 + $0x4a] sm:$0xff]  ;;  %v450_v9 = vld [vmem:[%s4773_s12 + $0x42] sm:$0xff] }
  0x2e   : >> { %560 = vperm.xlu0 %4532, %v420_v10  }
  0x35   : >> { %598 = vperm.xlu2 %4534, %v445_v11   ;;  %593 = vperm.xlu1 %4533, %v444_v12  }
  0x36   : >> { %588 = vperm.xlu0 %4532, %v443_v13  }
  0x3d   : >> { %626 = vperm.xlu2 %4534, %v468_v14   ;;  %621 = vperm.xlu1 %4533, %v467_v15  }
  0x3e   : >> { %616 = vperm.xlu0 %4532, %v466_v16  }
  0x45   : >> { %654 = vperm.xlu2 %4534, %v491_v17   ;;  %649 = vperm.xlu1 %4533, %v490_v18  }
  0x46   : >> { %631 = vperm.xlu0 %4532, %v469_v19   ;;  %v475_v19 = vld [vmem:[%s4773_s12 + $0x4b] sm:$0xff] }
  0x4d   : >> { %682 = vperm.xlu2 %4534, %v398_v20   ;;  %664 = vperm.xlu1 %4533, %v493_v21   ;;  %v474_v20 = vld [vmem:[%s4773_s12 + $0x43] sm:$0xff] }
  0x4e   : >> { %659 = vperm.xlu0 %4532, %v492_v22   ;;  %v453_v22 = vld [vmem:[%s4773_s12 + $0x5a] sm:$0xf] }
  0x55   : >> { %697 = vperm.xlu2 %4534, %v401_v23   ;;  %692 = vperm.xlu1 %4533, %v400_v24   ;;  %v4857_v24 = vld [vmem:[%s6217_s1 + $0x3] ss:$0 sm:$0xff] }
  0x56   : >> { %687 = vperm.xlu0 %4532, %v399_v25  }
  0x5d   : >> { %725 = vperm.xlu2 %4534, %v424_v26   ;;  %720 = vperm.xlu1 %4533, %v423_v27  }
  0x5e   : >> { %715 = vperm.xlu0 %4532, %v422_v28  }
  0x65   : >> { %753 = vperm.xlu2 %4534, %v447_v29   ;;  %748 = vperm.xlu1 %4533, %v446_v30  }
  0x66   : >> { %730 = vperm.xlu0 %4532, %v425_v31  }
  0x6d   : >> { %781 = vperm.xlu2 %4534, %v470_v32   ;;  %763 = vperm.xlu1 %4533, %v449_v33   ;;  %v498_v32 = vld [vmem:[%s4773_s12 + $0x44] sm:$0xff]  ;;  %v477_v33 = vld [vmem:[%s4773_s12 + $0x5b] sm:$0xf] }
  0x6e   : >> { %758 = vperm.xlu0 %4532, %v448_v34  }
  0x75   : >> { %796 = vperm.xlu2 %4534, %v473_v35   ;;  %791 = vperm.xlu1 %4533, %v472_v36   ;;  %v476_v35 = vld [vmem:[%s4773_s12 + $0x53] sm:$0xff] }
  0x76   : >> { %786 = vperm.xlu0 %4532, %v471_v37   ;;  %v4870_v37 = vld [vmem:[%s6217_s1 + $0x4] ss:$0 sm:$0xff] }
  0x77   : >> { %v551_v38 = vpop.permute.xlu2 %550 }
  0x78   : >> { %v571_v52 = vmul.f32 %v4822_v49, %v551_v38 }
  0x7d   : >> { %824 = vperm.xlu2 %4534, %v496_v39   ;;  %819 = vperm.xlu1 %4533, %v495_v40  }
  0x7e   : >> { %814 = vperm.xlu0 %4532, %v494_v41  }
  0x7f   : >> { %v556_v42 = vpop.permute.xlu2 %555 }
  0x80   : >> { %v572_v4 = vmul.f32 %v4822_v49, %v556_v42 }
  0x85   : >> { %852 = vperm.xlu2 %4534, %v403_v43   ;;  %847 = vperm.xlu1 %4533, %v402_v44  }
  0x86   : >> { %829 = vperm.xlu0 %4532, %v497_v45   ;;  %v501_v45 = vld [vmem:[%s4773_s12 + $0x5c] sm:$0xf] }
  0x87   : >> { %v584_v46 = vpop.permute.xlu2 %583 }
  0x88   : >> { %v604_v60 = vmul.f32 %v4834_v53, %v584_v46  ;;  %v500_v46 = vld [vmem:[%s4773_s12 + $0x54] sm:$0xff] }
  0x8d   : >> { %880 = vperm.xlu2 %4534, %v426_v47   ;;  %862 = vperm.xlu1 %4533, %v405_v48   ;;  %v499_v48 = vld [vmem:[%s4773_s12 + $0x4c] sm:$0xff] }
  0x8e   : >> { %857 = vperm.xlu0 %4532, %v404_v50  }
  0x8f   : >> { %v599_v54 = vpop.permute.xlu2 %598  ;;  %v528_v55 = vpop.permute.xlu1 %527 }
  0x90   : >> { %v518_v56 = vpop.permute.xlu0 %517  ;;  %v540_v15 = vmul.f32 %v4828_v51, %v528_v55  ;;  %v607_v17 = vmul.f32 %v4834_v53, %v599_v54 }
  0x91   : >> { %v538_v57 = vmul.f32 %v4828_v51, %v518_v56 }
  0x93   : >> { %v575_v61 = vadd.f32 %v571_v52, %v538_v57  ;;  %v4883_v52 = vld [vmem:[%s6217_s1 + $0x5] ss:$0 sm:$0xff] }
  0x95   : >> { %895 = vperm.xlu2 %4534, %v429_v58   ;;  %890 = vperm.xlu1 %4533, %v428_v59   ;;  %v608_v63 = vadd.f32 %v604_v60, %v575_v61  ;;  %v408_v61 = vld [vmem:[%s4773_s12 + $0x70] sm:$0xff] }
  0x96   : >> { %885 = vperm.xlu0 %4532, %v427_v62   ;;  %v407_v62 = vld [vmem:[%s4773_s12 + $0x68] sm:$0xff] }
  0x97   : >> { %v627_v1 = vpop.permute.xlu2 %626  ;;  %v533_v2 = vpop.permute.xlu1 %532 }
  0x98   : >> { %v523_v3 = vpop.permute.xlu0 %522  ;;  %v541_v12 = vmul.f32 %v4828_v51, %v533_v2  ;;  %v639_v30 = vmul.f32 %v4857_v24, %v627_v1  ;;  %v406_v1 = vld [vmem:[%s4773_s12 + $0x60] sm:$0xff] }
  0x99   : >> { %v539_v5 = vmul.f32 %v4828_v51, %v523_v3 }
  0x9b   : >> { %v576_v8 = vadd.f32 %v572_v4, %v539_v5 }
  0x9d   : >> { %923 = vperm.xlu2 %4534, %v452_v6   ;;  %918 = vperm.xlu1 %4533, %v451_v7  }
  0x9e   : >> { %913 = vperm.xlu0 %4532, %v450_v9  }
  0x9f   : >> { %v655_v10 = vpop.permute.xlu2 %654  ;;  %v566_v11 = vpop.permute.xlu1 %565 }
  0xa0   : >> { %v574_v13 = vmul.f32 %v4822_v49, %v566_v11  ;;  %v561_v14 = vpop.permute.xlu0 %560  ;;  %v671_v43 = vmul.f32 %v4870_v37, %v655_v10  ;;  %v431_v10 = vld [vmem:[%s4773_s12 + $0x69] sm:$0xff]  ;;  %v430_v11 = vld [vmem:[%s4773_s12 + $0x61] sm:$0xff] }
  0xa1   : >> { %v573_v16 = vmul.f32 %v4822_v49, %v561_v14 }
  0xa2   : >> { %v578_v18 = vadd.f32 %v574_v13, %v541_v12  ;;  %v409_v13 = vld [vmem:[%s4773_s12 + $0x78] sm:$0xf] }
  0xa3   : >> { %v577_v21 = vadd.f32 %v573_v16, %v540_v15  ;;  %v4902_v15 = vld [vmem:[%s6217_s1 + $0x6] ss:$0 sm:$0xff] }
  0xa4   : >> { %v611_v23 = vadd.f32 %v607_v17, %v578_v18 }
  0xa5   : >> { %951 = vperm.xlu2 %4534, %v475_v19   ;;  %946 = vperm.xlu1 %4533, %v474_v20  }
  0xa6   : >> { %928 = vperm.xlu0 %4532, %v453_v22  }
  0xa7   : >> { %v4859_v25 = vpop.permute.xlu2 %682  ;;  %v594_v26 = vpop.permute.xlu1 %593 }
  0xa8   : >> { %v606_v27 = vmul.f32 %v4834_v53, %v594_v26  ;;  %v589_v28 = vpop.permute.xlu0 %588  ;;  %v703_v59 = vmul.f32 %v4883_v52, %v4859_v25 }
  0xa9   : >> { %v605_v29 = vmul.f32 %v4834_v53, %v589_v28  ;;  %v454_v28 = vld [vmem:[%s4773_s12 + $0x62] sm:$0xff] }
  0xaa   : >> { %v610_v31 = vadd.f32 %v606_v27, %v577_v21 }
  0xab   : >> { %v609_v34 = vadd.f32 %v605_v29, %v576_v8  ;;  %v433_v29 = vld [vmem:[%s4773_s12 + $0x79] sm:$0xf] }
  0xac   : >> { %v643_v36 = vadd.f32 %v639_v30, %v610_v31  ;;  %v432_v31 = vld [vmem:[%s4773_s12 + $0x71] sm:$0xff] }
  0xad   : >> { %979 = vperm.xlu2 %4534, %v498_v32   ;;  %961 = vperm.xlu1 %4533, %v477_v33   ;;  %v4919_v33 = vld [vmem:[%s6217_s1 + $0x7] ss:$0 sm:$0xff] }
  0xae   : >> { %956 = vperm.xlu0 %4532, %v476_v35  }
  0xaf   : >> { %v4872_v38 = vpop.permute.xlu2 %697  ;;  %v622_v39 = vpop.permute.xlu1 %621 }
  0xb0   : >> { %v638_v40 = vmul.f32 %v4857_v24, %v622_v39  ;;  %v617_v41 = vpop.permute.xlu0 %616  ;;  %v706_v8 = vmul.f32 %v4883_v52, %v4872_v38 }
  0xb1   : >> { %v637_v42 = vmul.f32 %v4857_v24, %v617_v41 }
  0xb2   : >> { %v642_v44 = vadd.f32 %v638_v40, %v609_v34 }
  0xb3   : >> { %v641_v47 = vadd.f32 %v637_v42, %v608_v63  ;;  %v1338_v42 = vmul.f32 %v4828_v51, %v4859_v25  ;;  %v4940_v25 = vld [vmem:[%s6217_s1 + $0x8] ss:$0 sm:$0xff] }
  0xb4   : >> { %v675_v50 = vadd.f32 %v671_v43, %v642_v44 }
  0xb5   : >> { %994 = vperm.xlu2 %4534, %v501_v45   ;;  %989 = vperm.xlu1 %4533, %v500_v46  }
  0xb6   : >> { %984 = vperm.xlu0 %4532, %v499_v48  }
  0xb7   : >> { %v726_v54 = vpop.permute.xlu2 %725  ;;  %v650_v55 = vpop.permute.xlu1 %649 }
  0xb8   : >> { %v670_v56 = vmul.f32 %v4870_v37, %v650_v55  ;;  %v632_v57 = vpop.permute.xlu0 %631  ;;  %v1348_v18 = vmul.f32 %v4822_v49, %v726_v54 }
  0xb9   : >> { %v640_v58 = vmul.f32 %v4857_v24, %v632_v57  ;;  %v455_v57 = vld [vmem:[%s4773_s12 + $0x6a] sm:$0xff] }
  0xba   : >> { %v674_v60 = vadd.f32 %v670_v56, %v641_v47 }
  0xbb   : >> { %v644_v63 = vadd.f32 %v640_v58, %v611_v23  ;;  %v738_v23 = vmul.f32 %v4902_v15, %v726_v54  ;;  %v456_v54 = vld [vmem:[%s4773_s12 + $0x72] sm:$0xff] }
  0xbc   : >> { %v707_v2 = vadd.f32 %v703_v59, %v674_v60 }
  0xbd   : >> { %1022 = vperm.xlu2 %4534, %v408_v61   ;;  %1017 = vperm.xlu1 %4533, %v407_v62  }
  0xbe   : >> { %1012 = vperm.xlu0 %4532, %v406_v1  }
  0xbf   : >> { %v754_v3 = vpop.permute.xlu2 %753  ;;  %v665_v4 = vpop.permute.xlu1 %664 }
  0xc0   : >> { %v673_v5 = vmul.f32 %v4870_v37, %v665_v4  ;;  %v660_v6 = vpop.permute.xlu0 %659  ;;  %v770_v45 = vmul.f32 %v4919_v33, %v754_v3  ;;  %v1355_v46 = vmul.f32 %v4834_v53, %v754_v3 }
  0xc1   : >> { %v672_v7 = vmul.f32 %v4870_v37, %v660_v6 }
  0xc2   : >> { %v677_v9 = vadd.f32 %v673_v5, %v644_v63 }
  0xc3   : >> { %v676_v12 = vadd.f32 %v672_v7, %v643_v36 }
  0xc4   : >> { %v710_v14 = vadd.f32 %v706_v8, %v677_v9  ;;  %v480_v9 = vld [vmem:[%s4773_s12 + $0x73] sm:$0xff] }
  0xc5   : >> { %1050 = vperm.xlu2 %4534, %v431_v10   ;;  %1045 = vperm.xlu1 %4533, %v430_v11   ;;  %v479_v10 = vld [vmem:[%s4773_s12 + $0x6b] sm:$0xff] }
  0xc6   : >> { %1027 = vperm.xlu0 %4532, %v409_v13   ;;  %v478_v13 = vld [vmem:[%s4773_s12 + $0x63] sm:$0xff] }
  0xc7   : >> { %v782_v16 = vpop.permute.xlu2 %781  ;;  %v693_v17 = vpop.permute.xlu1 %692 }
  0xc8   : >> { %v705_v19 = vmul.f32 %v4883_v52, %v693_v17  ;;  %v1340_v20 = vmul.f32 %v4828_v51, %v693_v17  ;;  %v688_v21 = vpop.permute.xlu0 %687  ;;  %v802_v5 = vmul.f32 %v4940_v25, %v782_v16  ;;  %v1362_v6 = vmul.f32 %v4857_v24, %v782_v16 }
  0xc9   : >> { %v704_v22 = vmul.f32 %v4883_v52, %v688_v21  ;;  %v1339_v36 = vmul.f32 %v4828_v51, %v688_v21 }
  0xca   : >> { %v709_v26 = vadd.f32 %v705_v19, %v676_v12  ;;  %v4909_v27 = vadd.f32 %v1348_v18, %v1340_v20 }
  0xcb   : >> { %v708_v30 = vadd.f32 %v704_v22, %v675_v50  ;;  %v457_v50 = vld [vmem:[%s4773_s12 + $0x7a] sm:$0xf] }
  0xcc   : >> { %v4914_v32 = vadd.f32 %v738_v23, %v709_v26 }
  0xcd   : >> { %1078 = vperm.xlu2 %4534, %v454_v28   ;;  %1060 = vperm.xlu1 %4533, %v433_v29   ;;  %v503_v28 = vld [vmem:[%s4773_s12 + $0x6c] sm:$0xff]  ;;  %v502_v29 = vld [vmem:[%s4773_s12 + $0x64] sm:$0xff] }
  0xce   : >> { %1055 = vperm.xlu0 %4532, %v432_v31  }
  0xcf   : >> { %v797_v34 = vpop.permute.xlu2 %796  ;;  %v721_v35 = vpop.permute.xlu1 %720 }
  0xd0   : >> { %v737_v39 = vmul.f32 %v4902_v15, %v721_v35  ;;  %v1347_v40 = vmul.f32 %v4822_v49, %v721_v35  ;;  %v716_v41 = vpop.permute.xlu0 %715  ;;  %v805_v21 = vmul.f32 %v4940_v25, %v797_v34  ;;  %v1365_v22 = vmul.f32 %v4857_v24, %v797_v34  ;;  %v481_v35 = vld [vmem:[%s4773_s12 + $0x7b] sm:$0xf] }
  0xd1   : >> { %v736_v43 = vmul.f32 %v4902_v15, %v716_v41  ;;  %v1346_v44 = vmul.f32 %v4822_v49, %v716_v41 }
  0xd2   : >> { %v741_v47 = vadd.f32 %v737_v39, %v708_v30  ;;  %v1351_v48 = vadd.f32 %v1347_v40, %v1339_v36 }
  0xd3   : >> { %v740_v55 = vadd.f32 %v736_v43, %v707_v2  ;;  %v1350_v56 = vadd.f32 %v1346_v44, %v1338_v42  ;;  %v1341_v2 = vmul.f32 %v4828_v51, %v4872_v38 }
  0xd4   : >> { %v4933_v58 = vadd.f32 %v770_v45, %v741_v47  ;;  %v4935_v59 = vadd.f32 %v1355_v46, %v1351_v48  ;;  %v410_v48 = vld [vmem:[%s4773_s12 + $0x80] sm:$0xff] }
  0xd5   : >> { %1093 = vperm.xlu2 %4534, %v457_v50   ;;  %1088 = vperm.xlu1 %4533, %v456_v54   ;;  %v505_v50 = vld [vmem:[%s4773_s12 + $0x7c] sm:$0xf] }
  0xd6   : >> { %1083 = vperm.xlu0 %4532, %v455_v57  }
  0xd7   : >> { %v825_v60 = vpop.permute.xlu2 %824  ;;  %v749_v61 = vpop.permute.xlu1 %748 }
  0xd8   : >> { %v769_v62 = vmul.f32 %v4919_v33, %v749_v61  ;;  %v1354_v63 = vmul.f32 %v4834_v53, %v749_v61  ;;  %v731_v1 = vpop.permute.xlu0 %730  ;;  %v1372_v45 = vmul.f32 %v4870_v37, %v825_v60 }
  0xd9   : >> { %v739_v3 = vmul.f32 %v4902_v15, %v731_v1  ;;  %v1349_v4 = vmul.f32 %v4822_v49, %v731_v1 }
  0xda   : >> { %v773_v7 = vadd.f32 %v769_v62, %v740_v55  ;;  %v1358_v8 = vadd.f32 %v1354_v63, %v1350_v56  ;;  %v504_v56 = vld [vmem:[%s4773_s12 + $0x74] sm:$0xff] }
  0xdb   : >> { %v743_v11 = vadd.f32 %v739_v3, %v710_v14  ;;  %v1353_v12 = vadd.f32 %v1349_v4, %v1341_v2 }
  0xdc   : >> { %v806_v17 = vadd.f32 %v802_v5, %v773_v7  ;;  %v1366_v18 = vadd.f32 %v1362_v6, %v1358_v8  ;;  %v413_v7 = vld [vmem:[%s4773_s12 + $0x98] sm:$0xf]  ;;  %v412_v8 = vld [vmem:[%s4773_s12 + $0x90] sm:$0xff] }
  0xdd   : >> { %1121 = vperm.xlu2 %4534, %v480_v9   ;;  %1116 = vperm.xlu1 %4533, %v479_v10  }
  0xde   : >> { %1111 = vperm.xlu0 %4532, %v478_v13  }
  0xdf   : >> { %v853_v49 = vpop.permute.xlu2 %852  ;;  %v764_v51 = vpop.permute.xlu1 %763 }
  0xe0   : >> { %v772_v38 = vmul.f32 %v4919_v33, %v764_v51  ;;  %v1357_v16 = vmul.f32 %v4834_v53, %v764_v51  ;;  %v759_v19 = vpop.permute.xlu0 %758  ;;  %v1379_v4 = vmul.f32 %v4883_v52, %v853_v49  ;;  %v5001_v51 = vld [vmem:[%s6217_s1 + $0xb] ss:$0 sm:$0xff] }
  0xe1   : >> { %v771_v20 = vmul.f32 %v4919_v33, %v759_v19  ;;  %v1356_v14 = vmul.f32 %v4834_v53, %v759_v19  ;;  %v4971_v53 = vld [vmem:[%s6217_s1 + $0x9] ss:$0 sm:$0xff] }
  0xe2   : >> { %v776_v23 = vadd.f32 %v772_v38, %v743_v11  ;;  %v1361_v26 = vadd.f32 %v1357_v16, %v1353_v12  ;;  %v837_v44 = vmul.f32 %v4971_v53, %v825_v60  ;;  %v411_v11 = vld [vmem:[%s4773_s12 + $0x88] sm:$0xff] }
  0xe3   : >> { %v775_v30 = vadd.f32 %v771_v20, %v4914_v32  ;;  %v1360_v31 = vadd.f32 %v1356_v14, %v4909_v27 }
  0xe4   : >> { %v4964_v36 = vadd.f32 %v805_v21, %v776_v23  ;;  %v4966_v39 = vadd.f32 %v1365_v22, %v1361_v26  ;;  %v436_v26 = vld [vmem:[%s4773_s12 + $0x91] sm:$0xff] }
  0xe5   : >> { %1149 = vperm.xlu2 %4534, %v503_v28   ;;  %1144 = vperm.xlu1 %4533, %v502_v29   ;;  %v435_v28 = vld [vmem:[%s4773_s12 + $0x89] sm:$0xff] }
  0xe6   : >> { %1126 = vperm.xlu0 %4532, %v481_v35  }
  0xe7   : >> { %v881_v34 = vpop.permute.xlu2 %880  ;;  %v792_v32 = vpop.permute.xlu1 %791 }
  0xe8   : >> { %v804_v27 = vmul.f32 %v4940_v25, %v792_v32  ;;  %v1364_v40 = vmul.f32 %v4857_v24, %v792_v32  ;;  %v787_v41 = vpop.permute.xlu0 %786  ;;  %v901_v14 = vmul.f32 %v5001_v51, %v881_v34  ;;  %v1386_v21 = vmul.f32 %v4902_v15, %v881_v34 }
  0xe9   : >> { %v803_v42 = vmul.f32 %v4940_v25, %v787_v41  ;;  %v1363_v43 = vmul.f32 %v4857_v24, %v787_v41  ;;  %v4987_v24 = vld [vmem:[%s6217_s1 + $0xa] ss:$0 sm:$0xff] }
  0xea   : >> { %v808_v46 = vadd.f32 %v804_v27, %v775_v30  ;;  %v1368_v47 = vadd.f32 %v1364_v40, %v1360_v31  ;;  %v869_v3 = vmul.f32 %v4987_v24, %v853_v49  ;;  %v434_v31 = vld [vmem:[%s4773_s12 + $0x81] sm:$0xff] }
  0xeb   : >> { %v807_v54 = vadd.f32 %v803_v42, %v4933_v58  ;;  %v1367_v55 = vadd.f32 %v1363_v43, %v4935_v59 }
  0xec   : >> { %v841_v57 = vadd.f32 %v837_v44, %v808_v46  ;;  %v1376_v61 = vadd.f32 %v1372_v45, %v1368_v47  ;;  %v459_v46 = vld [vmem:[%s4773_s12 + $0x8a] sm:$0xff]  ;;  %v458_v47 = vld [vmem:[%s4773_s12 + $0x82] sm:$0xff] }
  0xed   : >> { %1177 = vperm.xlu2 %4534, %v410_v48   ;;  %1159 = vperm.xlu1 %4533, %v505_v50  }
  0xee   : >> { %1154 = vperm.xlu0 %4532, %v504_v56  }
  0xef   : >> { %v896_v60 = vpop.permute.xlu2 %895  ;;  %v820_v62 = vpop.permute.xlu1 %819 }
  0xf0   : >> { %v836_v58 = vmul.f32 %v4971_v53, %v820_v62  ;;  %v1371_v59 = vmul.f32 %v4870_v37, %v820_v62  ;;  %v815_v63 = vpop.permute.xlu0 %814  ;;  %v904_v42 = vmul.f32 %v5001_v51, %v896_v60  ;;  %v1389_v43 = vmul.f32 %v4902_v15, %v896_v60 }
  0xf1   : >> { %v835_v1 = vmul.f32 %v4971_v53, %v815_v63  ;;  %v1370_v2 = vmul.f32 %v4870_v37, %v815_v63 }
  0xf2   : >> { %v840_v5 = vadd.f32 %v836_v58, %v807_v54  ;;  %v1375_v6 = vadd.f32 %v1371_v59, %v1367_v55  ;;  %v437_v54 = vld [vmem:[%s4773_s12 + $0x99] sm:$0xf] }
  0xf3   : >> { %v839_v9 = vadd.f32 %v835_v1, %v806_v17  ;;  %v1374_v10 = vadd.f32 %v1370_v2, %v1366_v18 }
  0xf4   : >> { %v873_v12 = vadd.f32 %v869_v3, %v840_v5  ;;  %v1383_v13 = vadd.f32 %v1379_v4, %v1375_v6  ;;  %v482_v5 = vld [vmem:[%s4773_s12 + $0x83] sm:$0xff]  ;;  %v461_v6 = vld [vmem:[%s4773_s12 + $0x9a] sm:$0xf] }
  0xf5   : >> { %1192 = vperm.xlu2 %4534, %v413_v7   ;;  %1187 = vperm.xlu1 %4533, %v412_v8  }
  0xf6   : >> { %1182 = vperm.xlu0 %4532, %v411_v11  }
  0xf7   : >> { %v924_v49 = vpop.permute.xlu2 %923  ;;  %v848_v38 = vpop.permute.xlu1 %847 }
  0xf8   : >> { %v868_v16 = vmul.f32 %v4987_v24, %v848_v38  ;;  %v1378_v17 = vmul.f32 %v4883_v52, %v848_v38  ;;  %v830_v18 = vpop.permute.xlu0 %829  ;;  %v1396_v2 = vmul.f32 %v4919_v33, %v924_v49 }
  0xf9   : >> { %v838_v19 = vmul.f32 %v4971_v53, %v830_v18  ;;  %v1373_v20 = vmul.f32 %v4870_v37, %v830_v18 }
  0xfa   : >> { %v872_v22 = vadd.f32 %v868_v16, %v839_v9  ;;  %v1382_v23 = vadd.f32 %v1378_v17, %v1374_v10  ;;  %v460_v9 = vld [vmem:[%s4773_s12 + $0x92] sm:$0xff] }
  0xfb   : >> { %v842_v29 = vadd.f32 %v838_v19, %v4964_v36  ;;  %v1377_v30 = vadd.f32 %v1373_v20, %v4966_v39 }
  0xfc   : >> { %v905_v35 = vadd.f32 %v901_v14, %v872_v22  ;;  %v1390_v32 = vadd.f32 %v1386_v21, %v1382_v23  ;;  %v485_v22 = vld [vmem:[%s4773_s12 + $0x9b] sm:$0xf]  ;;  %v484_v23 = vld [vmem:[%s4773_s12 + $0x93] sm:$0xff] }
  0xfd   : >> { %1220 = vperm.xlu2 %4534, %v436_v26   ;;  %1215 = vperm.xlu1 %4533, %v435_v28  }
  0xfe   : >> { %1210 = vperm.xlu0 %4532, %v434_v31  }
  0xff   : >> { %v952_v37 = vpop.permute.xlu2 %951  ;;  %v863_v27 = vpop.permute.xlu1 %862 }
 0x100   : >> { %v871_v34 = vmul.f32 %v4987_v24, %v863_v27  ;;  %v1381_v40 = vmul.f32 %v4883_v52, %v863_v27  ;;  %v858_v41 = vpop.permute.xlu0 %857  ;;  %v1403_v20 = vmul.f32 %v4940_v25, %v952_v37  ;;  %v5058_v27 = vld [vmem:[%s6217_s1 + $0xe] ss:$0 sm:$0xff] }
 0x101   : >> { %v870_v36 = vmul.f32 %v4987_v24, %v858_v41  ;;  %v1380_v39 = vmul.f32 %v4883_v52, %v858_v41  ;;  %v5030_v52 = vld [vmem:[%s6217_s1 + $0xc] ss:$0 sm:$0xff] }
 0x102   : >> { %v875_v44 = vadd.f32 %v871_v34, %v842_v29  ;;  %v1385_v45 = vadd.f32 %v1381_v40, %v1377_v30  ;;  %v936_v1 = vmul.f32 %v5030_v52, %v924_v49  ;;  %v483_v29 = vld [vmem:[%s4773_s12 + $0x8b] sm:$0xff] }
 0x103   : >> { %v874_v48 = vadd.f32 %v870_v36, %v841_v57  ;;  %v1384_v50 = vadd.f32 %v1380_v39, %v1376_v61 }
 0x104   : >> { %v5023_v55 = vadd.f32 %v904_v42, %v875_v44  ;;  %v5025_v56 = vadd.f32 %v1389_v43, %v1385_v45  ;;  %v508_v45 = vld [vmem:[%s4773_s12 + $0x94] sm:$0xff] }
 0x105   : >> { %1248 = vperm.xlu2 %4534, %v459_v46   ;;  %1243 = vperm.xlu1 %4533, %v458_v47   ;;  %v507_v46 = vld [vmem:[%s4773_s12 + $0x8c] sm:$0xff] }
 0x106   : >> { %1225 = vperm.xlu0 %4532, %v437_v54  }
 0x107   : >> { %v980_v60 = vpop.permute.xlu2 %979  ;;  %v891_v62 = vpop.permute.xlu1 %890 }
 0x108   : >> { %v903_v57 = vmul.f32 %v5001_v51, %v891_v62  ;;  %v1388_v61 = vmul.f32 %v4902_v15, %v891_v62  ;;  %v886_v58 = vpop.permute.xlu0 %885  ;;  %v1000_v39 = vmul.f32 %v5058_v27, %v980_v60  ;;  %v1410_v42 = vmul.f32 %v4971_v53, %v980_v60 }
 0x109   : >> { %v902_v59 = vmul.f32 %v5001_v51, %v886_v58  ;;  %v1387_v63 = vmul.f32 %v4902_v15, %v886_v58  ;;  %v5044_v15 = vld [vmem:[%s6217_s1 + $0xd] ss:$0 sm:$0xff] }
 0x10a   : >> { %v907_v3 = vadd.f32 %v903_v57, %v874_v48  ;;  %v1392_v4 = vadd.f32 %v1388_v61, %v1384_v50  ;;  %v968_v19 = vmul.f32 %v5044_v15, %v952_v37  ;;  %v506_v50 = vld [vmem:[%s4773_s12 + $0x84] sm:$0xff] }
 0x10b   : >> { %v906_v7 = vadd.f32 %v902_v59, %v873_v12  ;;  %v1391_v8 = vadd.f32 %v1387_v63, %v1383_v13 }
 0x10c   : >> { %v940_v10 = vadd.f32 %v936_v1, %v907_v3  ;;  %v1400_v11 = vadd.f32 %v1396_v2, %v1392_v4  ;;  %v415_v3 = vld [vmem:[%s4773_s12 + $0xa8] sm:$0xff]  ;;  %v414_v4 = vld [vmem:[%s4773_s12 + $0xa0] sm:$0xff] }
 0x10d   : >> { %1276 = vperm.xlu2 %4534, %v482_v5   ;;  %1258 = vperm.xlu1 %4533, %v461_v6  }
 0x10e   : >> { %1253 = vperm.xlu0 %4532, %v460_v9  }
 0x10f   : >> { %v995_v49 = vpop.permute.xlu2 %994  ;;  %v919_v38 = vpop.permute.xlu1 %918 }
 0x110   : >> { %v935_v16 = vmul.f32 %v5030_v52, %v919_v38  ;;  %v1395_v12 = vmul.f32 %v4919_v33, %v919_v38  ;;  %v914_v13 = vpop.permute.xlu0 %913  ;;  %v1003_v59 = vmul.f32 %v5058_v27, %v995_v49  ;;  %v1413_v63 = vmul.f32 %v4971_v53, %v995_v49 }
 0x111   : >> { %v934_v17 = vmul.f32 %v5030_v52, %v914_v13  ;;  %v1394_v18 = vmul.f32 %v4919_v33, %v914_v13 }
 0x112   : >> { %v939_v14 = vadd.f32 %v935_v16, %v906_v7  ;;  %v1399_v21 = vadd.f32 %v1395_v12, %v1391_v8  ;;  %v509_v7 = vld [vmem:[%s4773_s12 + $0x9c] sm:$0xf] }
 0x113   : >> { %v938_v26 = vadd.f32 %v934_v17, %v905_v35  ;;  %v1398_v28 = vadd.f32 %v1394_v18, %v1390_v32 }
 0x114   : >> { %v972_v30 = vadd.f32 %v968_v19, %v939_v14  ;;  %v1407_v31 = vadd.f32 %v1403_v20, %v1399_v21  ;;  %v438_v14 = vld [vmem:[%s4773_s12 + $0xa1] sm:$0xff]  ;;  %v417_v21 = vld [vmem:[%s4773_s12 + $0xb8] sm:$0xf] }
 0x115   : >> { %1291 = vperm.xlu2 %4534, %v485_v22   ;;  %1286 = vperm.xlu1 %4533, %v484_v23  }
 0x116   : >> { %1281 = vperm.xlu0 %4532, %v483_v29  }
 0x117   : >> { %v1023_v37 = vpop.permute.xlu2 %1022  ;;  %v947_v34 = vpop.permute.xlu1 %946 }
 0x118   : >> { %v967_v40 = vmul.f32 %v5044_v15, %v947_v34  ;;  %v1402_v35 = vmul.f32 %v4940_v25, %v947_v34  ;;  %v929_v32 = vpop.permute.xlu0 %928  ;;  %v1420_v18 = vmul.f32 %v4987_v24, %v1023_v37 }
 0x119   : >> { %v937_v41 = vmul.f32 %v5030_v52, %v929_v32  ;;  %v1397_v36 = vmul.f32 %v4919_v33, %v929_v32 }
 0x11a   : >> { %v971_v43 = vadd.f32 %v967_v40, %v938_v26  ;;  %v1406_v44 = vadd.f32 %v1402_v35, %v1398_v28  ;;  %v416_v26 = vld [vmem:[%s4773_s12 + $0xb0] sm:$0xff] }
 0x11b   : >> { %v941_v47 = vadd.f32 %v937_v41, %v5023_v55  ;;  %v1401_v48 = vadd.f32 %v1397_v36, %v5025_v56 }
 0x11c   : >> { %v1004_v54 = vadd.f32 %v1000_v39, %v971_v43  ;;  %v1414_v62 = vadd.f32 %v1410_v42, %v1406_v44  ;;  %v441_v43 = vld [vmem:[%s4773_s12 + $0xb9] sm:$0xf]  ;;  %v440_v44 = vld [vmem:[%s4773_s12 + $0xb1] sm:$0xff] }
 0x11d   : >> { %1319 = vperm.xlu2 %4534, %v508_v45   ;;  %1314 = vperm.xlu1 %4533, %v507_v46  }
 0x11e   : >> { %1309 = vperm.xlu0 %4532, %v506_v50  }
 0x11f   : >> { %v1051_v33 = vpop.permute.xlu2 %1050  ;;  %v962_v57 = vpop.permute.xlu1 %961 }
 0x120   : >> { %v970_v60 = vmul.f32 %v5044_v15, %v962_v57  ;;  %v1405_v61 = vmul.f32 %v4940_v25, %v962_v57  ;;  %v957_v58 = vpop.permute.xlu0 %956  ;;  %v1427_v36 = vmul.f32 %v5001_v51, %v1051_v33  ;;  %v5115_v57 = vld [vmem:[%s6217_s1 + $0x11] ss:$0 sm:$0xff] }
 0x121   : >> { %v969_v55 = vmul.f32 %v5044_v15, %v957_v58  ;;  %v1404_v56 = vmul.f32 %v4940_v25, %v957_v58  ;;  %v5087_v25 = vld [vmem:[%s6217_s1 + $0xf] ss:$0 sm:$0xff] }
 0x122   : >> { %v974_v1 = vadd.f32 %v970_v60, %v941_v47  ;;  %v1409_v2 = vadd.f32 %v1405_v61, %v1401_v48  ;;  %v1035_v17 = vmul.f32 %v5087_v25, %v1023_v37  ;;  %v439_v47 = vld [vmem:[%s4773_s12 + $0xa9] sm:$0xff] }
 0x123   : >> { %v973_v5 = vadd.f32 %v969_v55, %v940_v10  ;;  %v1408_v6 = vadd.f32 %v1404_v56, %v1400_v11 }
 0x124   : >> { %v5080_v8 = vadd.f32 %v1003_v59, %v974_v1  ;;  %v5082_v9 = vadd.f32 %v1413_v63, %v1409_v2  ;;  %v464_v2 = vld [vmem:[%s4773_s12 + $0xb2] sm:$0xff] }
 0x125   : >> { %1505 = vperm.xlu2 %4534, %v415_v3   ;;  %1500 = vperm.xlu1 %4533, %v414_v4   ;;  %v463_v3 = vld [vmem:[%s4773_s12 + $0xaa] sm:$0xff] }
 0x126   : >> { %1324 = vperm.xlu0 %4532, %v509_v7  }
 0x127   : >> { %v1079_v49 = vpop.permute.xlu2 %1078  ;;  %v990_v38 = vpop.permute.xlu1 %989 }
 0x128   : >> { %v1002_v10 = vmul.f32 %v5058_v27, %v990_v38  ;;  %v1412_v11 = vmul.f32 %v4971_v53, %v990_v38  ;;  %v985_v16 = vpop.permute.xlu0 %984  ;;  %v1099_v56 = vmul.f32 %v5115_v57, %v1079_v49  ;;  %v1434_v59 = vmul.f32 %v5030_v52, %v1079_v49 }
 0x129   : >> { %v1001_v12 = vmul.f32 %v5058_v27, %v985_v16  ;;  %v1411_v13 = vmul.f32 %v4971_v53, %v985_v16  ;;  %v5101_v53 = vld [vmem:[%s6217_s1 + $0x10] ss:$0 sm:$0xff] }
 0x12a   : >> { %v1006_v19 = vadd.f32 %v1002_v10, %v973_v5  ;;  %v1416_v20 = vadd.f32 %v1412_v11, %v1408_v6  ;;  %v1067_v41 = vmul.f32 %v5101_v53, %v1051_v33  ;;  %v462_v6 = vld [vmem:[%s4773_s12 + $0xa2] sm:$0xff] }
 0x12b   : >> { %v1005_v22 = vadd.f32 %v1001_v12, %v972_v30  ;;  %v1415_v23 = vadd.f32 %v1411_v13, %v1407_v31 }
 0x12c   : >> { %v1039_v28 = vadd.f32 %v1035_v17, %v1006_v19  ;;  %v1424_v29 = vadd.f32 %v1420_v18, %v1416_v20  ;;  %v487_v19 = vld [vmem:[%s4773_s12 + $0xab] sm:$0xff]  ;;  %v486_v20 = vld [vmem:[%s4773_s12 + $0xa3] sm:$0xff] }
 0x12d   : >> { %1528 = vperm.xlu2 %4534, %v438_v14   ;;  %1515 = vperm.xlu1 %4533, %v417_v21  }
 0x12e   : >> { %1510 = vperm.xlu0 %4532, %v416_v26  }
 0x12f   : >> { %v1094_v37 = vpop.permute.xlu2 %1093  ;;  %v1018_v34 = vpop.permute.xlu1 %1017 }
 0x130   : >> { %v1034_v40 = vmul.f32 %v5087_v25, %v1018_v34  ;;  %v1419_v30 = vmul.f32 %v4987_v24, %v1018_v34  ;;  %v1013_v31 = vpop.permute.xlu0 %1012  ;;  %v1102_v12 = vmul.f32 %v5115_v57, %v1094_v37  ;;  %v1437_v13 = vmul.f32 %v5030_v52, %v1094_v37 }
 0x131   : >> { %v1033_v35 = vmul.f32 %v5087_v25, %v1013_v31  ;;  %v1418_v32 = vmul.f32 %v4987_v24, %v1013_v31 }
 0x132   : >> { %v1038_v39 = vadd.f32 %v1034_v40, %v1005_v22  ;;  %v1423_v42 = vadd.f32 %v1419_v30, %v1415_v23  ;;  %v465_v22 = vld [vmem:[%s4773_s12 + $0xba] sm:$0xf] }
 0x133   : >> { %v1037_v45 = vadd.f32 %v1033_v35, %v1004_v54  ;;  %v1422_v46 = vadd.f32 %v1418_v32, %v1414_v62 }
 0x134   : >> { %v1071_v48 = vadd.f32 %v1067_v41, %v1038_v39  ;;  %v1431_v50 = vadd.f32 %v1427_v36, %v1423_v42  ;;  %v510_v39 = vld [vmem:[%s4773_s12 + $0xa4] sm:$0xff]  ;;  %v489_v42 = vld [vmem:[%s4773_s12 + $0xbb] sm:$0xf] }
 0x135   : >> { %1543 = vperm.xlu2 %4534, %v441_v43   ;;  %1538 = vperm.xlu1 %4533, %v440_v44  }
 0x136   : >> { %1533 = vperm.xlu0 %4532, %v439_v47  }
 0x137   : >> { %v1122_v33 = vpop.permute.xlu2 %1121  ;;  %v1046_v60 = vpop.permute.xlu1 %1045 }
 0x138   : >> { %v1066_v61 = vmul.f32 %v5101_v53, %v1046_v60  ;;  %v1426_v54 = vmul.f32 %v5001_v51, %v1046_v60  ;;  %v1028_v62 = vpop.permute.xlu0 %1027  ;;  %v1444_v32 = vmul.f32 %v5044_v15, %v1122_v33 }
 0x139   : >> { %v1036_v58 = vmul.f32 %v5087_v25, %v1028_v62  ;;  %v1421_v55 = vmul.f32 %v4987_v24, %v1028_v62 }
 0x13a   : >> { %v1070_v63 = vadd.f32 %v1066_v61, %v1037_v45  ;;  %v1430_v1 = vadd.f32 %v1426_v54, %v1422_v46  ;;  %v488_v45 = vld [vmem:[%s4773_s12 + $0xb3] sm:$0xff] }
 0x13b   : >> { %v1040_v4 = vadd.f32 %v1036_v58, %v5080_v8  ;;  %v1425_v5 = vadd.f32 %v1421_v55, %v5082_v9 }
 0x13c   : >> { %v1103_v7 = vadd.f32 %v1099_v56, %v1070_v63  ;;  %v1438_v38 = vadd.f32 %v1434_v59, %v1430_v1  ;;  %v513_v63 = vld [vmem:[%s4773_s12 + $0xbc] sm:$0xf]  ;;  %v512_v1 = vld [vmem:[%s4773_s12 + $0xb4] sm:$0xff] }
 0x13d   : >> { %1566 = vperm.xlu2 %4534, %v464_v2   ;;  %1561 = vperm.xlu1 %4533, %v463_v3  }
 0x13e   : >> { %1556 = vperm.xlu0 %4532, %v462_v6  }
 0x13f   : >> { %v1150_v24 = vpop.permute.xlu2 %1149  ;;  %v1061_v10 = vpop.permute.xlu1 %1060 }
 0x140   : >> { %v1069_v49 = vmul.f32 %v5101_v53, %v1061_v10  ;;  %v1429_v11 = vmul.f32 %v5001_v51, %v1061_v10  ;;  %v1056_v16 = vpop.permute.xlu0 %1055  ;;  %v1451_v55 = vmul.f32 %v5058_v27, %v1150_v24  ;;  %v5168_v10 = vld [vmem:[%s6217_s1 + $0x14] ss:$0 sm:$0xff] }
 0x141   : >> { %v1068_v8 = vmul.f32 %v5101_v53, %v1056_v16  ;;  %v1428_v9 = vmul.f32 %v5001_v51, %v1056_v16  ;;  %v5140_v51 = vld [vmem:[%s6217_s1 + $0x12] ss:$0 sm:$0xff] }
 0x142   : >> { %v1073_v17 = vadd.f32 %v1069_v49, %v1040_v4  ;;  %v1433_v18 = vadd.f32 %v1429_v11, %v1425_v5  ;;  %v1134_v35 = vmul.f32 %v5140_v51, %v1122_v33  ;;  %v511_v4 = vld [vmem:[%s4773_s12 + $0xac] sm:$0xff] }
 0x143   : >> { %v1072_v14 = vadd.f32 %v1068_v8, %v1039_v28  ;;  %v1432_v21 = vadd.f32 %v1428_v9, %v1424_v29 }
 0x144   : >> { %v1106_v23 = vadd.f32 %v1102_v12, %v1073_v17  ;;  %v1441_v26 = vadd.f32 %v1437_v13, %v1433_v18 }
 0x145   : >> { %1589 = vperm.xlu2 %4534, %v487_v19   ;;  %1584 = vperm.xlu1 %4533, %v486_v20  }
 0x146   : >> { %1571 = vperm.xlu0 %4532, %v465_v22  }
 0x147   : >> { %v1178_v37 = vpop.permute.xlu2 %1177  ;;  %v1089_v34 = vpop.permute.xlu1 %1088 }
 0x148   : >> { %v1101_v40 = vmul.f32 %v5115_v57, %v1089_v34  ;;  %v1436_v28 = vmul.f32 %v5030_v52, %v1089_v34  ;;  %v1084_v29 = vpop.permute.xlu0 %1083  ;;  %v1198_v9 = vmul.f32 %v5168_v10, %v1178_v37  ;;  %v1458_v12 = vmul.f32 %v5087_v25, %v1178_v37 }
 0x149   : >> { %v1100_v30 = vmul.f32 %v5115_v57, %v1084_v29  ;;  %v1435_v31 = vmul.f32 %v5030_v52, %v1084_v29  ;;  %v5154_v52 = vld [vmem:[%s6217_s1 + $0x13] ss:$0 sm:$0xff] }
 0x14a   : >> { %v1105_v41 = vadd.f32 %v1101_v40, %v1072_v14  ;;  %v1440_v36 = vadd.f32 %v1436_v28, %v1432_v21  ;;  %v1166_v58 = vmul.f32 %v5154_v52, %v1150_v24 }
 0x14b   : >> { %v1104_v43 = vadd.f32 %v1100_v30, %v1071_v48  ;;  %v1439_v44 = vadd.f32 %v1435_v31, %v1431_v50 }
 0x14c   : >> { %v1138_v46 = vadd.f32 %v1134_v35, %v1105_v41  ;;  %v1448_v47 = vadd.f32 %v1444_v32, %v1440_v36  ;;  %v5189_v36 = vld [vmem:[%s6217_s1 + $0x15] ss:$0 sm:$0xff] }
 0x14d   : >> { %1612 = vperm.xlu2 %4534, %v510_v39   ;;  %1599 = vperm.xlu1 %4533, %v489_v42  }
 0x14e   : >> { %1594 = vperm.xlu0 %4532, %v488_v45  }
 0x14f   : >> { %v1193_v33 = vpop.permute.xlu2 %1192  ;;  %v1117_v60 = vpop.permute.xlu1 %1116 }
 0x150   : >> { %v1133_v61 = vmul.f32 %v5140_v51, %v1117_v60  ;;  %v1443_v48 = vmul.f32 %v5044_v15, %v1117_v60  ;;  %v1112_v50 = vpop.permute.xlu0 %1111  ;;  %v1201_v37 = vmul.f32 %v5168_v10, %v1193_v33  ;;  %v1461_v30 = vmul.f32 %v5087_v25, %v1193_v33 }
 0x151   : >> { %v1132_v54 = vmul.f32 %v5140_v51, %v1112_v50  ;;  %v1442_v62 = vmul.f32 %v5044_v15, %v1112_v50 }
 0x152   : >> { %v1137_v56 = vadd.f32 %v1133_v61, %v1104_v43  ;;  %v1447_v59 = vadd.f32 %v1443_v48, %v1439_v44 }
 0x153   : >> { %v1136_v2 = vadd.f32 %v1132_v54, %v1103_v7  ;;  %v1446_v3 = vadd.f32 %v1442_v62, %v1438_v38 }
 0x154   : >> { %v1170_v5 = vadd.f32 %v1166_v58, %v1137_v56  ;;  %v1455_v6 = vadd.f32 %v1451_v55, %v1447_v59  ;;  %v5204_v58 = vld [vmem:[%s6217_s1 + $0x16] ss:$0 sm:$0xff] }
 0x155   : >> { %1627 = vperm.xlu2 %4534, %v513_v63   ;;  %1622 = vperm.xlu1 %4533, %v512_v1  }
 0x156   : >> { %1617 = vperm.xlu0 %4532, %v511_v4  }
 0x157   : >> { %v1221_v49 = vpop.permute.xlu2 %1220  ;;  %v1145_v11 = vpop.permute.xlu1 %1144 }
 0x158   : >> { %v1165_v24 = vmul.f32 %v5154_v52, %v1145_v11  ;;  %v1450_v16 = vmul.f32 %v5058_v27, %v1145_v11  ;;  %v1127_v8 = vpop.permute.xlu0 %1126  ;;  %v1468_v33 = vmul.f32 %v5101_v53, %v1221_v49 }
 0x159   : >> { %v1135_v7 = vmul.f32 %v5140_v51, %v1127_v8  ;;  %v1445_v38 = vmul.f32 %v5044_v15, %v1127_v8 }
 0x15a   : >> { %v1169_v13 = vadd.f32 %v1165_v24, %v1136_v2  ;;  %v1454_v17 = vadd.f32 %v1450_v16, %v1446_v3 }
 0x15b   : >> { %v1139_v18 = vadd.f32 %v1135_v7, %v1106_v23  ;;  %v1449_v19 = vadd.f32 %v1445_v38, %v1441_v26 }
 0x15c   : >> { %v1202_v20 = vadd.f32 %v1198_v9, %v1169_v13  ;;  %v5176_v14 = vadd.f32 %v1458_v12, %v1454_v17 }
 0x15f   : >> { %v1249_v21 = vpop.permute.xlu2 %1248  ;;  %v1160_v22 = vpop.permute.xlu1 %1159 }
 0x160   : >> { %v1168_v34 = vmul.f32 %v5154_v52, %v1160_v22  ;;  %v1453_v40 = vmul.f32 %v5058_v27, %v1160_v22  ;;  %v1155_v28 = vpop.permute.xlu0 %1154  ;;  %v1265_v2 = vmul.f32 %v5204_v58, %v1249_v21  ;;  %v1475_v3 = vmul.f32 %v5115_v57, %v1249_v21 }
 0x161   : >> { %v1167_v15 = vmul.f32 %v5154_v52, %v1155_v28  ;;  %v1452_v29 = vmul.f32 %v5058_v27, %v1155_v28 }
 0x162   : >> { %v1172_v23 = vadd.f32 %v1168_v34, %v1139_v18  ;;  %v1457_v26 = vadd.f32 %v1453_v40, %v1449_v19 }
 0x163   : >> { %v1171_v31 = vadd.f32 %v1167_v15, %v1138_v46  ;;  %v1456_v35 = vadd.f32 %v1452_v29, %v1448_v47  ;;  %v1233_v47 = vmul.f32 %v5189_v36, %v1221_v49 }
 0x164   : >> { %v1205_v32 = vadd.f32 %v1201_v37, %v1172_v23  ;;  %v5184_v41 = vadd.f32 %v1461_v30, %v1457_v26 }
 0x167   : >> { %v5191_v39 = vpop.permute.xlu2 %1276  ;;  %v1188_v42 = vpop.permute.xlu1 %1187 }
 0x168   : >> { %v1200_v27 = vmul.f32 %v5168_v10, %v1188_v42  ;;  %v1460_v43 = vmul.f32 %v5087_v25, %v1188_v42  ;;  %v1183_v44 = vpop.permute.xlu0 %1182 }
 0x169   : >> { %v1199_v45 = vmul.f32 %v5168_v10, %v1183_v44  ;;  %v1459_v46 = vmul.f32 %v5087_v25, %v1183_v44 }
 0x16a   : >> { %v1204_v60 = vadd.f32 %v1200_v27, %v1171_v31  ;;  %v1464_v61 = vadd.f32 %v1460_v43, %v1456_v35  ;;  %v1482_v43 = vmul.f32 %v5140_v51, %v5191_v39 }
 0x16b   : >> { %v1203_v48 = vadd.f32 %v1199_v45, %v1170_v5  ;;  %v1463_v50 = vadd.f32 %v1459_v46, %v1455_v6 }
 0x16c   : >> { %v1237_v54 = vadd.f32 %v1233_v47, %v1204_v60  ;;  %v5199_v62 = vadd.f32 %v1468_v33, %v1464_v61 }
 0x16f   : >> { %v5206_v55 = vpop.permute.xlu2 %1291  ;;  %v1216_v56 = vpop.permute.xlu1 %1215 }
 0x170   : >> { %v1232_v25 = vmul.f32 %v5189_v36, %v1216_v56  ;;  %v1467_v59 = vmul.f32 %v5101_v53, %v1216_v56  ;;  %v1211_v63 = vpop.permute.xlu0 %1210 }
 0x171   : >> { %v1231_v1 = vmul.f32 %v5189_v36, %v1211_v63  ;;  %v1466_v23 = vmul.f32 %v5101_v53, %v1211_v63 }
 0x172   : >> { %v1236_v4 = vadd.f32 %v1232_v25, %v1203_v48  ;;  %v1471_v5 = vadd.f32 %v1467_v59, %v1463_v50  ;;  %v1485_v25 = vmul.f32 %v5140_v51, %v5206_v55 }
 0x173   : >> { %v1235_v6 = vadd.f32 %v1231_v1, %v1202_v20  ;;  %v1470_v35 = vadd.f32 %v1466_v23, %v5176_v14 }
 0x174   : >> { %v5213_v49 = vadd.f32 %v1265_v2, %v1236_v4  ;;  %v5215_v11 = vadd.f32 %v1475_v3, %v1471_v5  ;;  %v5267_v2 = vld [vmem:[%s6217_s1 + $0x18] ss:$0 sm:$0xff] }
 0x177   : >> { %v1244_v24 = vpop.permute.xlu1 %1243  ;;  %v5217_v8 = vpop.permute.xlu2 %1319 }
 0x178   : >> { %v1226_v16 = vpop.permute.xlu0 %1225  ;;  %v1474_v26 = vmul.f32 %v5115_v57, %v1244_v24  ;;  %v1264_v50 = vmul.f32 %v5204_v58, %v1244_v24 }
 0x179   : >> { %v1234_v7 = vmul.f32 %v5189_v36, %v1226_v16  ;;  %v1469_v44 = vmul.f32 %v5101_v53, %v1226_v16  ;;  %v5255_v53 = vld [vmem:[%s6217_s1 + $0x17] ss:$0 sm:$0xff] }
 0x17a   : >> { %v1478_v42 = vadd.f32 %v1474_v26, %v1470_v35  ;;  %v1268_v3 = vadd.f32 %v1264_v50, %v1235_v6 }
 0x17b   : >> { %v5220_v38 = vadd.f32 %v1234_v7, %v1205_v32  ;;  %v1473_v14 = vadd.f32 %v1469_v44, %v5184_v41  ;;  %v1297_v7 = vmul.f32 %v5255_v53, %v5191_v39 }
 0x17c   : >> { %v1486_v47 = vadd.f32 %v1482_v43, %v1478_v42 }
 0x17d   : >> { %v1301_v43 = vadd.f32 %v1297_v7, %v1268_v3 }
 0x17f   : >> { %v1259_v9 = vpop.permute.xlu1 %1258  ;;  %v5223_v17 = vpop.permute.xlu2 %1505 }
 0x180   : >> { %v1254_v12 = vpop.permute.xlu0 %1253  ;;  %v1477_v46 = vmul.f32 %v5115_v57, %v1259_v9  ;;  %v1267_v42 = vmul.f32 %v5204_v58, %v1259_v9  ;;  %v1643_v9 = vperm.slane %v4754_v0, 0 }
 0x181   : >> { %v1266_v13 = vmul.f32 %v5204_v58, %v1254_v12  ;;  %v1476_v59 = vmul.f32 %v5115_v57, %v1254_v12 }
 0x182   : >> { %v1271_v50 = vadd.f32 %v1267_v42, %v5220_v38 }
 0x183   : >> { %v5225_v18 = vadd.f32 %v1266_v13, %v1237_v54  ;;  %v1481_v54 = vadd.f32 %v1477_v46, %v1473_v14 }
 0x185   : >> { %v1489_v24 = vadd.f32 %v1485_v25, %v1481_v54 }
 0x187   : >> { %v5227_v19 = vpop.permute.xlu1 %1286  ;;  %v1529_v21 = vpop.permute.xlu2 %1528 }
 0x188   : >> { %v5229_v20 = vpop.permute.xlu0 %1281  ;;  %v1546_v63 = vmul.f32 %v5189_v36, %v1529_v21  ;;  %v1484_v5 = vmul.f32 %v5140_v51, %v5227_v19 }
 0x189   : >> { %v1483_v12 = vmul.f32 %v5140_v51, %v5229_v20 }
 0x18f   : >> { %v5231_v22 = vpop.permute.xlu1 %1314  ;;  %v1544_v40 = vpop.permute.xlu2 %1543 }
 0x190   : >> { %v1310_v34 = vpop.permute.xlu0 %1309  ;;  %v1549_v46 = vmul.f32 %v5189_v36, %v1544_v40  ;;  %v1519_v40 = vmul.f32 %v5168_v10, %v5223_v17 }
 0x191   : >> { %v1490_v45 = vmul.f32 %v5154_v52, %v1310_v34  ;;  %v1330_v13 = vmul.f32 %v5267_v2, %v1310_v34  ;;  %v1492_v34 = vmul.f32 %v5154_v52, %v5217_v8 }
 0x193   : >> { %v1494_v61 = vadd.f32 %v1490_v45, %v1486_v47  ;;  %v1334_v47 = vadd.f32 %v1330_v13, %v1301_v43 }
 0x197   : >> { %v1501_v28 = vpop.permute.xlu1 %1500  ;;  %v5235_v30 = vpop.permute.xlu2 %1566 }
 0x198   : >> { %v5233_v15 = vpop.permute.xlu0 %1324  ;;  %v1518_v33 = vmul.f32 %v5168_v10, %v1501_v28  ;;  %v1480_v28 = vadd.f32 %v1476_v59, %v5199_v62  ;;  %v1487_v62 = vadd.f32 %v1483_v12, %v5215_v11 }
 0x199   : >> { %v1493_v41 = vmul.f32 %v5154_v52, %v5233_v15 }
 0x19a   : >> { %v1522_v56 = vadd.f32 %v1518_v33, %v1494_v61  ;;  %v1488_v39 = vadd.f32 %v1484_v5, %v1480_v28 }
 0x19b   : >> { %v1497_v6 = vadd.f32 %v1493_v41, %v1489_v24 }
 0x19c   : >> { %v1550_v16 = vadd.f32 %v1546_v63, %v1522_v56  ;;  %v1496_v56 = vadd.f32 %v1492_v34, %v1488_v39 }
 0x19f   : >> { %v1516_v29 = vpop.permute.xlu1 %1515  ;;  %v5240_v27 = vpop.permute.xlu2 %1589 }
 0x1a0   : >> { %v1511_v37 = vpop.permute.xlu0 %1510  ;;  %v1521_v57 = vmul.f32 %v5168_v10, %v1516_v29  ;;  %v1491_v29 = vmul.f32 %v5154_v52, %v5231_v22 }
 0x1a1   : >> { %v1520_v33 = vmul.f32 %v5168_v10, %v1511_v37  ;;  %v1333_v37 = vmul.f32 %v5267_v2, %v5233_v15  ;;  %v1299_v10 = vmul.f32 %v5255_v53, %v5227_v19 }
 0x1a2   : >> { %v1525_v44 = vadd.f32 %v1521_v57, %v1497_v6  ;;  %v1495_v54 = vadd.f32 %v1491_v29, %v1487_v62  ;;  %v1576_v57 = vmul.f32 %v5204_v58, %v5235_v30  ;;  %v1331_v6 = vmul.f32 %v5267_v2, %v5231_v22 }
 0x1a3   : >> { %v1303_v19 = vadd.f32 %v1299_v10, %v5225_v18  ;;  %v1332_v30 = vmul.f32 %v5267_v2, %v5217_v8 }
 0x1a4   : >> { %v1553_v25 = vadd.f32 %v1549_v46, %v1525_v44  ;;  %v1523_v5 = vadd.f32 %v1519_v40, %v1495_v54 }
 0x1a5   : >> { %v1336_v22 = vadd.f32 %v1332_v30, %v1303_v19 }
 0x1a7   : >> { %v1539_v31 = vpop.permute.xlu1 %1538  ;;  %v1613_v4 = vpop.permute.xlu2 %1612 }
 0x1a8   : >> { %v1534_v32 = vpop.permute.xlu0 %1533  ;;  %v1630_v51 = vmul.f32 %v5267_v2, %v1613_v4  ;;  %v1548_v52 = vmul.f32 %v5189_v36, %v1539_v31 }
 0x1a9   : >> { %v1547_v59 = vmul.f32 %v5189_v36, %v1534_v32 }
 0x1ab   : >> { %v1551_v32 = vadd.f32 %v1547_v59, %v1523_v5 }
 0x1af   : >> { %v5248_v60 = vpop.permute.xlu1 %1561  ;;  %v1628_v63 = vpop.permute.xlu2 %1627 }
 0x1b0   : >> { %v1557_v48 = vpop.permute.xlu0 %1556  ;;  %v1575_v24 = vmul.f32 %v5204_v58, %v5248_v60  ;;  %v1633_v36 = vmul.f32 %v5267_v2, %v1628_v63  ;;  %v1298_v60 = vmul.f32 %v5255_v53, %v5229_v20 }
 0x1b1   : >> { %v1574_v1 = vmul.f32 %v5204_v58, %v1557_v48  ;;  %v1300_v48 = vmul.f32 %v5255_v53, %v5206_v55  ;;  %v1524_v55 = vadd.f32 %v1520_v33, %v1496_v56 }
 0x1b2   : >> { %v1579_v13 = vadd.f32 %v1575_v24, %v1551_v32  ;;  %v1302_v18 = vadd.f32 %v1298_v60, %v5213_v49 }
 0x1b3   : >> { %v1578_v23 = vadd.f32 %v1574_v1, %v1550_v16  ;;  %v1304_v31 = vadd.f32 %v1300_v48, %v1271_v50  ;;  %v1552_v17 = vadd.f32 %v1548_v52, %v1524_v55 }
 0x1b5   : >> { %v1337_v16 = vadd.f32 %v1333_v37, %v1304_v31  ;;  %v1580_v28 = vadd.f32 %v1576_v57, %v1552_v17 }
 0x1b7   : >> { %v1585_v21 = vpop.permute.xlu1 %1584 }
 0x1b8   : >> { %v1602_v26 = vmul.f32 %v5255_v53, %v1585_v21  ;;  %v1572_v35 = vpop.permute.xlu0 %1571 }
 0x1b9   : >> { %v1577_v61 = vmul.f32 %v5204_v58, %v1572_v35 }
 0x1ba   : >> { %v1606_v45 = vadd.f32 %v1602_v26, %v1578_v23  ;;  %v1603_v23 = vmul.f32 %v5255_v53, %v5240_v27  ;;  %v1335_v27 = vadd.f32 %v1331_v6, %v1302_v18 }
 0x1bb   : >> { %v1581_v38 = vadd.f32 %v1577_v61, %v1553_v25 }
 0x1bc   : >> { %v1634_v14 = vadd.f32 %v1630_v51, %v1606_v45  ;;  %v1607_v29 = vadd.f32 %v1603_v23, %v1579_v13 }
 0x1be   : >> { %v1638_v11 = vmax.f32 %v1334_v47, %v1634_v14 }
 0x1bf   : >> { %v1600_v41 = vpop.permute.xlu1 %1599 }
 0x1c0   : >> { %v1645_v1 = vadd.f32 %v1643_v9, %v1638_v11  ;;  %v1605_v3 = vmul.f32 %v5255_v53, %v1600_v41  ;;  %v1595_v4 = vpop.permute.xlu0 %1594 }
 0x1c1   : >> { %v1604_v12 = vmul.f32 %v5255_v53, %v1595_v4 }
 0x1c2   : >> { %1650 = vst.msk [vmem:[#allocation4] sm:$0xff] %vm1649_vm0, %v1645_v1  ;;  %v1609_v15 = vadd.f32 %v1605_v3, %v1581_v38 }
 0x1c3   : >> { %v1608_v35 = vadd.f32 %v1604_v12, %v1580_v28 }
 0x1c4   : >> { %v1637_v7 = vadd.f32 %v1633_v36, %v1609_v15 }
 0x1c6   : >> { %v1641_v21 = vmax.f32 %v1337_v16, %v1637_v7 }
 0x1c7   : >> { %v1623_v58 = vpop.permute.xlu1 %1622 }
 0x1c8   : >> { %v1648_v26 = vadd.f32 %v1643_v9, %v1641_v21  ;;  %v1632_v20 = vmul.f32 %v5267_v2, %v1623_v58  ;;  %v1618_v42 = vpop.permute.xlu0 %1617 }
 0x1c9   : >> { %v1631_v43 = vmul.f32 %v5267_v2, %v1618_v42 }
 0x1ca   : >> { %1654 = vst.msk [vmem:[#allocation4 + $0x18] sm:$0xf] %vm1653_vm1, %v1648_v26  ;;  %v1636_v39 = vadd.f32 %v1632_v20, %v1608_v35 }
 0x1cb   : >> { %v1635_v53 = vadd.f32 %v1631_v43, %v1607_v29 }
 0x1cc   : >> { %v1640_v44 = vmax.f32 %v1336_v22, %v1636_v39 }
 0x1cd   : >> { %v1639_v51 = vmax.f32 %v1335_v27, %v1635_v53 }
 0x1ce   : >> { %v1647_v45 = vadd.f32 %v1643_v9, %v1640_v44 }
 0x1cf   : >> { %v1646_v8 = vadd.f32 %v1643_v9, %v1639_v51  ;;  %v5331_v9 = vld [vmem:[%s6203_s4] sm:$0x1] (%p387_p11) }
 0x1d0   : >> { %1652 = vst.msk [vmem:[#allocation4 + $0x10] sm:$0xff] %vm1649_vm0, %v1647_v45 }
 0x1d1   : >> { %1651 = vst.msk [vmem:[#allocation4 + $0x8] sm:$0xff] %vm1649_vm0, %v1646_v8 }
 0x1d7   : >> { %v1657_v34 = vld [vmem:[#allocation4 + $0x10] ss:$2 sm:$0x3f]  ;;  %v1661_v62 = vld [vmem:[#allocation4 + $0x11] ss:$2 sm:$0x3f] }
 0x1d8   : >> { %v1663_v49 = vmax.f32 %v1657_v34, %v1661_v62  ;;  %v1655_v46 = vld [vmem:[#allocation4] ss:$2 sm:$0xff]  ;;  %v1659_v47 = vld [vmem:[#allocation4 + $0x1] ss:$2 sm:$0xff] }
 0x1d9   : >> { %v1662_v2 = vmax.f32 %v1655_v46, %v1659_v47  ;;  %389 = sbr.rel (!%p387_p11) target bundleno = 26 (0x1a), region = 197 }
 0x1da   : >> { %v1665_v33 = vmax.f32 %v1663_v49, 0.0 }
 0x1db   : >> { %v1664_v14 = vmax.f32 %v1662_v2, 0.0 }
 0x1dc   : >> { %1670 = vst.msk [vmem:[%s1667_s13 + $0x8] sm:$0x3f] %vm1669_vm2, %v1665_v33 }
 0x1dd   : >> { %1668 = vst.msk [vmem:[%s1667_s13] sm:$0xff] %vm1649_vm0, %v1664_v14 }
 0x1de LB: >> { %v5341_v61 = vld [vmem:[%s6202_s3 + $0x8] sm:$0x3f]  ;;  %vm1751_vm3 = vcmask 1045504   ;;  %v5346_v0 = vld [vmem:[%s6202_s3] sm:$0x3f]  ;;  %s4473_s30 = sshll.u32 %s4638_s16, 5  ;;  %s4638_s16 = sphi %s5333_s16, %s1677_s16  }
 0x1df   : >> { %4474 = vmatpush.msk.msra.mxu2 %vm1751_vm3, %v5341_v61  ;;  %4475 = vmatpush.msk.msra.mxu3 %vm1751_vm3, %v5346_v0  ;;  %v5355_v48 = vld [vmem:[%s6202_s3 + $0x10] sm:$0x3f]  ;;  %v5360_v50 = vld [vmem:[%s6202_s3 + $0x18] sm:$0x3f]  ;;  %v5370_v54 = vld [vmem:[%s6202_s3 + $0x20] sm:$0x3f] }
 0x1e0   : >> { %v5375_v56 = vld [vmem:[%s6202_s3 + $0x30] sm:$0x3f]  ;;  %4219 = vmatpush.msk.msra.mxu0 %vm1751_vm3, %v5341_v61  ;;  %4222 = vmatpush.msk.msra.mxu1 %vm1751_vm3, %v5346_v0  ;;  %v5384_v52 = vld [vmem:[%s6202_s3 + $0x28] sm:$0x3f]  ;;  %s5386_s15 = scalar_lea.vmem [#allocation2], %s4473_s30  ;;  %vm3296_vm4 = vcmask 130048  }
 0x1e1   : >> { %4226 = vmatpush.msk.msrb.mxu2 %vm1751_vm3, %v5355_v48  ;;  %4230 = vmatpush.msk.msrb.mxu3 %vm1751_vm3, %v5360_v50  ;;  %v5395_v40 = vld [vmem:[%s6202_s3 + $0x38] sm:$0x3f]  ;;  %v5406_v63 = vld [vmem:[%s6202_s3 + $0x40] sm:$0x3f]  ;;  %v5417_v41 = vld [vmem:[%s6202_s3 + $0x48] sm:$0x3f] }
 0x1e2   : >> { %4234 = vmatpush.msk.msrb.mxu0 %vm1751_vm3, %v5370_v54  ;;  %4238 = vmatpush.msk.msrb.mxu1 %vm1751_vm3, %v5384_v52  ;;  %v5429_v3 = vld [vmem:[%s6202_s3 + $0x50] sm:$0x3f]  ;;  %v5437_v31 = vld [vmem:[%s6202_s3 + $0x58] sm:$0x3f]  ;;  %v5444_v5 = vld [vmem:[%s6202_s3 + $0x60] sm:$0x3f] }
 0x1e3   : >> { %v5449_v24 = vld [vmem:[%s6202_s3 + $0x68] sm:$0x3f]  ;;  %v5485_v7 = vld [vmem:[%s6202_s3 + $0x70] sm:$0x3f]  ;;  %v5493_v60 = vld [vmem:[%s6202_s3 + $0x78] sm:$0x3f] }
 0x1e4   : >> { %v1694_v11 = vld [vmem:[%s5386_s15 + $0x9] sm:$0x3]  ;;  %v1693_v37 = vld [vmem:[%s5386_s15 + $0x1] sm:$0xff]  ;;  %v5432_v4 = vld [vmem:[%s5386_s15 + $0x10] sm:$0xff]  ;;  %vm3298_vm5 = vcmask 123904   ;;  %vm3307_vm6 = vcmask 126976  }
 0x1e5   : >> { %v1682_v25 = vld [vmem:[%s5386_s15 + $0x8] sm:$0x3]  ;;  %4221 = vmatmul.msk.f32.vlgmr.msra.gmra.mxu2 %vm1649_vm0, %v1694_v11  ;;  %v1681_v59 = vld [vmem:[%s5386_s15] sm:$0xff]  ;;  %4220 = vmatmul.msk.f32.vlgmr.msra.gmra.mxu0 %vm1649_vm0, %v1693_v37  ;;  %v1706_v10 = vld [vmem:[%s5386_s15 + $0xa] sm:$0x3] }
 0x1e6   : >> { %4224 = vmatmul.msk.f32.vlgmr.msra.gmra.mxu3 %vm1649_vm0, %v1682_v25  ;;  %4242 = vmatpush.msk.msra.mxu2 %vm1751_vm3, %v5375_v56  ;;  %v1705_v55 = vld [vmem:[%s5386_s15 + $0x2] sm:$0xff]  ;;  %v1718_v17 = vld [vmem:[%s5386_s15 + $0xb] sm:$0x3]  ;;  %v5466_v15 = vld [vmem:[%s5386_s15 + $0x18] sm:$0x3] }
 0x1e7   : >> { %4223 = vmatmul.msk.f32.vlgmr.msra.gmra.mxu1 %vm1649_vm0, %v1681_v59  ;;  %4246 = vmatpush.msk.msra.mxu3 %vm1751_vm3, %v5395_v40  ;;  %v1717_v1 = vld [vmem:[%s5386_s15 + $0x3] sm:$0xff]  ;;  %v1730_v36 = vld [vmem:[%s5386_s15 + $0xc] sm:$0x3]  ;;  %v5474_v32 = vld [vmem:[%s5386_s15 + $0x11] sm:$0xff] }
 0x1e8   : >> { %4250 = vmatpush.msk.msra.mxu0 %vm1751_vm3, %v5406_v63  ;;  %4254 = vmatpush.msk.msra.mxu1 %vm1751_vm3, %v5417_v41  ;;  %v1729_v38 = vld [vmem:[%s5386_s15 + $0x4] sm:$0xff]  ;;  %v5477_v57 = vld [vmem:[%s5386_s15 + $0x12] sm:$0xff]  ;;  %v5525_v28 = vld [vmem:[%s5386_s15 + $0x1a] sm:$0x3] }
 0x1e9   : >> { %v5480_v16 = vld [vmem:[%s5386_s15 + $0x13] sm:$0xff]  ;;  %v5502_v13 = vld [vmem:[%s6202_s3 + $0x80] sm:$0x3f]  ;;  %v5507_v19 = vld [vmem:[%s6202_s3 + $0x88] sm:$0x3f] }
 0x1ea   : >> { %v5488_v12 = vld [vmem:[%s5386_s15 + $0x14] sm:$0xff]  ;;  %v5531_v23 = vld [vmem:[%s5386_s15 + $0x1c] sm:$0x3]  ;;  %v5542_v58 = vld [vmem:[%s5386_s15 + $0x20] sm:$0xff] }
 0x1eb   : >> { %v5522_v21 = vld [vmem:[%s5386_s15 + $0x19] sm:$0x3]  ;;  %v5528_v6 = vld [vmem:[%s5386_s15 + $0x1b] sm:$0x3]  ;;  %v5545_v30 = vld [vmem:[%s5386_s15 + $0x21] sm:$0xff] }
 0x1ec   : >> { %v5548_v26 = vld [vmem:[%s5386_s15 + $0x22] sm:$0xff]  ;;  %v5553_v35 = vld [vmem:[%s6202_s3 + $0x90] sm:$0x3f]  ;;  %v5561_v42 = vld [vmem:[%s6202_s3 + $0x98] sm:$0x3f] }
 0x1ed   : >> { %4227 = vmatmul.msk.f32.vlgmr.msrb.gmra.mxu2 %vm1649_vm0, %v1705_v55  ;;  %4235 = vmatmul.msk.f32.vlgmr.msrb.gmra.mxu0 %vm1649_vm0, %v1729_v38  ;;  %v5556_v20 = vld [vmem:[%s5386_s15 + $0x23] sm:$0xff]  ;;  %v5599_v27 = vld [vmem:[%s5386_s15 + $0x2b] sm:$0x3]  ;;  %v5613_v44 = vld [vmem:[%s5386_s15 + $0x30] sm:$0xff] }
 0x1ee   : >> { %4231 = vmatmul.msk.f32.vlgmr.msrb.gmra.mxu3 %vm1649_vm0, %v1717_v1  ;;  %4258 = vmatpush.msk.msrb.mxu2 %vm1751_vm3, %v5429_v3  ;;  %v5570_v18 = vld [vmem:[%s6202_s3 + $0xa0] sm:$0x3f]  ;;  %v5575_v29 = vld [vmem:[%s6202_s3 + $0xa8] sm:$0x3f]  ;;  %v5616_v51 = vld [vmem:[%s5386_s15 + $0x31] sm:$0xff] }
 0x1ef   : >> { %4239 = vmatmul.msk.f32.vlgmr.msrb.gmra.mxu1 %vm1649_vm0, %v5432_v4  ;;  %4262 = vmatpush.msk.msrb.mxu3 %vm1751_vm3, %v5437_v31  ;;  %v5590_v43 = vld [vmem:[%s5386_s15 + $0x28] sm:$0x3]  ;;  %v5596_v39 = vld [vmem:[%s5386_s15 + $0x2a] sm:$0x3]  ;;  %v5621_v45 = vld [vmem:[%s6202_s3 + $0xb0] sm:$0x3f] }
 0x1f0   : >> { %4266 = vmatpush.msk.msrb.mxu0 %vm1751_vm3, %v5444_v5  ;;  %4270 = vmatpush.msk.msrb.mxu1 %vm1751_vm3, %v5449_v24  ;;  %v5593_v22 = vld [vmem:[%s5386_s15 + $0x29] sm:$0x3]  ;;  %v5624_v8 = vld [vmem:[%s5386_s15 + $0x32] sm:$0xff]  ;;  %v5638_v62 = vld [vmem:[%s6202_s3 + $0xc0] sm:$0x3f] }
 0x1f1   : >> { %v5610_v53 = vld [vmem:[%s5386_s15 + $0x24] sm:$0xff]  ;;  %v5629_v34 = vld [vmem:[%s6202_s3 + $0xb8] sm:$0x3f]  ;;  %v5653_v49 = vld [vmem:[%s5386_s15 + $0x2c] sm:$0x3] }
 0x1f2   : >> { %v5656_v46 = vld [vmem:[%s5386_s15 + $0x38] sm:$0x3]  ;;  %v5662_v2 = vld [vmem:[%s5386_s15 + $0x3a] sm:$0x3]  ;;  %v5682_v11 = vld [vmem:[%s5386_s15 + $0x41] sm:$0xff] }
 0x1f3   : >> { %v5659_v47 = vld [vmem:[%s5386_s15 + $0x39] sm:$0x3]  ;;  %v5701_v25 = vld [vmem:[%s5386_s15 + $0x3b] sm:$0x3]  ;;  %v5707_v59 = vld [vmem:[%s5386_s15 + $0x48] sm:$0x3] }
 0x1f4   : >> { %v5673_v33 = vld [vmem:[%s5386_s15 + $0x33] sm:$0xff]  ;;  %v5704_v37 = vld [vmem:[%s5386_s15 + $0x3c] sm:$0x3]  ;;  %v5710_v55 = vld [vmem:[%s5386_s15 + $0x49] sm:$0x3] }
 0x1f5   : >> { %4228 = vmatmul.msk.f32.gmra.mxu2 %vm1649_vm0, %v1706_v10  ;;  %4236 = vmatmul.msk.f32.gmra.mxu0 %vm1649_vm0, %v1730_v36  ;;  %v5676_v14 = vld [vmem:[%s5386_s15 + $0x34] sm:$0xff]  ;;  %v5749_v1 = vld [vmem:[%s5386_s15 + $0x4b] sm:$0x3] }
 0x1f6   : >> { %4232 = vmatmul.msk.f32.gmra.mxu3 %vm1649_vm0, %v1718_v17  ;;  %v5752_v38 = vld [vmem:[%s5386_s15 + $0x4c] sm:$0x3] }
 0x1f7   : >> { %4240 = vmatmul.msk.f32.gmra.mxu1 %vm1649_vm0, %v5466_v15 }
 0x1fd   : >> { %4243 = vmatmul.msk.f32.vlgmr.msra.gmra.mxu2 %vm1649_vm0, %v5474_v32  ;;  %4251 = vmatmul.msk.f32.vlgmr.msra.gmra.mxu0 %vm1649_vm0, %v5480_v16 }
 0x1fe   : >> { %4247 = vmatmul.msk.f32.vlgmr.msra.gmra.mxu3 %vm1649_vm0, %v5477_v57  ;;  %4274 = vmatpush.msk.msra.mxu2 %vm1751_vm3, %v5485_v7 }
 0x1ff   : >> { %4255 = vmatmul.msk.f32.vlgmr.msra.gmra.mxu1 %vm1649_vm0, %v5488_v12  ;;  %4278 = vmatpush.msk.msra.mxu3 %vm1751_vm3, %v5493_v60 }
 0x200   : >> { %4282 = vmatpush.msk.msra.mxu0 %vm1751_vm3, %v5502_v13  ;;  %4286 = vmatpush.msk.msra.mxu1 %vm1751_vm3, %v5507_v19 }
 0x205   : >> { %4244 = vmatmul.msk.f32.gmra.mxu2 %vm1649_vm0, %v5522_v21  ;;  %4252 = vmatmul.msk.f32.gmra.mxu0 %vm1649_vm0, %v5528_v6 }
 0x206   : >> { %4248 = vmatmul.msk.f32.gmra.mxu3 %vm1649_vm0, %v5525_v28 }
 0x207   : >> { %4256 = vmatmul.msk.f32.gmra.mxu1 %vm1649_vm0, %v5531_v23 }
 0x20d   : >> { %4259 = vmatmul.msk.f32.vlgmr.msrb.gmra.mxu2 %vm1649_vm0, %v5542_v58  ;;  %4267 = vmatmul.msk.f32.vlgmr.msrb.gmra.mxu0 %vm1649_vm0, %v5548_v26 }
 0x20e   : >> { %4263 = vmatmul.msk.f32.vlgmr.msrb.gmra.mxu3 %vm1649_vm0, %v5545_v30  ;;  %4290 = vmatpush.msk.msrb.mxu2 %vm1751_vm3, %v5553_v35 }
 0x20f   : >> { %4271 = vmatmul.msk.f32.vlgmr.msrb.gmra.mxu1 %vm1649_vm0, %v5556_v20  ;;  %4294 = vmatpush.msk.msrb.mxu3 %vm1751_vm3, %v5561_v42 }
 0x210   : >> { %4298 = vmatpush.msk.msrb.mxu0 %vm1751_vm3, %v5570_v18  ;;  %4302 = vmatpush.msk.msrb.mxu1 %vm1751_vm3, %v5575_v29 }
 0x215   : >> { %4260 = vmatmul.msk.f32.gmra.mxu2 %vm1649_vm0, %v5590_v43  ;;  %4268 = vmatmul.msk.f32.gmra.mxu0 %vm1649_vm0, %v5596_v39 }
 0x216   : >> { %4264 = vmatmul.msk.f32.gmra.mxu3 %vm1649_vm0, %v5593_v22 }
 0x217   : >> { %4272 = vmatmul.msk.f32.gmra.mxu1 %vm1649_vm0, %v5599_v27 }
 0x21d   : >> { %4275 = vmatmul.msk.f32.vlgmr.msra.gmra.mxu2 %vm1649_vm0, %v5610_v53  ;;  %4283 = vmatmul.msk.f32.vlgmr.msra.gmra.mxu0 %vm1649_vm0, %v5616_v51 }
 0x21e   : >> { %4279 = vmatmul.msk.f32.vlgmr.msra.gmra.mxu3 %vm1649_vm0, %v5613_v44  ;;  %4306 = vmatpush.msk.msra.mxu2 %vm1751_vm3, %v5621_v45 }
 0x21f   : >> { %4287 = vmatmul.msk.f32.vlgmr.msra.gmra.mxu1 %vm1649_vm0, %v5624_v8  ;;  %4310 = vmatpush.msk.msra.mxu3 %vm1751_vm3, %v5629_v34 }
 0x220   : >> { %4314 = vmatpush.msk.msra.mxu0 %vm1751_vm3, %v5638_v62  ;;  %4317 = vmatpush.msk.msra.mxu1 %vm1751_vm3, %v5341_v61  ;;  %v5679_v61 = vld [vmem:[%s5386_s15 + $0x40] sm:$0xff] }
 0x225   : >> { %4276 = vmatmul.msk.f32.gmra.mxu2 %vm1649_vm0, %v5653_v49  ;;  %4284 = vmatmul.msk.f32.gmra.mxu0 %vm1649_vm0, %v5659_v47 }
 0x226   : >> { %4280 = vmatmul.msk.f32.gmra.mxu3 %vm1649_vm0, %v5656_v46 }
 0x227   : >> { %4288 = vmatmul.msk.f32.gmra.mxu1 %vm1649_vm0, %v5662_v2 }
 0x22d   : >> { %4291 = vmatmul.msk.f32.vlgmr.msrb.gmra.mxu2 %vm1649_vm0, %v5673_v33  ;;  %4299 = vmatmul.msk.f32.vlgmr.msrb.gmra.mxu0 %vm1649_vm0, %v5679_v61 }
 0x22e   : >> { %4295 = vmatmul.msk.f32.vlgmr.msrb.gmra.mxu3 %vm1649_vm0, %v5676_v14  ;;  %4320 = vmatpush.msk.msrb.mxu2 %vm1751_vm3, %v5346_v0  ;;  %v5721_v0 = vld [vmem:[%s5386_s15 + $0x42] sm:$0xff] }
 0x22f   : >> { %4303 = vmatmul.msk.f32.vlgmr.msrb.gmra.mxu1 %vm1649_vm0, %v5682_v11  ;;  %4323 = vmatpush.msk.msrb.mxu3 %vm1751_vm3, %v5355_v48  ;;  %v5724_v48 = vld [vmem:[%s5386_s15 + $0x43] sm:$0xff] }
 0x230   : >> { %4326 = vmatpush.msk.msrb.mxu0 %vm1751_vm3, %v5360_v50  ;;  %4329 = vmatpush.msk.msrb.mxu1 %vm1751_vm3, %v5370_v54  ;;  %v5727_v50 = vld [vmem:[%s5386_s15 + $0x44] sm:$0xff] }
 0x231   : >> { %v5746_v54 = vld [vmem:[%s5386_s15 + $0x4a] sm:$0x3] }
 0x235   : >> { %4292 = vmatmul.msk.f32.gmra.mxu2 %vm1649_vm0, %v5701_v25  ;;  %4300 = vmatmul.msk.f32.gmra.mxu0 %vm1649_vm0, %v5707_v59 }
 0x236   : >> { %4296 = vmatmul.msk.f32.gmra.mxu3 %vm1649_vm0, %v5704_v37 }
 0x237   : >> { %4304 = vmatmul.msk.f32.gmra.mxu1 %vm1649_vm0, %v5710_v55 }
 0x23d   : >> { %4307 = vmatmul.msk.f32.vlgmr.msra.gmra.mxu2 %vm1649_vm0, %v5721_v0  ;;  %4315 = vmatmul.msk.f32.vlgmr.msra.gmra.mxu0 %vm1649_vm0, %v5727_v50 }
 0x23e   : >> { %4311 = vmatmul.msk.f32.vlgmr.msra.gmra.mxu3 %vm1649_vm0, %v5724_v48  ;;  %4332 = vmatpush.msk.msra.mxu2 %vm1751_vm3, %v5384_v52 }
 0x23f   : >> { %4318 = vmatmul.msk.f32.vlgmr.msra.gmra.mxu1 %vm1649_vm0, %v5474_v32  ;;  %4335 = vmatpush.msk.msra.mxu3 %vm1751_vm3, %v5375_v56 }
 0x240   : >> { %4338 = vmatpush.msk.msra.mxu0 %vm1751_vm3, %v5395_v40  ;;  %4341 = vmatpush.msk.msra.mxu1 %vm1751_vm3, %v5406_v63 }
 0x245   : >> { %4308 = vmatmul.msk.f32.gmra.mxu2 %vm1649_vm0, %v5746_v54  ;;  %4316 = vmatmul.msk.f32.gmra.mxu0 %vm1649_vm0, %v5752_v38 }
 0x246   : >> { %4312 = vmatmul.msk.f32.gmra.mxu3 %vm1649_vm0, %v5749_v1 }
 0x247   : >> { %4319 = vmatmul.msk.f32.gmra.mxu1 %vm1649_vm0, %v5522_v21 }
 0x24d   : >> { %4321 = vmatmul.msk.f32.vlgmr.msrb.gmra.mxu2 %vm1649_vm0, %v5432_v4  ;;  %4327 = vmatmul.msk.f32.vlgmr.msrb.gmra.mxu0 %vm1649_vm0, %v5480_v16 }
 0x24e   : >> { %4324 = vmatmul.msk.f32.vlgmr.msrb.gmra.mxu3 %vm1649_vm0, %v5477_v57  ;;  %4344 = vmatpush.msk.msrb.mxu2 %vm1751_vm3, %v5417_v41 }
 0x24f   : >> { %4330 = vmatmul.msk.f32.vlgmr.msrb.gmra.mxu1 %vm1649_vm0, %v5488_v12  ;;  %4347 = vmatpush.msk.msrb.mxu3 %vm1751_vm3, %v5429_v3 }
 0x250   : >> { %4350 = vmatpush.msk.msrb.mxu0 %vm1751_vm3, %v5437_v31  ;;  %4353 = vmatpush.msk.msrb.mxu1 %vm1751_vm3, %v5444_v5 }
 0x255   : >> { %4322 = vmatmul.msk.f32.gmra.mxu2 %vm1649_vm0, %v5466_v15  ;;  %4328 = vmatmul.msk.f32.gmra.mxu0 %vm1649_vm0, %v5528_v6 }
 0x256   : >> { %4325 = vmatmul.msk.f32.gmra.mxu3 %vm1649_vm0, %v5525_v28 }
 0x257   : >> { %4331 = vmatmul.msk.f32.gmra.mxu1 %vm1649_vm0, %v5531_v23 }
 0x25d   : >> { %4333 = vmatmul.msk.f32.vlgmr.msra.gmra.mxu2 %vm1649_vm0, %v5542_v58  ;;  %4339 = vmatmul.msk.f32.vlgmr.msra.gmra.mxu0 %vm1649_vm0, %v5548_v26 }
 0x25e   : >> { %4336 = vmatmul.msk.f32.vlgmr.msra.gmra.mxu3 %vm1649_vm0, %v5545_v30  ;;  %4356 = vmatpush.msk.msra.mxu2 %vm1751_vm3, %v5449_v24 }
 0x25f   : >> { %4342 = vmatmul.msk.f32.vlgmr.msra.gmra.mxu1 %vm1649_vm0, %v5556_v20  ;;  %4359 = vmatpush.msk.msra.mxu3 %vm1751_vm3, %v5485_v7 }
 0x260   : >> { %4362 = vmatpush.msk.msra.mxu0 %vm1751_vm3, %v5493_v60  ;;  %4365 = vmatpush.msk.msra.mxu1 %vm1751_vm3, %v5502_v13 }
 0x262   : >> { %v1772_v56 = vpop.f32.mrf.mxu0 }
 0x264   : >> { %v1804_v52 = vpop.f32.mrf.mxu1 }
 0x265   : >> { %4334 = vmatmul.msk.f32.gmra.mxu2 %vm1649_vm0, %v5590_v43  ;;  %4340 = vmatmul.msk.f32.gmra.mxu0 %vm1649_vm0, %v5596_v39  ;;  %v1805_v31 = vadd.f32 %v1804_v52, %v1772_v56 }
 0x266   : >> { %4337 = vmatmul.msk.f32.gmra.mxu3 %vm1649_vm0, %v5593_v22 }
 0x267   : >> { %4343 = vmatmul.msk.f32.gmra.mxu1 %vm1649_vm0, %v5599_v27 }
 0x268   : >> { %v1775_v40 = vpop.f32.mrf.mxu2 }
 0x269   : >> { %v1807_v63 = vpop.f32.mrf.mxu3 }
 0x26a   : >> { %v1808_v41 = vadd.f32 %v1807_v63, %v1775_v40  ;;  %v1910_v3 = vpop.f32.mrf.mxu0  ;;  %v1704_v40 = vld [vmem:[%s5386_s15 + $0x59] sm:$0x3] }
 0x26b   : >> { %v1716_v63 = vld [vmem:[%s5386_s15 + $0x5a] sm:$0x3] }
 0x26c   : >> { %v1946_v4 = vpop.f32.mrf.mxu1 }
 0x26d   : >> { %4345 = vmatmul.msk.f32.vlgmr.msrb.gmra.mxu2 %vm1649_vm0, %v5610_v53  ;;  %4351 = vmatmul.msk.f32.vlgmr.msrb.gmra.mxu0 %vm1649_vm0, %v5616_v51  ;;  %v1691_v53 = vld [vmem:[%s5386_s15 + $0x50] sm:$0xff] }
 0x26e   : >> { %4348 = vmatmul.msk.f32.vlgmr.msrb.gmra.mxu3 %vm1649_vm0, %v5613_v44  ;;  %4368 = vmatpush.msk.msrb.mxu2 %vm1751_vm3, %v5507_v19 }
 0x26f   : >> { %4354 = vmatmul.msk.f32.vlgmr.msrb.gmra.mxu1 %vm1649_vm0, %v5624_v8  ;;  %4371 = vmatpush.msk.msrb.mxu3 %vm1751_vm3, %v5553_v35 }
 0x270   : >> { %v1838_v5 = vpop.f32.mrf.mxu2  ;;  %4374 = vmatpush.msk.msrb.mxu0 %vm1751_vm3, %v5561_v42  ;;  %4377 = vmatpush.msk.msrb.mxu1 %vm1751_vm3, %v5570_v18 }
 0x271   : >> { %v1874_v24 = vpop.f32.mrf.mxu3  ;;  %v1844_v10 = vadd.f32 %v1838_v5, %v1805_v31  ;;  %v1740_v5 = vld [vmem:[%s5386_s15 + $0x5c] sm:$0x3] }
 0x272   : >> { %v1913_v36 = vpop.f32.mrf.mxu0 }
 0x273   : >> { %v1880_v17 = vadd.f32 %v1874_v24, %v1844_v10 }
 0x274   : >> { %v1949_v15 = vpop.f32.mrf.mxu1 }
 0x275   : >> { %v1916_v32 = vadd.f32 %v1910_v3, %v1880_v17  ;;  %4346 = vmatmul.msk.f32.gmra.mxu2 %vm1649_vm0, %v5653_v49  ;;  %4352 = vmatmul.msk.f32.gmra.mxu0 %vm1649_vm0, %v5659_v47  ;;  %v1692_v47 = vld [vmem:[%s5386_s15 + $0x58] sm:$0x3] }
 0x276   : >> { %4349 = vmatmul.msk.f32.gmra.mxu3 %vm1649_vm0, %v5656_v46 }
 0x277   : >> { %v1952_v57 = vadd.f32 %v1946_v4, %v1916_v32  ;;  %4355 = vmatmul.msk.f32.gmra.mxu1 %vm1649_vm0, %v5662_v2  ;;  %v1728_v4 = vld [vmem:[%s5386_s15 + $0x5b] sm:$0x3] }
 0x278   : >> { %v1841_v16 = vpop.f32.mrf.mxu2 }
 0x279   : >> { %v1877_v7 = vpop.f32.mrf.mxu3  ;;  %v1845_v12 = vadd.f32 %v1841_v16, %v1808_v41 }
 0x27a   : >> { %v2054_v13 = vpop.f32.mrf.mxu0 }
 0x27b   : >> { %v1881_v60 = vadd.f32 %v1877_v7, %v1845_v12 }
 0x27c   : >> { %v2090_v19 = vpop.f32.mrf.mxu1 }
 0x27d   : >> { %v1917_v21 = vadd.f32 %v1913_v36, %v1881_v60  ;;  %4357 = vmatmul.msk.f32.vlgmr.msra.gmra.mxu2 %vm1649_vm0, %v5673_v33  ;;  %4363 = vmatmul.msk.f32.vlgmr.msra.gmra.mxu0 %vm1649_vm0, %v5679_v61 }
 0x27e   : >> { %4360 = vmatmul.msk.f32.vlgmr.msra.gmra.mxu3 %vm1649_vm0, %v5676_v14  ;;  %4380 = vmatpush.msk.msra.mxu2 %vm1751_vm3, %v5575_v29 }
 0x27f   : >> { %v1953_v28 = vadd.f32 %v1949_v15, %v1917_v21  ;;  %4366 = vmatmul.msk.f32.vlgmr.msra.gmra.mxu1 %vm1649_vm0, %v5682_v11  ;;  %4383 = vmatpush.msk.msra.mxu3 %vm1751_vm3, %v5621_v45 }
 0x280   : >> { %v1982_v6 = vpop.f32.mrf.mxu2  ;;  %4386 = vmatpush.msk.msra.mxu0 %vm1751_vm3, %v5629_v34  ;;  %4389 = vmatpush.msk.msra.mxu1 %vm1751_vm3, %v5638_v62 }
 0x281   : >> { %v2018_v23 = vpop.f32.mrf.mxu3  ;;  %v1988_v58 = vadd.f32 %v1982_v6, %v1952_v57 }
 0x282   : >> { %v2057_v26 = vpop.f32.mrf.mxu0 }
 0x283   : >> { %v2024_v30 = vadd.f32 %v2018_v23, %v1988_v58 }
 0x284   : >> { %v2093_v35 = vpop.f32.mrf.mxu1 }
 0x285   : >> { %v2060_v20 = vadd.f32 %v2054_v13, %v2024_v30  ;;  %4358 = vmatmul.msk.f32.gmra.mxu2 %vm1649_vm0, %v5701_v25  ;;  %4364 = vmatmul.msk.f32.gmra.mxu0 %vm1649_vm0, %v5707_v59  ;;  %v1703_v25 = vld [vmem:[%s5386_s15 + $0x51] sm:$0xff] }
 0x286   : >> { %4361 = vmatmul.msk.f32.gmra.mxu3 %vm1649_vm0, %v5704_v37  ;;  %v1715_v37 = vld [vmem:[%s5386_s15 + $0x52] sm:$0xff] }
 0x287   : >> { %v2096_v42 = vadd.f32 %v2090_v19, %v2060_v20  ;;  %4367 = vmatmul.msk.f32.gmra.mxu1 %vm1649_vm0, %v5710_v55 }
 0x288   : >> { %v1985_v18 = vpop.f32.mrf.mxu2 }
 0x289   : >> { %v2021_v29 = vpop.f32.mrf.mxu3  ;;  %v1989_v43 = vadd.f32 %v1985_v18, %v1953_v28 }
 0x28a   : >> { %v2198_v39 = vpop.f32.mrf.mxu0 }
 0x28b   : >> { %v2025_v22 = vadd.f32 %v2021_v29, %v1989_v43 }
 0x28c   : >> { %v2234_v27 = vpop.f32.mrf.mxu1 }
 0x28d   : >> { %v2061_v44 = vadd.f32 %v2057_v26, %v2025_v22  ;;  %4369 = vmatmul.msk.f32.vlgmr.msrb.gmra.mxu2 %vm1649_vm0, %v5721_v0  ;;  %4375 = vmatmul.msk.f32.vlgmr.msrb.gmra.mxu0 %vm1649_vm0, %v5727_v50  ;;  %v1727_v0 = vld [vmem:[%s5386_s15 + $0x53] sm:$0xff] }
 0x28e   : >> { %4372 = vmatmul.msk.f32.vlgmr.msrb.gmra.mxu3 %vm1649_vm0, %v5724_v48  ;;  %v1739_v50 = vld [vmem:[%s5386_s15 + $0x54] sm:$0xff]  ;;  %s4392_s15 = sshll.u32 %s4638_s16, 3  ;;  %s1677_s16 = sadd.s32 1, %s4638_s16  }
 0x28f   : >> { %v2097_v51 = vadd.f32 %v2093_v35, %v2061_v44  ;;  %4378 = vmatmul.msk.f32.vlgmr.msrb.gmra.mxu1 %vm1649_vm0, %v1691_v53  ;;  %s3306_s25 = scalar_lea.vmem [#allocation3], %s4392_s15  ;;  %p1674_p12 = scmp.ge.s32.totalorder %s1677_s16, 5  }
 0x290   : >> { %v2126_v45 = vpop.f32.mrf.mxu2  ;;  %vm4071_vm7 = vcmask (%p1674_p12), 1043456   ;;  %vm4030_vm8 = vcmask (%p1674_p12), 982016   ;;  %vm4067_vm9 = vcmask (%p1674_p12), 687104   ;;  %s4108_s22 = sshll.u32 (%p1674_p12), %s4764_s24, 4  ;;  %vm4095_vm10 = vcmask (%p1674_p12), 73728   ;;  %s6218_s13 = sand.u32 (%p1674_p12), 1, %s4622_s18   ;;  %s4109_s22 = int_to_ptr.vmem [resolvable:$true] %s4108_s22 }
 0x291   : >> { %v2162_v8 = vpop.f32.mrf.mxu3  ;;  %v2132_v34 = vadd.f32 %v2126_v45, %v2096_v42  ;;  %s4098_s14 = scalar_lea.sflag (%p1674_p12), [#allocation7], %s6218_s13  ;;  %s4580_s15 = scalar_lea.hbm (%p1674_p12), %s6210_s11, 2 }
 0x292   : >> { %v2201_v49 = vpop.f32.mrf.mxu0 }
 0x293   : >> { %v2168_v62 = vadd.f32 %v2162_v8, %v2132_v34 }
 0x294   : >> { %v2237_v46 = vpop.f32.mrf.mxu1 }
 0x295   : >> { %v2204_v2 = vadd.f32 %v2198_v39, %v2168_v62  ;;  %4370 = vmatmul.msk.f32.gmra.mxu2 %vm1649_vm0, %v5746_v54  ;;  %4376 = vmatmul.msk.f32.gmra.mxu0 %vm1649_vm0, %v5752_v38 }
 0x296   : >> { %4373 = vmatmul.msk.f32.gmra.mxu3 %vm1649_vm0, %v5749_v1 }
 0x297   : >> { %v2240_v33 = vadd.f32 %v2234_v27, %v2204_v2  ;;  %4379 = vmatmul.msk.f32.gmra.mxu1 %vm1649_vm0, %v1692_v47 }
 0x298   : >> { %v2129_v14 = vpop.f32.mrf.mxu2 }
 0x299   : >> { %v2165_v61 = vpop.f32.mrf.mxu3  ;;  %v2133_v11 = vadd.f32 %v2129_v14, %v2097_v51 }
 0x29a   : >> { %v2342_v55 = vpop.f32.mrf.mxu0 }
 0x29b   : >> { %v2169_v59 = vadd.f32 %v2165_v61, %v2133_v11 }
 0x29c   : >> { %v2378_v48 = vpop.f32.mrf.mxu1 }
 0x29d   : >> { %v2205_v54 = vadd.f32 %v2201_v49, %v2169_v59  ;;  %4381 = vmatmul.msk.f32.vlgmr.msra.gmra.mxu2 %vm1649_vm0, %v1703_v25  ;;  %4387 = vmatmul.msk.f32.vlgmr.msra.gmra.mxu0 %vm1649_vm0, %v1727_v0 }
 0x29e   : >> { %4384 = vmatmul.msk.f32.vlgmr.msra.gmra.mxu3 %vm1649_vm0, %v1715_v37 }
 0x29f   : >> { %v2241_v1 = vadd.f32 %v2237_v46, %v2205_v54  ;;  %4390 = vmatmul.msk.f32.vlgmr.msra.gmra.mxu1 %vm1649_vm0, %v1739_v50 }
 0x2a0   : >> { %v2270_v38 = vpop.f32.mrf.mxu2 }
 0x2a1   : >> { %v2306_v56 = vpop.f32.mrf.mxu3  ;;  %v2276_v52 = vadd.f32 %v2270_v38, %v2240_v33 }
 0x2a2   : >> { %v2345_v3 = vpop.f32.mrf.mxu0 }
 0x2a3   : >> { %v2312_v41 = vadd.f32 %v2306_v56, %v2276_v52 }
 0x2a4   : >> { %v2381_v31 = vpop.f32.mrf.mxu1 }
 0x2a5   : >> { %v2348_v24 = vadd.f32 %v2342_v55, %v2312_v41  ;;  %4382 = vmatmul.msk.f32.gmra.mxu2 %vm1649_vm0, %v1704_v40  ;;  %4388 = vmatmul.msk.f32.gmra.mxu0 %vm1649_vm0, %v1728_v4 }
 0x2a6   : >> { %4385 = vmatmul.msk.f32.gmra.mxu3 %vm1649_vm0, %v1716_v63 }
 0x2a7   : >> { %v2384_v10 = vadd.f32 %v2378_v48, %v2348_v24  ;;  %4391 = vmatmul.msk.f32.gmra.mxu1 %vm1649_vm0, %v1740_v5 }
 0x2a8   : >> { %v2273_v17 = vpop.f32.mrf.mxu2 }
 0x2a9   : >> { %v2309_v36 = vpop.f32.mrf.mxu3  ;;  %v2277_v15 = vadd.f32 %v2273_v17, %v2241_v1 }
 0x2aa   : >> { %v2486_v57 = vpop.f32.mrf.mxu0 }
 0x2ab   : >> { %v2313_v32 = vadd.f32 %v2309_v36, %v2277_v15 }
 0x2ac   : >> { %v2522_v16 = vpop.f32.mrf.mxu1 }
 0x2ad   : >> { %v2349_v7 = vadd.f32 %v2345_v3, %v2313_v32 }
 0x2af   : >> { %v2385_v12 = vadd.f32 %v2381_v31, %v2349_v7 }
 0x2b0   : >> { %v2414_v60 = vpop.f32.mrf.mxu2 }
 0x2b1   : >> { %v2450_v13 = vpop.f32.mrf.mxu3  ;;  %v2420_v19 = vadd.f32 %v2414_v60, %v2384_v10 }
 0x2b2   : >> { %v2489_v28 = vpop.f32.mrf.mxu0 }
 0x2b3   : >> { %v2456_v21 = vadd.f32 %v2450_v13, %v2420_v19 }
 0x2b4   : >> { %v2525_v6 = vpop.f32.mrf.mxu1 }
 0x2b5   : >> { %v2492_v23 = vadd.f32 %v2486_v57, %v2456_v21 }
 0x2b7   : >> { %v2528_v58 = vadd.f32 %v2522_v16, %v2492_v23 }
 0x2b8   : >> { %v2417_v30 = vpop.f32.mrf.mxu2 }
 0x2b9   : >> { %v2453_v26 = vpop.f32.mrf.mxu3  ;;  %v2421_v35 = vadd.f32 %v2417_v30, %v2385_v12 }
 0x2ba   : >> { %v2630_v42 = vpop.f32.mrf.mxu0 }
 0x2bb   : >> { %v2457_v20 = vadd.f32 %v2453_v26, %v2421_v35 }
 0x2bc   : >> { %v2655_v18 = vpop.f32.mrf.mxu1 }
 0x2bd   : >> { %v2493_v29 = vadd.f32 %v2489_v28, %v2457_v20 }
 0x2bf   : >> { %v2529_v43 = vadd.f32 %v2525_v6, %v2493_v29 }
 0x2c0   : >> { %v2558_v22 = vpop.f32.mrf.mxu2 }
 0x2c1   : >> { %v2594_v39 = vpop.f32.mrf.mxu3  ;;  %v2564_v27 = vadd.f32 %v2558_v22, %v2528_v58 }
 0x2c2   : >> { %v2633_v44 = vpop.f32.mrf.mxu0 }
 0x2c3   : >> { %v2600_v53 = vadd.f32 %v2594_v39, %v2564_v27 }
 0x2c4   : >> { %v2658_v51 = vpop.f32.mrf.mxu1 }
 0x2c5   : >> { %v5890_v45 = vadd.f32 %v2630_v42, %v2600_v53 }
 0x2c8   : >> { %v2561_v8 = vpop.f32.mrf.mxu2 }
 0x2c9   : >> { %v2597_v34 = vpop.f32.mrf.mxu3  ;;  %v2565_v62 = vadd.f32 %v2561_v8, %v2529_v43 }
 0x2ca   : >> { %v2726_v46 = vpop.f32.mrf.mxu0 }
 0x2cb   : >> { %v2601_v49 = vadd.f32 %v2597_v34, %v2565_v62 }
 0x2cc   : >> { %v2751_v47 = vpop.f32.mrf.mxu1 }
 0x2cd   : >> { %v5892_v2 = vadd.f32 %v2633_v44, %v2601_v49 }
 0x2d0   : >> { %v2678_v33 = vpop.f32.mrf.mxu2 }
 0x2d1   : >> { %v2701_v14 = vpop.f32.mrf.mxu3  ;;  %v2679_v59 = vadd.f32 %v2678_v33, %v2655_v18 }
 0x2d2   : >> { %v2729_v61 = vpop.f32.mrf.mxu0 }
 0x2d3   : >> { %v2707_v48 = vadd.f32 %v2701_v14, %v2679_v59 }
 0x2d4   : >> { %v2754_v11 = vpop.f32.mrf.mxu1 }
 0x2d5   : >> { %v2732_v1 = vadd.f32 %v2726_v46, %v2707_v48 }
 0x2d7   : >> { %v2757_v40 = vadd.f32 %v2751_v47, %v2732_v1 }
 0x2d8   : >> { %v2681_v25 = vpop.f32.mrf.mxu2 }
 0x2d9   : >> { %v2704_v37 = vpop.f32.mrf.mxu3  ;;  %v2682_v38 = vadd.f32 %v2681_v25, %v2658_v51 }
 0x2da   : >> { %v2826_v55 = vpop.f32.mrf.mxu0 }
 0x2db   : >> { %v2708_v63 = vadd.f32 %v2704_v37, %v2682_v38 }
 0x2dc   : >> { %v2851_v0 = vpop.f32.mrf.mxu1 }
 0x2dd   : >> { %v2733_v31 = vadd.f32 %v2729_v61, %v2708_v63 }
 0x2df   : >> { %v2758_v17 = vadd.f32 %v2754_v11, %v2733_v31 }
 0x2e0   : >> { %v2776_v50 = vpop.f32.mrf.mxu2 }
 0x2e1   : >> { %v2801_v54 = vpop.f32.mrf.mxu3  ;;  %v2782_v4 = vadd.f32 %v2776_v50, %v2757_v40 }
 0x2e2   : >> { %v2829_v56 = vpop.f32.mrf.mxu0 }
 0x2e3   : >> { %v2807_v10 = vadd.f32 %v2801_v54, %v2782_v4 }
 0x2e4   : >> { %v2854_v52 = vpop.f32.mrf.mxu1 }
 0x2e5   : >> { %v2832_v32 = vadd.f32 %v2826_v55, %v2807_v10 }
 0x2e7   : >> { %v2857_v12 = vadd.f32 %v2851_v0, %v2832_v32 }
 0x2e8   : >> { %v2779_v41 = vpop.f32.mrf.mxu2 }
 0x2e9   : >> { %v2804_v3 = vpop.f32.mrf.mxu3  ;;  %v2783_v57 = vadd.f32 %v2779_v41, %v2758_v17  ;;  %v3292_v17 = vperm.slane %v5331_v9, 0  ;;  %v4393_v9 = vld [vmem:[%s6204_s5 + $0x10] sm:$0xff] (%p1674_p12) }
 0x2ea   : >> { %v2926_v5 = vpop.f32.mrf.mxu0 }
 0x2eb   : >> { %v2808_v60 = vadd.f32 %v2804_v3, %v2783_v57 }
 0x2ec   : >> { %v2951_v24 = vpop.f32.mrf.mxu1 }
 0x2ed   : >> { %v2833_v28 = vadd.f32 %v2829_v56, %v2808_v60 }
 0x2ef   : >> { %v2858_v30 = vadd.f32 %v2854_v52, %v2833_v28 }
 0x2f0   : >> { %v2876_v36 = vpop.f32.mrf.mxu2 }
 0x2f1   : >> { %v2901_v15 = vpop.f32.mrf.mxu3  ;;  %v2882_v13 = vadd.f32 %v2876_v36, %v2857_v12 }
 0x2f2   : >> { %v2929_v16 = vpop.f32.mrf.mxu0 }
 0x2f3   : >> { %v2907_v6 = vadd.f32 %v2901_v15, %v2882_v13 }
 0x2f4   : >> { %v2954_v7 = vpop.f32.mrf.mxu1 }
 0x2f5   : >> { %v2932_v26 = vadd.f32 %v2926_v5, %v2907_v6 }
 0x2f7   : >> { %v2957_v18 = vadd.f32 %v2951_v24, %v2932_v26 }
 0x2f8   : >> { %v2879_v19 = vpop.f32.mrf.mxu2 }
 0x2f9   : >> { %v2904_v21 = vpop.f32.mrf.mxu3  ;;  %v2883_v35 = vadd.f32 %v2879_v19, %v2858_v30  ;;  %v3310_v30 = vld [vmem:[%s6204_s5] sm:$0xff] (%p1674_p12) }
 0x2fa   : >> { %v3026_v23 = vpop.f32.mrf.mxu0 }
 0x2fb   : >> { %v2908_v29 = vadd.f32 %v2904_v21, %v2883_v35  ;;  %v4394_v35 = vld [vmem:[%s6204_s5 + $0x18] sm:$0xff] (%p1674_p12) }
 0x2fc   : >> { %v3051_v58 = vpop.f32.mrf.mxu1  ;;  %3334 = vmatpush.msra.mxu0 (%p1674_p12), %v4394_v35  ;;  %v4461_v35 = vld [vmem:[%s6204_s5 + $0x178] sm:$0xff] (%p1674_p12) }
 0x2fd   : >> { %v2933_v27 = vadd.f32 %v2929_v16, %v2908_v29  ;;  %v4397_v29 = vld [vmem:[%s6204_s5 + $0x20] sm:$0xff] (%p1674_p12) }
 0x2fe   : > { %3335 = vmatpush.msra.mxu0 (%p1674_p12), %v4393_v9  ;;  %v4460_v9 = vld [vmem:[%s6204_s5 + $0x170] sm:$0xff] (%p1674_p12) }
 0x2ff   : >> { %v2958_v8 = vadd.f32 %v2954_v7, %v2933_v27  ;;  %v4407_v27 = vld [vmem:[%s6204_s5 + $0x58] sm:$0xff] (%p1674_p12) }
 0x300   : >> { %v2976_v20 = vpop.f32.mrf.mxu2 }
 0x301   : >> { %v3001_v42 = vpop.f32.mrf.mxu3  ;;  %v2982_v39 = vadd.f32 %v2976_v20, %v2957_v18  ;;  %v4398_v20 = vld [vmem:[%s6204_s5 + $0x28] sm:$0xff] (%p1674_p12) }
 0x302   : >> { %v3029_v43 = vpop.f32.mrf.mxu0  ;;  %v4404_v18 = vld [vmem:[%s6204_s5 + $0x48] sm:$0xff] (%p1674_p12) }
 0x303   : >> { %v3007_v51 = vadd.f32 %v3001_v42, %v2982_v39  ;;  %v4410_v39 = vld [vmem:[%s6204_s5 + $0x68] sm:$0xff] (%p1674_p12)  ;;  %3440 = vmatpush.msrb.mxu0 (%p1674_p12), %v4404_v18 }
 0x304   : >> { %v3054_v22 = vpop.f32.mrf.mxu1  ;;  %3497 = vmatpush.msra.mxu2 (%p1674_p12), %v4410_v39 }
 0x305   : >> { %v3032_v62 = vadd.f32 %v3026_v23, %v3007_v51 }
 0x307   : >> { %v3057_v14 = vadd.f32 %v3051_v58, %v3032_v62 }
 0x308   : >> { %v2979_v53 = vpop.f32.mrf.mxu2 }
 0x309   : >> { %v3004_v44 = vpop.f32.mrf.mxu3  ;;  %v2983_v49 = vadd.f32 %v2979_v53, %v2958_v8  ;;  %v4409_v53 = vld [vmem:[%s6204_s5 + $0x60] sm:$0xff] (%p1674_p12)  ;;  %v4406_v8 = vld [vmem:[%s6204_s5 + $0x50] sm:$0xff] (%p1674_p12) }
 0x30a   : >> { %v3126_v34 = vpop.f32.mrf.mxu0  ;;  %3498 = vmatpush.msra.mxu2 (%p1674_p12), %v4409_v53 }
 0x30b   : >> { %v3008_v61 = vadd.f32 %v3004_v44, %v2983_v49  ;;  %v4400_v44 = vld [vmem:[%s6204_s5 + $0x30] sm:$0xff] (%p1674_p12) }
 0x30c   : >> { %v3157_v46 = vpop.f32.mrf.mxu1 }
 0x30d   : >> { %v3033_v25 = vadd.f32 %v3029_v43, %v3008_v61  ;;  %v4401_v43 = vld [vmem:[%s6204_s5 + $0x38] sm:$0xff] (%p1674_p12)  ;;  %v4412_v61 = vld [vmem:[%s6204_s5 + $0x70] sm:$0xff] (%p1674_p12) }
 0x30f   : >> { %v3058_v50 = vadd.f32 %v3054_v22, %v3033_v25  ;;  %v4403_v22 = vld [vmem:[%s6204_s5 + $0x40] sm:$0xff] (%p1674_p12) }
 0x310   : >> { %v3076_v47 = vpop.f32.mrf.mxu2  ;;  %3441 = vmatpush.msrb.mxu0 (%p1674_p12), %v4403_v22  ;;  %v4415_v25 = vld [vmem:[%s6204_s5 + $0x80] sm:$0xff] (%p1674_p12) }
 0x311   : >> { %v3101_v33 = vpop.f32.mrf.mxu3  ;;  %v3082_v11 = vadd.f32 %v3076_v47, %v3057_v14  ;;  %v4419_v47 = vld [vmem:[%s6204_s5 + $0x98] sm:$0xff] (%p1674_p12)  ;;  %v4421_v14 = vld [vmem:[%s6204_s5 + $0xa0] sm:$0xff] (%p1674_p12) }
 0x312   : >> { %v3129_v37 = vpop.f32.mrf.mxu0  ;;  %3581 = vmatpush.msra.mxu1 (%p1674_p12), %v4419_v47 }
 0x313   : >> { %v3107_v59 = vadd.f32 %v3101_v33, %v3082_v11  ;;  %v4416_v33 = vld [vmem:[%s6204_s5 + $0x88] sm:$0xff] (%p1674_p12) }
 0x314   : >> { %v3160_v55 = vpop.f32.mrf.mxu1  ;;  %v4434_v11 = vld [vmem:[%s6204_s5 + $0xe8] sm:$0xff] (%p1674_p12) }
 0x315   : >> { %v3132_v54 = vadd.f32 %v3126_v34, %v3107_v59  ;;  %v4422_v34 = vld [vmem:[%s6204_s5 + $0xa8] sm:$0xff] (%p1674_p12) }
 0x316   : > { %3610 = vmatpush.msrb.mxu2 (%p1674_p12), %v4422_v34 }
 0x317   : >> { %v3163_v38 = vadd.f32 %v3157_v46, %v3132_v54  ;;  %v4413_v46 = vld [vmem:[%s6204_s5 + $0x78] sm:$0xff] (%p1674_p12) }
 0x318   : >> { %v3079_v0 = vpop.f32.mrf.mxu2  ;;  %3611 = vmatpush.msrb.mxu2 (%p1674_p12), %v4421_v14  ;;  %v4023_v14 = vld [vmem:[%s6206_s7 + $0x48] sm:$0xff] (%p1674_p12) }
 0x319   : >> { %v3104_v48 = vpop.f32.mrf.mxu3  ;;  %v3083_v1 = vadd.f32 %v3079_v0, %v3058_v50  ;;  %v4446_v50 = vld [vmem:[%s6204_s5 + $0x128] sm:$0xff] (%p1674_p12) }
 0x31a   : >> { %v3250_v52 = vpop.f32.mrf.mxu0 }
 0x31b   : >> { %v3108_v56 = vadd.f32 %v3104_v48, %v3083_v1  ;;  %v4431_v48 = vld [vmem:[%s6204_s5 + $0xd8] sm:$0xff] (%p1674_p12)  ;;  %v4430_v1 = vld [vmem:[%s6204_s5 + $0xd0] sm:$0xff] (%p1674_p12) }
 0x31c   : >> { %v3281_v3 = vpop.f32.mrf.mxu1 }
 0x31d   : >> { %v3133_v4 = vadd.f32 %v3129_v37, %v3108_v56  ;;  %v4418_v37 = vld [vmem:[%s6204_s5 + $0x90] sm:$0xff] (%p1674_p12)  ;;  %v4425_v56 = vld [vmem:[%s6204_s5 + $0xb8] sm:$0xff] (%p1674_p12) }
 0x31e   : > { %3582 = vmatpush.msra.mxu1 (%p1674_p12), %v4418_v37 }
 0x31f   : >> { %v3164_v24 = vadd.f32 %v3160_v55, %v3133_v4  ;;  %v4433_v55 = vld [vmem:[%s6204_s5 + $0xe0] sm:$0xff] (%p1674_p12)  ;;  %v4442_v4 = vld [vmem:[%s6204_s5 + $0x110] sm:$0xff] (%p1674_p12) }
 0x320   : >> { %v3188_v40 = vpop.f32.mrf.mxu2  ;;  %3694 = vmatpush.msrb.mxu1 (%p1674_p12), %v4431_v48  ;;  %v4020_v48 = vld [vmem:[%s6206_s7 + $0x30] sm:$0xff] (%p1674_p12) }
 0x321   : >> { %v3219_v63 = vpop.f32.mrf.mxu3  ;;  %v3194_v41 = vadd.f32 %v3188_v40, %v3163_v38  ;;  %v4443_v40 = vld [vmem:[%s6204_s5 + $0x118] sm:$0xff] (%p1674_p12) }
 0x322   : >> { %v3253_v16 = vpop.f32.mrf.mxu0  ;;  %3695 = vmatpush.msrb.mxu1 (%p1674_p12), %v4430_v1  ;;  %v4019_v1 = vld [vmem:[%s6206_s7 + $0x28] sm:$0xff] (%p1674_p12) }
 0x323   : >> { %v3225_v31 = vadd.f32 %v3219_v63, %v3194_v41  ;;  %v4424_v63 = vld [vmem:[%s6204_s5 + $0xb0] sm:$0xff] (%p1674_p12)  ;;  %v4445_v41 = vld [vmem:[%s6204_s5 + $0x120] sm:$0xff] (%p1674_p12) }
 0x324   : >> { %v3284_v60 = vpop.f32.mrf.mxu1 }
 0x325   : >> { %v3256_v5 = vadd.f32 %v3250_v52, %v3225_v31  ;;  %v4428_v52 = vld [vmem:[%s6204_s5 + $0xc8] sm:$0xff] (%p1674_p12) }
 0x327   : >> { %v3287_v10 = vadd.f32 %v3281_v3, %v3256_v5  ;;  %v4427_v3 = vld [vmem:[%s6204_s5 + $0xc0] sm:$0xff] (%p1674_p12) }
 0x328   : >> { %v3191_v36 = vpop.f32.mrf.mxu2 }
 0x329   : >> { %v3222_v15 = vpop.f32.mrf.mxu3  ;;  %v3289_v32 = vmax.f32 %v5890_v45, %v3287_v10  ;;  %v3195_v57 = vadd.f32 %v3191_v36, %v3164_v24  ;;  %v4455_v24 = vld [vmem:[%s6204_s5 + $0x158] sm:$0xff] (%p1674_p12)  ;;  %v4458_v10 = vld [vmem:[%s6204_s5 + $0x168] sm:$0xff] (%p1674_p12)  ;;  %v4454_v36 = vld [vmem:[%s6204_s5 + $0x150] sm:$0xff] (%p1674_p12) }
 0x32b   : >> { %v3294_v7 = vadd.f32 %v3292_v17, %v3289_v32  ;;  %v3226_v12 = vadd.f32 %v3222_v15, %v3195_v57  ;;  %v4437_v32 = vld [vmem:[%s6204_s5 + $0xf8] sm:$0xff] (%p1674_p12)  ;;  %v4440_v57 = vld [vmem:[%s6204_s5 + $0x108] sm:$0xff] (%p1674_p12) }
 0x32d   : >> { %3297 = vst.msk [vmem:[#allocation5] sm:$0xff] %vm3296_vm4, %v3294_v7  ;;  %v3257_v13 = vadd.f32 %v3253_v16, %v3226_v12  ;;  %v4457_v16 = vld [vmem:[%s6204_s5 + $0x160] sm:$0xff] (%p1674_p12)  ;;  %v4436_v7 = vld [vmem:[%s6204_s5 + $0xf0] sm:$0xff] (%p1674_p12) }
 0x32e   : > { %v4439_v12 = vld [vmem:[%s6204_s5 + $0x100] sm:$0xff] (%p1674_p12) }
 0x32f   : >> { %v3288_v19 = vadd.f32 %v3284_v60, %v3257_v13 }
 0x331   : >> { %v3290_v21 = vmax.f32 %v5892_v2, %v3288_v19  ;;  %v3311_v2 = vld [vmem:[%s6204_s5 + $0x8] sm:$0xff] (%p1674_p12) }
 0x332   : > { %3357 = vmatpush.msra.mxu3 (%p1674_p12), %v3311_v2 }
 0x333   : >> { %v3295_v28 = vadd.f32 %v3292_v17, %v3290_v21 }
 0x334   : > { %3358 = vmatpush.msra.mxu3 (%p1674_p12), %v3310_v30 }
 0x335   : >> { %3299 = vst.msk [vmem:[#allocation5 + $0x8] sm:$0x3] %vm3298_vm5, %v3295_v28  ;;  %v4449_v28 = vld [vmem:[%s6204_s5 + $0x138] sm:$0xff] (%p1674_p12) }
 0x336   : > { %3384 = vmatpush.msrb.mxu3 (%p1674_p12), %v4398_v20  ;;  %v4464_v20 = vld [vmem:[%s6204_s5 + $0x188] sm:$0xff] (%p1674_p12) }
 0x338   : > { %3385 = vmatpush.msrb.mxu3 (%p1674_p12), %v4397_v29 }
 0x33c   : >> { %v3300_v6 = vld [vmem:[#allocation5] ss:$2 sm:$0x1f]  ;;  %v3302_v23 = vld [vmem:[#allocation5 + $0x1] ss:$2 sm:$0x1f] }
 0x33d   : >> { %v3303_v58 = vmax.f32 %v3300_v6, %v3302_v23  ;;  %1676 = sbr.rel (!%p1674_p12) target bundleno = 478 (0x1de), region = 208  ;;  %v4452_v6 = vld [vmem:[%s6204_s5 + $0x148] sm:$0xff] (%p1674_p12)  ;;  %v4448_v23 = vld [vmem:[%s6204_s5 + $0x130] sm:$0xff] (%p1674_p12) }
 0x33f   : >> { %v3304_v45 = vmax.f32 %v3303_v58, 0.0  ;;  %v4451_v58 = vld [vmem:[%s6204_s5 + $0x140] sm:$0xff] (%p1674_p12) }
 0x341   : >> { %3308 = vst.msk [vmem:[%s3306_s25] sm:$0x1f] %vm3307_vm6, %v3304_v45  ;;  %s4106_s25 = scalar_lea.hbm (%p1674_p12), %s6210_s11, %s4722_s21 }
 0x342   : > { %s4110_s29 = sshll.u32 %s4106_s25, 4  ;;  %s4111_s29 = int_to_ptr.hbm [resolvable:$true] %s4110_s29 }
 0x343   : > { %s4574_s12 = sshra.s32 %s4111_s29, 4  ;;  %s4575_s12 = int_to_ptr.hbm [resolvable:$true] %s4574_s12 }
 0x344   : > { %s4576_s1 = scalar_lea.hbm %s4575_s12, 1  ;;  %p4581_p2 = scmp.lt.s32.totalorder %s4575_s12, %s6210_s11 }
 0x345   : > { %p4577_p13 = scmp.ne.s32.totalorder %s4575_s12, %s4576_s1  ;;  %p4582_p3 = scmp.lt.s32.totalorder %s4580_s15, %s4576_s1 }
 0x347   : > { %p4578_p0 = pnand %p4577_p13, %p4739_p5  ;;  %p4583_p4 = por %p4582_p3, %p4581_p2 }
 0x348   : > { %v3309_v26 = vld [vmem:[#allocation3] sm:$0x1]  ;;  %v3312_v42 = vld [vmem:[#allocation3 + $0x1] sm:$0x1]  ;;  %v3476_v51 = vld [vmem:[#allocation3 + $0x9] sm:$0x1] }
 0x349   : > { %4396 = vmatmul.msk.f32.vlgmr.msra.gmra.mxu3 %vm3296_vm4, %v3309_v26  ;;  %4395 = vmatmul.msk.f32.vlgmr.msra.gmra.mxu0 %vm3296_vm4, %v3312_v42  ;;  %v3363_v62 = vld [vmem:[#allocation3 + $0x2] sm:$0x1]  ;;  %v3419_v49 = vld [vmem:[#allocation3 + $0x4] sm:$0x1]  ;;  %v3560_v59 = vld [vmem:[#allocation3 + $0xc] sm:$0x1]  ;;  %p4579_p1 = pneg %p4578_p0 }
 0x34a   : > { %3412 = vmatpush.msra.mxu3 %v4401_v43  ;;  %3469 = vmatpush.msra.mxu0 %v4407_v27  ;;  %v3589_v0 = vld [vmem:[#allocation3 + $0x10] sm:$0x1]  ;;  %v3391_v54 = vld [vmem:[#allocation3 + $0x3] sm:$0x1]  ;;  %v3448_v38 = vld [vmem:[#allocation3 + $0x8] sm:$0x1] }
 0x34b   : > { %4411 = vmatmul.msk.f32.vlgmr.msra.gmra.mxu2 %vm3296_vm4, %v3476_v51  ;;  %4420 = vmatmul.msk.f32.vlgmr.msra.gmra.mxu1 %vm3296_vm4, %v3560_v59  ;;  %v3673_v31 = vld [vmem:[#allocation3 + $0x13] sm:$0x1]  ;;  %v3701_v5 = vld [vmem:[#allocation3 + $0x14] sm:$0x1]  ;;  %v3504_v17 = vld [vmem:[#allocation3 + $0xa] sm:$0x1]  ;;  %p4584_p7 = pnand %p4583_p4, %p4579_p1 }
 0x34c   : > { %3413 = vmatpush.msra.mxu3 %v4400_v44  ;;  %3470 = vmatpush.msra.mxu0 %v4406_v8  ;;  %v3532_v15 = vld [vmem:[#allocation3 + $0xb] sm:$0x1]  ;;  %v3786_v60 = vld [vmem:[#allocation3 + $0x1a] sm:$0x1]  ;;  %v3814_v13 = vld [vmem:[#allocation3 + $0x1b] sm:$0x1] }
 0x34d   : > { %3722 = vmatpush.msra.mxu2 %v4434_v11  ;;  %3807 = vmatpush.msra.mxu1 %v4443_v40  ;;  %v3617_v19 = vld [vmem:[#allocation3 + $0x11] sm:$0x1]  ;;  %v3645_v21 = vld [vmem:[#allocation3 + $0x12] sm:$0x1]  ;;  %v3899_v45 = vld [vmem:[#allocation3 + $0x21] sm:$0x1] }
 0x34e   : > { %v3927_v2 = vld [vmem:[#allocation3 + $0x22] sm:$0x1]  ;;  %v3730_v30 = vld [vmem:[#allocation3 + $0x18] sm:$0x1]  ;;  %v3758_v26 = vld [vmem:[#allocation3 + $0x19] sm:$0x1] }
 0x34f   : > { %3723 = vmatpush.msra.mxu2 %v4433_v55  ;;  %3808 = vmatpush.msra.mxu1 %v4442_v4  ;;  %v4463_v42 = vld [vmem:[%s6204_s5 + $0x180] sm:$0xff]  ;;  %v3842_v18 = vld [vmem:[#allocation3 + $0x1c] sm:$0x1]  ;;  %v4028_v44 = vld [vmem:[%s6206_s7 + $0x70] sm:$0xff] }
 0x350   : > { %v3871_v29 = vld [vmem:[#allocation3 + $0x20] sm:$0x1]  ;;  %v3955_v43 = vld [vmem:[#allocation3 + $0x23] sm:$0x1]  ;;  %v3983_v22 = vld [vmem:[#allocation3 + $0x24] sm:$0x1] }
 0x351   : > { %4399 = vmatmul.msk.f32.vlgmr.msrb.gmra.mxu3 %vm3296_vm4, %v3363_v62  ;;  %4405 = vmatmul.msk.f32.vlgmr.msrb.gmra.mxu0 %vm3296_vm4, %v3419_v49  ;;  %v4027_v51 = vld [vmem:[%s6206_s7 + $0x68] sm:$0xff]  ;;  %v4026_v8 = vld [vmem:[%s6206_s7 + $0x60] sm:$0xff]  ;;  %v4025_v62 = vld [vmem:[%s6206_s7 + $0x58] sm:$0xff] }
 0x352   : > { %3525 = vmatpush.msrb.mxu3 %v4413_v46  ;;  %3553 = vmatpush.msrb.mxu0 %v4416_v33  ;;  %v4024_v46 = vld [vmem:[%s6206_s7 + $0x50] sm:$0xff]  ;;  %v4022_v11 = vld [vmem:[%s6206_s7 + $0x40] sm:$0xff]  ;;  %v4021_v59 = vld [vmem:[%s6206_s7 + $0x38] sm:$0xff] }
 0x353   : > { %4423 = vmatmul.msk.f32.vlgmr.msrb.gmra.mxu2 %vm3296_vm4, %v3589_v0  ;;  %4432 = vmatmul.msk.f32.vlgmr.msrb.gmra.mxu1 %vm3296_vm4, %v3673_v31  ;;  %v4016_v31 = vld [vmem:[%s6206_s7 + $0x10] sm:$0xff] }
 0x354   : > { %3526 = vmatpush.msrb.mxu3 %v4412_v61  ;;  %3554 = vmatpush.msrb.mxu0 %v4415_v25 }
 0x355   : > { %3835 = vmatpush.msrb.mxu2 %v4446_v50  ;;  %3920 = vmatpush.msrb.mxu1 %v4455_v24  ;;  %v4015_v24 = vld [vmem:[%s6206_s7 + $0x8] sm:$0xff] }
 0x357   : > { %3836 = vmatpush.msrb.mxu2 %v4445_v41  ;;  %3921 = vmatpush.msrb.mxu1 %v4454_v36  ;;  %v4017_v41 = vld [vmem:[%s6206_s7 + $0x18] sm:$0xff]  ;;  %v4014_v36 = vld [vmem:[%s6206_s7] sm:$0xff] }
 0x359   : > { %4402 = vmatmul.msk.f32.vlgmr.msra.gmra.mxu3 %vm3296_vm4, %v3391_v54  ;;  %4408 = vmatmul.msk.f32.vlgmr.msra.gmra.mxu0 %vm3296_vm4, %v3448_v38 }
 0x35a   : > { %3638 = vmatpush.msra.mxu3 %v4425_v56  ;;  %3666 = vmatpush.msra.mxu0 %v4428_v52  ;;  %v4018_v52 = vld [vmem:[%s6206_s7 + $0x20] sm:$0xff] }
 0x35b   : > { %4435 = vmatmul.msk.f32.vlgmr.msra.gmra.mxu2 %vm3296_vm4, %v3701_v5  ;;  %4444 = vmatmul.msk.f32.vlgmr.msra.gmra.mxu1 %vm3296_vm4, %v3786_v60  ;;  %v4063_v60 = vld [vmem:[%s6208_s9 + $0x40] sm:$0xff] }
 0x35c   : > { %3639 = vmatpush.msra.mxu3 %v4424_v63  ;;  %3667 = vmatpush.msra.mxu0 %v4427_v3 }
 0x35d   : > { %3948 = vmatpush.msra.mxu2 %v4458_v10  ;;  %4035 = vmatpush.msra.mxu1 %v4028_v44 }
 0x35f   : > { %3949 = vmatpush.msra.mxu2 %v4457_v16  ;;  %4036 = vmatpush.msra.mxu1 %v4027_v51  ;;  %v4065_v16 = vld [vmem:[%s6208_s9 + $0x50] sm:$0xf] }
 0x361   : > { %4414 = vmatmul.msk.f32.vlgmr.msrb.gmra.mxu3 %vm3296_vm4, %v3504_v17  ;;  %4417 = vmatmul.msk.f32.vlgmr.msrb.gmra.mxu0 %vm3296_vm4, %v3532_v15 }
 0x362   : > { %3751 = vmatpush.msrb.mxu3 %v4437_v32  ;;  %3779 = vmatpush.msrb.mxu0 %v4440_v57 }
 0x363   : > { %4447 = vmatmul.msk.f32.vlgmr.msrb.gmra.mxu2 %vm3296_vm4, %v3814_v13  ;;  %4456 = vmatmul.msk.f32.vlgmr.msrb.gmra.mxu1 %vm3296_vm4, %v3899_v45 }
 0x364   : > { %3752 = vmatpush.msrb.mxu3 %v4436_v7  ;;  %3780 = vmatpush.msrb.mxu0 %v4439_v12  ;;  %v4064_v7 = vld [vmem:[%s6208_s9 + $0x48] sm:$0xff] }
 0x365   : > { %4037 = vmatpush.msra.mxu1 %v4026_v8  ;;  %4467 = vmatpush.msk.msrb.mxu2 %vm4071_vm7, %v4065_v16 }
 0x367   : > { %4038 = vmatpush.msra.mxu1 %v4025_v62  ;;  %4081 = vmatpush.msrb.mxu2 %v4064_v7  ;;  %v4011_v62 = vld [vmem:[%s6205_s6] sm:$0x1] }
 0x369   : > { %4426 = vmatmul.msk.f32.vlgmr.msra.gmra.mxu3 %vm3296_vm4, %v3617_v19  ;;  %4429 = vmatmul.msk.f32.vlgmr.msra.gmra.mxu0 %vm3296_vm4, %v3645_v21  ;;  %v4062_v21 = vld [vmem:[%s6208_s9 + $0x38] sm:$0xff] }
 0x36a   : > { %3863 = vmatpush.msra.mxu3 %v4449_v28  ;;  %3892 = vmatpush.msra.mxu0 %v4452_v6  ;;  %v4061_v6 = vld [vmem:[%s6208_s9 + $0x30] sm:$0xff] }
 0x36b   : > { %4459 = vmatmul.msk.f32.vlgmr.msra.gmra.mxu2 %vm3296_vm4, %v3927_v2  ;;  %4039 = vmatpush.msra.mxu1 %v4024_v46  ;;  %v4060_v2 = vld [vmem:[%s6208_s9 + $0x28] sm:$0xff] }
 0x36c   : > { %3864 = vmatpush.msra.mxu3 %v4448_v23  ;;  %3893 = vmatpush.msra.mxu0 %v4451_v58 }
 0x36d   : > { %4040 = vmatpush.msra.mxu1 %v4023_v14  ;;  %4082 = vmatpush.msrb.mxu2 %v4063_v60  ;;  %v4056_v14 = vld [vmem:[%s6208_s9 + $0x8] sm:$0xff] }
 0x36f   : > { %4041 = vmatpush.msra.mxu1 %v4022_v11  ;;  %4083 = vmatpush.msrb.mxu2 %v4062_v21  ;;  %v4029_v11 = vld [vmem:[%s6207_s8] sm:$0x1] }
 0x371   : > { %4438 = vmatmul.msk.f32.vlgmr.msrb.gmra.mxu3 %vm3296_vm4, %v3730_v30  ;;  %4441 = vmatmul.msk.f32.vlgmr.msrb.gmra.mxu0 %vm3296_vm4, %v3758_v26 }
 0x372   : > { %3976 = vmatpush.msrb.mxu3 %v4461_v35  ;;  %4004 = vmatpush.msrb.mxu0 %v4464_v20  ;;  %v4059_v35 = vld [vmem:[%s6208_s9 + $0x20] sm:$0xff] }
 0x373   : > { %4042 = vmatpush.msra.mxu1 %v4021_v59  ;;  %4084 = vmatpush.msrb.mxu2 %v4061_v6 }
 0x374   : > { %3977 = vmatpush.msrb.mxu3 %v4460_v9  ;;  %4005 = vmatpush.msrb.mxu0 %v4463_v42  ;;  %v4058_v9 = vld [vmem:[%s6208_s9 + $0x18] sm:$0xff] }
 0x375   : > { %4043 = vmatpush.msra.mxu1 %v4020_v48  ;;  %4085 = vmatpush.msrb.mxu2 %v4060_v2 }
 0x377   : > { %4044 = vmatpush.msra.mxu1 %v4019_v1  ;;  %4086 = vmatpush.msrb.mxu2 %v4059_v35 }
 0x379   : > { %4450 = vmatmul.msk.f32.vlgmr.msra.gmra.mxu3 %vm3296_vm4, %v3842_v18  ;;  %4453 = vmatmul.msk.f32.vlgmr.msra.gmra.mxu0 %vm3296_vm4, %v3871_v29 }
 0x37a   : > { %4045 = vmatpush.msra.mxu1 %v4018_v52  ;;  %4087 = vmatpush.msrb.mxu2 %v4058_v9 }
 0x37c   : > { %4046 = vmatpush.msra.mxu1 %v4017_v41 }
 0x37e   : > { %4047 = vmatpush.msra.mxu1 %v4016_v31 }
 0x380   : > { %4048 = vmatpush.msra.mxu1 %v4015_v24 }
 0x381   : > { %4462 = vmatmul.msk.f32.vlgmr.msrb.gmra.mxu3 %vm3296_vm4, %v3955_v43  ;;  %4465 = vmatmul.msk.f32.vlgmr.msrb.gmra.mxu0 %vm3296_vm4, %v3983_v22 }
 0x382   : > { %4049 = vmatpush.msra.mxu1 %v4014_v36 }
 0x3c6   : > { %v3337_v39 = vpop.f32.mrf.mxu0 }
 0x3c8   : > { %v3584_v50 = vpop.f32.mrf.mxu1 }
 0x3cc   : > { %v3360_v27 = vpop.f32.mrf.mxu3 }
 0x3cd   : > { %v3361_v33 = vadd.f32 %v3360_v27, %v3337_v39 }
 0x3ce   : > { %v3443_v53 = vpop.f32.mrf.mxu0  ;;  %v3500_v47 = vpop.f32.mrf.mxu2 }
 0x3d0   : > { %v3697_v10 = vpop.f32.mrf.mxu1 }
 0x3d4   : > { %v3387_v34 = vpop.f32.mrf.mxu3 }
 0x3d5   : > { %v3390_v61 = vadd.f32 %v3387_v34, %v3361_v33  ;;  %v4057_v33 = vld [vmem:[%s6208_s9 + $0x10] sm:$0xff] }
 0x3d6   : > { %v3472_v49 = vpop.f32.mrf.mxu0  ;;  %v3613_v38 = vpop.f32.mrf.mxu2  ;;  %4088 = vmatpush.msrb.mxu2 %v4057_v33 }
 0x3d8   : > { %v3810_v58 = vpop.f32.mrf.mxu1  ;;  %4089 = vmatpush.msrb.mxu2 %v4056_v14 }
 0x3dc   : > { %v3415_v25 = vpop.f32.mrf.mxu3 }
 0x3dd   : > { %v3418_v37 = vadd.f32 %v3415_v25, %v3390_v61  ;;  %v4055_v61 = vld [vmem:[%s6208_s9] sm:$0xff] }
 0x3de   : > { %v3556_v0 = vpop.f32.mrf.mxu0  ;;  %v3725_v32 = vpop.f32.mrf.mxu2  ;;  %4090 = vmatpush.msrb.mxu2 %v4055_v61 }
 0x3df   : > { %v3446_v55 = vadd.f32 %v3443_v53, %v3418_v37 }
 0x3e0   : > { %v3923_v22 = vpop.f32.mrf.mxu1 }
 0x3e1   : > { %v3475_v54 = vadd.f32 %v3472_v49, %v3446_v55  ;;  %v4066_v55 = vld [vmem:[%s6209_s10] sm:$0x1] }
 0x3e3   : > { %v3503_v56 = vadd.f32 %v3500_v47, %v3475_v54 }
 0x3e4   : > { %v3528_v40 = vpop.f32.mrf.mxu3 }
 0x3e5   : > { %v3531_v63 = vadd.f32 %v3528_v40, %v3503_v56 }
 0x3e6   : > { %v3669_v4 = vpop.f32.mrf.mxu0  ;;  %v3838_v30 = vpop.f32.mrf.mxu2 }
 0x3e7   : > { %v3559_v3 = vadd.f32 %v3556_v0, %v3531_v63 }
 0x3e9   : > { %v3587_v5 = vadd.f32 %v3584_v50, %v3559_v3 }
 0x3eb   : > { %v3616_v17 = vadd.f32 %v3613_v38, %v3587_v5 }
 0x3ec   : > { %v3641_v15 = vpop.f32.mrf.mxu3 }
 0x3ed   : > { %v3644_v57 = vadd.f32 %v3641_v15, %v3616_v17 }
 0x3ee   : > { %v3782_v13 = vpop.f32.mrf.mxu0  ;;  %v3951_v27 = vpop.f32.mrf.mxu2 }
 0x3ef   : > { %v3672_v12 = vadd.f32 %v3669_v4, %v3644_v57 }
 0x3f1   : > { %v3700_v19 = vadd.f32 %v3697_v10, %v3672_v12 }
 0x3f3   : > { %v3728_v28 = vadd.f32 %v3725_v32, %v3700_v19 }
 0x3f4   : > { %v3754_v23 = vpop.f32.mrf.mxu3 }
 0x3f5   : > { %v3757_v45 = vadd.f32 %v3754_v23, %v3728_v28 }
 0x3f6   : > { %v3895_v42 = vpop.f32.mrf.mxu0 }
 0x3f7   : > { %v3785_v26 = vadd.f32 %v3782_v13, %v3757_v45 }
 0x3f9   : > { %v3813_v20 = vadd.f32 %v3810_v58, %v3785_v26 }
 0x3fb   : > { %v3841_v18 = vadd.f32 %v3838_v30, %v3813_v20 }
 0x3fc   : > { %v3866_v29 = vpop.f32.mrf.mxu3 }
 0x3fd   : > { %v3869_v43 = vadd.f32 %v3866_v29, %v3841_v18 }
 0x3fe   : > { %v4007_v8 = vpop.f32.mrf.mxu0 }
 0x3ff   : > { %v3898_v39 = vadd.f32 %v3895_v42, %v3869_v43 }
 0x401   : > { %v3926_v53 = vadd.f32 %v3923_v22, %v3898_v39 }
 0x403   : > { %v3954_v44 = vadd.f32 %v3951_v27, %v3926_v53 }
 0x404   : > { %v3979_v51 = vpop.f32.mrf.mxu3 }
 0x405   : > { %v3982_v34 = vadd.f32 %v3979_v51, %v3954_v44 }
 0x407   : > { %v4010_v49 = vadd.f32 %v4007_v8, %v3982_v34 }
 0x409   : > { %v4012_v46 = vadd.f32 %v4011_v62, %v4010_v49 }
 0x40b   : > { %v4013_v47 = vmax.f32 %v4012_v46, 0.0 }
 0x40d   : > { %4466 = vmatmul.msk.f32.vlgmr.msra.gmra.mxu1 %vm4030_vm8, %v4013_v47 }
 0x48a   : > { %v4051_v25 = vpop.f32.mrf.mxu1 }
 0x48b   : > { %v4052_v37 = vadd.f32 %v4051_v25, %v4029_v11 }
 0x48d   : > { %v4054_v59 = vmax.f32 %v4052_v37, 0.0 }
 0x48f   : > { %4468 = vmatmul.msk.f32.vlgmr.msrb.gmra.mxu2 %vm4067_vm9, %v4054_v59 }
 0x512   : > { %v4092_v0 = vpop.f32.mrf.mxu2 }
 0x513   : > { %v4093_v48 = vadd.f32 %v4092_v0, %v4066_v55 }
 0x515   : > { %4096 = vst.msk [vmem:[%s4764_s24] sm:$0x1] %vm4095_vm10, %v4093_v48 }
 0x516   : > { %4587 = shalt.err (!%p4584_p7)
}
 0x517   : > { %4476 = dma.vmem_to_hbm [thread:$0]  (%p4739_p5), %s4109_s22, 16, %s4111_s29, %s4098_s14  }
 0x518 PF: > { %p4482_p8 = scmp.ge.s32.totalorder %s4630_s20, 2  ;;  %s4122_s24 = sand.u32 1, %s4618_s17  }
 0x519   : > { %s4123_s30 = scalar_lea.sflag [#allocation7], %s4122_s24 }
 0x51a   : > { %p4479_p9 = pnand %p4482_p8, %p4743_p6 }
 0x51c   : > { %p4480_p10 = pneg %p4479_p9 }
 0x51e   : > { %4613 = dma.done.wait (%p4480_p10), %s4123_s30, 16  }
 0x51f   : > { %4615 = vsyncadd (%p4480_p10), %s4123_s30, 4294967280  ;;  %p21_p11 = scmp.ge.s32.totalorder %s4726_s23, 4   ;;  %s6219_s17 = smov %s4622_s18 }
 0x520   : > { %s6220_s18 = smov %s4626_s19  ;;  %s6221_s19 = smov %s4737_s26 }
 0x521   : > { %s6222_s20 = smov %s4726_s23  ;;  %23 = sbr.rel (!%p21_p11) target bundleno = 6 (0x6), region = 219 }
 0x526   :  { %4128 = vsyncpa [#allocation7], 1 }
 0x527   :  { %4130 = vsyncpa [#allocation7 + $0x1], 1 }

</bundles_post_ra>
